<compile_context>
chip_gen: v7x
topology: tpu7x:2x2x1
jax: 0.10.0
libtpu: 0.0.40
codegen_flags: <defaults>
</compile_context>

<pallas_src>
import numpy as np
import jax
import jax.numpy as jnp
from jax import lax
from jax.experimental import pallas as pl
from jax.experimental.pallas import tpu as pltpu

_INV_SQRT2 = 0.7071067811865476
_K = 3  # conv kernel size


# ---------------------------------------------------------------------------
# small helpers
# ---------------------------------------------------------------------------
def _const_spec(shape):
    """Full-array block whose index does not depend on the (batch) grid index."""
    nd = len(shape)
    return pl.BlockSpec(shape, lambda b, _nd=nd: (0,) * _nd)


def _sel_const(t_in, stride, k_size=_K):
    """0/1 tap-selection matrices: (sel[k] @ h)[t] == h[stride*t + k - pad] (0 if padded)."""
    pad = k_size // 2
    t_out = (t_in + 2 * pad - k_size) // stride + 1
    sel = np.zeros((k_size, t_out, t_in), np.float32)
    for k in range(k_size):
        for t in range(t_out):
            j = stride * t + k - pad
            if 0 <= j < t_in:
                sel[k, t, j] = 1.0
    return jnp.asarray(sel)


def bn_scale_shift(bnp, eps):
    scale = bnp["gamma"] / jnp.sqrt(bnp["var"] + eps)
    shift = bnp["beta"] - bnp["mean"] * scale
    return scale, shift


def _leaky(y):
    return jnp.where(y >= 0, y, 0.2 * y)


# ---------------------------------------------------------------------------
# in-kernel building blocks
# ---------------------------------------------------------------------------
def _conv3(h, sel_ref, w_ref):
    """Conv1d(k=3, 'same' padding; stride folded into sel) as 2*K small MXU matmuls.
    h: (T_in, Cin) value; sel_ref: (K, T_out, T_in); w_ref: (K, Cin, Cout)."""
    acc = None
    for k in range(_K):  # static unrolled taps
        tap = jnp.dot(sel_ref[k], h, preferred_element_type=jnp.float32)
        y = jnp.dot(tap, w_ref[k], preferred_element_type=jnp.float32)
        acc = y if acc is None else acc + y
    return acc


# ---------------------------------------------------------------------------
# Kernel 1: fused mel_encoder  (conv(no bias) -> BN -> GELU -> conv(no bias))
# ---------------------------------------------------------------------------
def _mel_kernel(mel_ref, sel_ref, w1_ref, s1_ref, b1_ref, w2_ref, o_ref):
    m = mel_ref[0]                                    # (Tm, x_dim)
    h = _conv3(m, sel_ref, w1_ref)                    # conv1 (no bias)
    h = h * s1_ref[...] + b1_ref[...]                 # folded BatchNorm1d(64), eps=1e-5
    h = 0.5 * h * (1.0 + lax.erf(h * _INV_SQRT2))     # exact GELU (nn.GELU())
    o_ref[0] = _conv3(h, sel_ref, w2_ref)             # conv2 (no bias)


def _mel_encoder_pallas(mel_ds, w1, bn_scale, bn_shift, w2):
    B, Tm, Cin = mel_ds.shape
    Cout = w2.shape[-1]
    sel = _sel_const(Tm, 1)
    s1 = bn_scale.reshape(1, -1)
    b1 = bn_shift.reshape(1, -1)
    return pl.pallas_call(
        _mel_kernel,
        grid=(B,),
        in_specs=[pl.BlockSpec((1, Tm, Cin), lambda b: (b, 0, 0)),
                  _const_spec(sel.shape), _const_spec(w1.shape),
                  _const_spec(s1.shape), _const_spec(b1.shape),
                  _const_spec(w2.shape)],
        out_specs=pl.BlockSpec((1, Tm, Cout), lambda b: (b, 0, 0)),
        out_shape=jax.ShapeDtypeStruct((B, Tm, Cout), jnp.float32),
        compiler_params=pltpu.CompilerParams(dimension_semantics=("parallel",)),
    )(mel_ds, sel, w1, s1, b1, w2)


# ---------------------------------------------------------------------------
# Kernel 2: fused per-window discriminator chain
#   [in_proj(x)+cond_proj(c)] -> 3x(Conv1d s2 + LeakyReLU [+BN eps=0.8]) -> adv Linear
# ---------------------------------------------------------------------------
def _window_kernel(xc_ref, wcat_ref, bcat_ref,
                   sel1_ref, w1_ref, b1_ref,
                   sel2_ref, w2_ref, b2_ref, s2_ref, t2_ref,
                   sel3_ref, w3_ref, b3_ref, s3_ref, t3_ref,
                   a_ref, advb_ref, o_ref):
    # in_proj(x) + cond_proj(c) as one concatenated matmul (contraction y_dim+64)
    h0 = jnp.dot(xc_ref[0], wcat_ref[...],
                 preferred_element_type=jnp.float32) + bcat_ref[...]          # (W, 64)
    # block1 (first=True): conv s2 + bias + LeakyReLU(0.2)   (no BN)
    h1 = _leaky(_conv3(h0, sel1_ref, w1_ref) + b1_ref[...])                    # (W/2, 128)
    # block2/3: conv s2 + bias + LeakyReLU + Dropout2d(eval: id) + BN(eps=0.8)
    h2 = _leaky(_conv3(h1, sel2_ref, w2_ref) + b2_ref[...]) * s2_ref[...] + t2_ref[...]
    h3 = _leaky(_conv3(h2, sel3_ref, w3_ref) + b3_ref[...]) * s3_ref[...] + t3_ref[...]
    # adv_layer: torch flattens (B,C,T)->(B,C*T); A[t,c] = adv_w[c*ds + t] folds that in
    v = jnp.sum(h3 * a_ref[...], axis=1, keepdims=True)                        # (ds, 1)
    v = jnp.sum(v, axis=0, keepdims=True) + advb_ref[...]                      # (1, 1)
    o_ref[0] = v


def _window_disc_pallas(xc, p, win):
    """xc: (B, win, y_dim+64). Entire per-window chain in one pallas_call."""
    B, W, Ccat = xc.shape
    hidden = p["b1_w"].shape[-1]
    ds = W // 8

    wcat = jnp.concatenate([p["in_proj_w"], p["cond_proj_w"]], axis=0)   # (Ccat, 64)
    bcat = (p["in_proj_b"] + p["cond_proj_b"]).reshape(1, -1)
    b1 = p["b1_b"].reshape(1, -1)
    s2, t2 = bn_scale_shift(p["b2_bn"], 0.8)
    s3, t3 = bn_scale_shift(p["b3_bn"], 0.8)
    b2, s2, t2 = p["b2_b"].reshape(1, -1), s2.reshape(1, -1), t2.reshape(1, -1)
    b3, s3, t3 = p["b3_b"].reshape(1, -1), s3.reshape(1, -1), t3.reshape(1, -1)
    sel1 = _sel_const(W, 2)
    sel2 = _sel_const(W // 2, 2)
    sel3 = _sel_const(W // 4, 2)
    # flat[b, c*ds + t] = h3[b, t, c]  ->  A[t, c] = adv_w[c*ds + t]
    a_mat = p["adv_w"][:, 0].reshape(hidden, ds).T                        # (ds, hidden)
    advb = p["adv_b"].reshape(1, 1)

    operands = (xc, wcat, bcat,
                sel1, p["b1_w"], b1,
                sel2, p["b2_w"], b2, s2, t2,
                sel3, p["b3_w"], b3, s3, t3,
                a_mat, advb)
    in_specs = [pl.BlockSpec((1, W, Ccat), lambda b: (b, 0, 0))]
    in_specs += [_const_spec(op.shape) for op in operands[1:]]

    out = pl.pallas_call(
        _window_kernel,
        grid=(B,),
        in_specs=in_specs,
        out_specs=pl.BlockSpec((1, 1, 1), lambda b: (b, 0, 0)),
        out_shape=jax.ShapeDtypeStruct((B, 1, 1), jnp.float32),
        compiler_params=pltpu.CompilerParams(dimension_semantics=("parallel",)),
    )(*operands)
    return out[:, 0, :]                                                   # (B, 1)


# ---------------------------------------------------------------------------
# Full forward (standard conditional disc, reduction='sum'), one jax.jit program
# ---------------------------------------------------------------------------
def _forward_impl(x, mel, params, starts, time_lengths):
    B = x.shape[0]
    # downsampler: F.interpolate(nearest, scale=0.5) == take every 2nd frame
    mel_ds = mel[:, ::2, :][:, : mel.shape[1] // 2, :]
    s1, b1 = bn_scale_shift(params["mel_bn"], 1e-5)
    mel_feat = _mel_encoder_pallas(mel_ds, params["mel_conv1_w"], s1, b1,
                                   params["mel_conv2_w"])
    validity = jnp.zeros((B, 1), jnp.float32)
    for i, win in enumerate(time_lengths):
        p = params["wins"][i]
        st = starts[i]
        x_clip = lax.dynamic_slice_in_dim(x, st, win, axis=1)
        c_clip = lax.dynamic_slice_in_dim(mel_feat, st, win, axis=1)
        xc = jnp.concatenate([x_clip, c_clip], axis=-1)                   # (B, win, y_dim+64)
        validity = validity + _window_disc_pallas(xc, p, win)             # reduction='sum'
    return validity


_forward_jit = jax.jit(_forward_impl, static_argnames=("time_lengths",))


def discriminator_forward(x, mel, params, time_lengths=(8, 16, 32),
                          x_len=None, start_frames_wins=None, rng=None):
    """x: (B, T, y_dim), mel: (B, T_mel, x_dim). Returns validity (B, 1) or None.
    Pass `x_len` (host ints) or `start_frames_wins` to avoid any device->host sync."""
    if start_frames_wins is None:
        if x_len is None:
            # x_len = x.sum(-1).ne(0).int().sum(1); a single 4-byte scalar is pulled to
            # host -- it is needed for the data-dependent random clip / early-out,
            # exactly like torch's x_len.min().item().
            x_len_min = int(jnp.min(jnp.sum((jnp.sum(x, -1) != 0).astype(jnp.int32),
                                            axis=1)))
        else:
            x_len_min = int(np.min(np.asarray(x_len)))
        if rng is None:
            rng = np.random.default_rng(0)   # deterministic clip-start selection
        start_frames_wins = []
        for win in time_lengths:
            t_end = x_len_min - win
            if t_end < 0:
                return None                  # mirrors the torch early-out
            start_frames_wins.append(int(rng.integers(0, t_end + 1)))
    starts = jnp.asarray(start_frames_wins, jnp.int32)
    return _forward_jit(x, mel, params, starts, time_lengths=tuple(time_lengths))


# ---------------------------------------------------------------------------
# Deterministic parameter initialization (shapes follow the torch __init__)
# ---------------------------------------------------------------------------
def init_params(key, x_dim=80, y_dim=64, hidden=128, time_lengths=(8, 16, 32)):
    ks = iter(jax.random.split(key, 256))

    def rnd(shape, scale=0.05):
        return scale * jax.random.normal(next(ks), shape, dtype=jnp.float32)

    def bn_params(c):
        return dict(gamma=1.0 + rnd((c,), 0.1), beta=rnd((c,), 0.1),
                    mean=rnd((c,), 0.1), var=1.0 + jnp.abs(rnd((c,), 0.1)))

    params = {
        "mel_conv1_w": rnd((3, x_dim, 64)),
        "mel_bn": bn_params(64),
        "mel_conv2_w": rnd((3, 64, 64)),
        "wins": [],
    }
    for tl in time_lengths:
        ds = tl // (2 ** 3)
        params["wins"].append(dict(
            in_proj_w=rnd((y_dim, 64)), in_proj_b=rnd((64,)),
            cond_proj_w=rnd((64, 64)), cond_proj_b=rnd((64,)),
            b1_w=rnd((3, 64, hidden)), b1_b=rnd((hidden,)),
            b2_w=rnd((3, hidden, hidden)), b2_b=rnd((hidden,)), b2_bn=bn_params(hidden),
            b3_w=rnd((3, hidden, hidden)), b3_b=rnd((hidden,)), b3_bn=bn_params(hidden),
            adv_w=rnd((hidden * ds, 1)), adv_b=rnd((1,)),
        ))
    return params


# ---------------------------------------------------------------------------
# Pure-JAX reference (eval-mode torch semantics) for a numerical sanity check
# ---------------------------------------------------------------------------
def _ref_conv(h, w, stride):
    K = w.shape[0]
    pad = K // 2
    B, T, C = h.shape
    t_out = (T + 2 * pad - K) // stride + 1
    hp = jnp.pad(h, ((0, 0), (pad, pad), (0, 0)))
    out = 0.0
    for k in range(K):
        tap = lax.slice(hp, (0, k, 0),
                        (B, k + stride * (t_out - 1) + 1, C), (1, stride, 1))
        out = out + jnp.einsum("btc,co->bto", tap, w[k])
    return out


def _reference_forward(x, mel, params, starts, time_lengths):
    B = x.shape[0]
    mel_ds = mel[:, ::2, :][:, : mel.shape[1] // 2, :]
    s1, b1 = bn_scale_shift(params["mel_bn"], 1e-5)
    h = _ref_conv(mel_ds, params["mel_conv1_w"], 1) * s1 + b1
    h = jax.nn.gelu(h, approximate=False)
    mel_feat = _ref_conv(h, params["mel_conv2_w"], 1)
    validity = 0.0
    for p, win, st in zip(params["wins"], time_lengths, starts):
        x_clip = x[:, st:st + win, :]
        c_clip = mel_feat[:, st:st + win, :]
        xc = (x_clip @ p["in_proj_w"] + p["in_proj_b"]
              + c_clip @ p["cond_proj_w"] + p["cond_proj_b"])
        h1 = _leaky(_ref_conv(xc, p["b1_w"], 2) + p["b1_b"])
        s2, t2 = bn_scale_shift(p["b2_bn"], 0.8)
        h2 = _leaky(_ref_conv(h1, p["b2_w"], 2) + p["b2_b"]) * s2 + t2
        s3, t3 = bn_scale_shift(p["b3_bn"], 0.8)
        h3 = _leaky(_ref_conv(h2, p["b3_w"], 2) + p["b3_b"]) * s3 + t3
        flat = jnp.transpose(h3, (0, 2, 1)).reshape(B, -1)
        validity = validity + flat @ p["adv_w"] + p["adv_b"]
    return validity


if __name__ == "__main__":
    key = jax.random.PRNGKey(0)
    kx, kmel, kp = jax.random.split(key, 3)

    B, T, y_dim, x_dim = 2, 32, 64, 80           # small shapes; T >= max window (32)
    time_lengths = (8, 16, 32)
    x = jax.random.normal(kx, (B, T, y_dim), jnp.float32)
    mel = jax.random.normal(kmel, (B, 2 * T, x_dim), jnp.float32)   # batch['mel']

    params = init_params(kp, x_dim=x_dim, y_dim=y_dim, hidden=128,
                         time_lengths=time_lengths)

    # host-known sequence lengths (no padding) -> no device->host sync in the forward
    x_len = np.full((B,), T, np.int64)
    rng = np.random.default_rng(0)
    starts = []
    for win in time_lengths:
        t_end = int(x_len.min()) - win
        assert t_end >= 0
        starts.append(int(rng.integers(0, t_end + 1)))

    out = discriminator_forward(x, mel, params, time_lengths=time_lengths,
                                x_len=x_len, start_frames_wins=starts)
    out = jax.block_until_ready(out)
    assert out.shape == (B, 1) and bool(jnp.all(jnp.isfinite(out)))

    ref = jax.block_until_ready(_reference_forward(x, mel, params, starts, time_lengths))
    rel_err = float(jnp.max(jnp.abs(out - ref)) / (jnp.max(jnp.abs(ref)) + 1e-6))
    assert rel_err < 0.1, f"kernel/reference mismatch: rel_err={rel_err}"
    print("KERNEL_OK")
</pallas_src>

<mosaic_0001>
module attributes {stable_mosaic.version = 11 : i64} {
  func.func @_mel_kernel(%arg0: i32, %arg1: memref<1x32x80xf32, #tpu.memory_space<vmem>>, %arg2: memref<3x32x32xf32, #tpu.memory_space<vmem>>, %arg3: memref<3x80x64xf32, #tpu.memory_space<vmem>>, %arg4: memref<1x64xf32, #tpu.memory_space<vmem>>, %arg5: memref<1x64xf32, #tpu.memory_space<vmem>>, %arg6: memref<3x64x64xf32, #tpu.memory_space<vmem>>, %arg7: memref<1x32x64xf32, #tpu.memory_space<vmem>>) attributes {dimension_semantics = [#tpu.dimension_semantics<parallel>], iteration_bounds = array<i64: 2>, scalar_prefetch = 0 : i64, scratch_operands = 0 : i64, tpu.core_type = #tpu.core_type<tc>, window_params = [{transform_indices = @transform_0, window_bounds = array<i64: 1, 32, 80>}, {pipeline_mode = #tpu.pipeline_mode<synchronous>, transform_indices = @transform_1, window_bounds = array<i64: 3, 32, 32>}, {pipeline_mode = #tpu.pipeline_mode<synchronous>, transform_indices = @transform_2, window_bounds = array<i64: 3, 80, 64>}, {pipeline_mode = #tpu.pipeline_mode<synchronous>, transform_indices = @transform_3, window_bounds = array<i64: 1, 64>}, {pipeline_mode = #tpu.pipeline_mode<synchronous>, transform_indices = @transform_4, window_bounds = array<i64: 1, 64>}, {pipeline_mode = #tpu.pipeline_mode<synchronous>, transform_indices = @transform_5, window_bounds = array<i64: 3, 64, 64>}, {transform_indices = @transform_6, window_bounds = array<i64: 1, 32, 64>}]} {
    %c0 = arith.constant 0 : index
    %c0_0 = arith.constant 0 : index
    %c0_1 = arith.constant 0 : index
    %0 = vector.load %arg1[%c0, %c0_0, %c0_1] : memref<1x32x80xf32, #tpu.memory_space<vmem>>, vector<1x32x80xf32>
    %1 = vector.shape_cast %0 : vector<1x32x80xf32> to vector<32x80xf32>
    %c0_2 = arith.constant 0 : index
    %c0_3 = arith.constant 0 : index
    %c0_4 = arith.constant 0 : index
    %2 = vector.load %arg2[%c0_2, %c0_3, %c0_4] : memref<3x32x32xf32, #tpu.memory_space<vmem>>, vector<1x32x32xf32>
    %3 = vector.shape_cast %2 : vector<1x32x32xf32> to vector<32x32xf32>
    %cst = arith.constant dense<0.000000e+00> : vector<32x80xf32>
    %4 = tpu.matmul %3, %1, %cst {dimension_numbers = #tpu.dot_dimension_numbers<[1], [0], [0], [1], [0, 0, 1, 1], [], []>} : vector<32x32xf32>, vector<32x80xf32>, vector<32x80xf32> -> vector<32x80xf32>
    %c0_5 = arith.constant 0 : index
    %c0_6 = arith.constant 0 : index
    %c0_7 = arith.constant 0 : index
    %5 = vector.load %arg3[%c0_5, %c0_6, %c0_7] : memref<3x80x64xf32, #tpu.memory_space<vmem>>, vector<1x80x64xf32>
    %6 = vector.shape_cast %5 : vector<1x80x64xf32> to vector<80x64xf32>
    %cst_8 = arith.constant dense<0.000000e+00> : vector<32x64xf32>
    %7 = tpu.matmul %4, %6, %cst_8 {dimension_numbers = #tpu.dot_dimension_numbers<[1], [0], [0], [1], [0, 0, 1, 1], [], []>} : vector<32x80xf32>, vector<80x64xf32>, vector<32x64xf32> -> vector<32x64xf32>
    %c1 = arith.constant 1 : index
    %c0_9 = arith.constant 0 : index
    %c0_10 = arith.constant 0 : index
    %8 = vector.load %arg2[%c1, %c0_9, %c0_10] : memref<3x32x32xf32, #tpu.memory_space<vmem>>, vector<1x32x32xf32>
    %9 = vector.shape_cast %8 : vector<1x32x32xf32> to vector<32x32xf32>
    %cst_11 = arith.constant dense<0.000000e+00> : vector<32x80xf32>
    %10 = tpu.matmul %9, %1, %cst_11 {dimension_numbers = #tpu.dot_dimension_numbers<[1], [0], [0], [1], [0, 0, 1, 1], [], []>} : vector<32x32xf32>, vector<32x80xf32>, vector<32x80xf32> -> vector<32x80xf32>
    %c1_12 = arith.constant 1 : index
    %c0_13 = arith.constant 0 : index
    %c0_14 = arith.constant 0 : index
    %11 = vector.load %arg3[%c1_12, %c0_13, %c0_14] : memref<3x80x64xf32, #tpu.memory_space<vmem>>, vector<1x80x64xf32>
    %12 = vector.shape_cast %11 : vector<1x80x64xf32> to vector<80x64xf32>
    %cst_15 = arith.constant dense<0.000000e+00> : vector<32x64xf32>
    %13 = tpu.matmul %10, %12, %cst_15 {dimension_numbers = #tpu.dot_dimension_numbers<[1], [0], [0], [1], [0, 0, 1, 1], [], []>} : vector<32x80xf32>, vector<80x64xf32>, vector<32x64xf32> -> vector<32x64xf32>
    %14 = arith.addf %7, %13 : vector<32x64xf32>
    %c2 = arith.constant 2 : index
    %c0_16 = arith.constant 0 : index
    %c0_17 = arith.constant 0 : index
    %15 = vector.load %arg2[%c2, %c0_16, %c0_17] : memref<3x32x32xf32, #tpu.memory_space<vmem>>, vector<1x32x32xf32>
    %16 = vector.shape_cast %15 : vector<1x32x32xf32> to vector<32x32xf32>
    %cst_18 = arith.constant dense<0.000000e+00> : vector<32x80xf32>
    %17 = tpu.matmul %16, %1, %cst_18 {dimension_numbers = #tpu.dot_dimension_numbers<[1], [0], [0], [1], [0, 0, 1, 1], [], []>} : vector<32x32xf32>, vector<32x80xf32>, vector<32x80xf32> -> vector<32x80xf32>
    %c2_19 = arith.constant 2 : index
    %c0_20 = arith.constant 0 : index
    %c0_21 = arith.constant 0 : index
    %18 = vector.load %arg3[%c2_19, %c0_20, %c0_21] : memref<3x80x64xf32, #tpu.memory_space<vmem>>, vector<1x80x64xf32>
    %19 = vector.shape_cast %18 : vector<1x80x64xf32> to vector<80x64xf32>
    %cst_22 = arith.constant dense<0.000000e+00> : vector<32x64xf32>
    %20 = tpu.matmul %17, %19, %cst_22 {dimension_numbers = #tpu.dot_dimension_numbers<[1], [0], [0], [1], [0, 0, 1, 1], [], []>} : vector<32x80xf32>, vector<80x64xf32>, vector<32x64xf32> -> vector<32x64xf32>
    %21 = arith.addf %14, %20 : vector<32x64xf32>
    %c0_23 = arith.constant 0 : index
    %c0_24 = arith.constant 0 : index
    %22 = vector.load %arg4[%c0_23, %c0_24] : memref<1x64xf32, #tpu.memory_space<vmem>>, vector<1x64xf32>
    %23 = vector.broadcast %22 : vector<1x64xf32> to vector<32x64xf32>
    %24 = arith.mulf %21, %23 : vector<32x64xf32>
    %c0_25 = arith.constant 0 : index
    %c0_26 = arith.constant 0 : index
    %25 = vector.load %arg5[%c0_25, %c0_26] : memref<1x64xf32, #tpu.memory_space<vmem>>, vector<1x64xf32>
    %26 = vector.broadcast %25 : vector<1x64xf32> to vector<32x64xf32>
    %27 = arith.addf %24, %26 : vector<32x64xf32>
    %cst_27 = arith.constant 5.000000e-01 : f32
    %28 = vector.broadcast %cst_27 : f32 to vector<32x64xf32>
    %29 = arith.mulf %28, %27 : vector<32x64xf32>
    %cst_28 = arith.constant 0.707106769 : f32
    %30 = vector.broadcast %cst_28 : f32 to vector<32x64xf32>
    %31 = arith.mulf %27, %30 : vector<32x64xf32>
    %32 = math.erf %31 : vector<32x64xf32>
    %cst_29 = arith.constant 1.000000e+00 : f32
    %33 = vector.broadcast %cst_29 : f32 to vector<32x64xf32>
    %34 = arith.addf %33, %32 : vector<32x64xf32>
    %35 = arith.mulf %29, %34 : vector<32x64xf32>
    %c0_30 = arith.constant 0 : index
    %c0_31 = arith.constant 0 : index
    %c0_32 = arith.constant 0 : index
    %36 = vector.load %arg2[%c0_30, %c0_31, %c0_32] : memref<3x32x32xf32, #tpu.memory_space<vmem>>, vector<1x32x32xf32>
    %37 = vector.shape_cast %36 : vector<1x32x32xf32> to vector<32x32xf32>
    %cst_33 = arith.constant dense<0.000000e+00> : vector<32x64xf32>
    %38 = tpu.matmul %37, %35, %cst_33 {dimension_numbers = #tpu.dot_dimension_numbers<[1], [0], [0], [1], [0, 0, 1, 1], [], []>} : vector<32x32xf32>, vector<32x64xf32>, vector<32x64xf32> -> vector<32x64xf32>
    %c0_34 = arith.constant 0 : index
    %c0_35 = arith.constant 0 : index
    %c0_36 = arith.constant 0 : index
    %39 = vector.load %arg6[%c0_34, %c0_35, %c0_36] : memref<3x64x64xf32, #tpu.memory_space<vmem>>, vector<1x64x64xf32>
    %40 = vector.shape_cast %39 : vector<1x64x64xf32> to vector<64x64xf32>
    %cst_37 = arith.constant dense<0.000000e+00> : vector<32x64xf32>
    %41 = tpu.matmul %38, %40, %cst_37 {dimension_numbers = #tpu.dot_dimension_numbers<[1], [0], [0], [1], [0, 0, 1, 1], [], []>} : vector<32x64xf32>, vector<64x64xf32>, vector<32x64xf32> -> vector<32x64xf32>
    %c1_38 = arith.constant 1 : index
    %c0_39 = arith.constant 0 : index
    %c0_40 = arith.constant 0 : index
    %42 = vector.load %arg2[%c1_38, %c0_39, %c0_40] : memref<3x32x32xf32, #tpu.memory_space<vmem>>, vector<1x32x32xf32>
    %43 = vector.shape_cast %42 : vector<1x32x32xf32> to vector<32x32xf32>
    %cst_41 = arith.constant dense<0.000000e+00> : vector<32x64xf32>
    %44 = tpu.matmul %43, %35, %cst_41 {dimension_numbers = #tpu.dot_dimension_numbers<[1], [0], [0], [1], [0, 0, 1, 1], [], []>} : vector<32x32xf32>, vector<32x64xf32>, vector<32x64xf32> -> vector<32x64xf32>
    %c1_42 = arith.constant 1 : index
    %c0_43 = arith.constant 0 : index
    %c0_44 = arith.constant 0 : index
    %45 = vector.load %arg6[%c1_42, %c0_43, %c0_44] : memref<3x64x64xf32, #tpu.memory_space<vmem>>, vector<1x64x64xf32>
    %46 = vector.shape_cast %45 : vector<1x64x64xf32> to vector<64x64xf32>
    %cst_45 = arith.constant dense<0.000000e+00> : vector<32x64xf32>
    %47 = tpu.matmul %44, %46, %cst_45 {dimension_numbers = #tpu.dot_dimension_numbers<[1], [0], [0], [1], [0, 0, 1, 1], [], []>} : vector<32x64xf32>, vector<64x64xf32>, vector<32x64xf32> -> vector<32x64xf32>
    %48 = arith.addf %41, %47 : vector<32x64xf32>
    %c2_46 = arith.constant 2 : index
    %c0_47 = arith.constant 0 : index
    %c0_48 = arith.constant 0 : index
    %49 = vector.load %arg2[%c2_46, %c0_47, %c0_48] : memref<3x32x32xf32, #tpu.memory_space<vmem>>, vector<1x32x32xf32>
    %50 = vector.shape_cast %49 : vector<1x32x32xf32> to vector<32x32xf32>
    %cst_49 = arith.constant dense<0.000000e+00> : vector<32x64xf32>
    %51 = tpu.matmul %50, %35, %cst_49 {dimension_numbers = #tpu.dot_dimension_numbers<[1], [0], [0], [1], [0, 0, 1, 1], [], []>} : vector<32x32xf32>, vector<32x64xf32>, vector<32x64xf32> -> vector<32x64xf32>
    %c2_50 = arith.constant 2 : index
    %c0_51 = arith.constant 0 : index
    %c0_52 = arith.constant 0 : index
    %52 = vector.load %arg6[%c2_50, %c0_51, %c0_52] : memref<3x64x64xf32, #tpu.memory_space<vmem>>, vector<1x64x64xf32>
    %53 = vector.shape_cast %52 : vector<1x64x64xf32> to vector<64x64xf32>
    %cst_53 = arith.constant dense<0.000000e+00> : vector<32x64xf32>
    %54 = tpu.matmul %51, %53, %cst_53 {dimension_numbers = #tpu.dot_dimension_numbers<[1], [0], [0], [1], [0, 0, 1, 1], [], []>} : vector<32x64xf32>, vector<64x64xf32>, vector<32x64xf32> -> vector<32x64xf32>
    %55 = arith.addf %48, %54 : vector<32x64xf32>
    %c0_54 = arith.constant 0 : index
    %c0_55 = arith.constant 0 : index
    %c0_56 = arith.constant 0 : index
    %56 = vector.load %arg7[%c0_54, %c0_55, %c0_56] : memref<1x32x64xf32, #tpu.memory_space<vmem>>, vector<1x32x64xf32>
    %57 = vector.shape_cast %56 : vector<1x32x64xf32> to vector<32x64xf32>
    %58 = vector.shape_cast %55 : vector<32x64xf32> to vector<1x32x64xf32>
    tpu.vector_store %arg7[%c0_54, %c0_55, %c0_56], %58 {strides = array<i32>} : memref<1x32x64xf32, #tpu.memory_space<vmem>>, vector<1x32x64xf32>,
    return
  }
  func.func @transform_0(%arg0: i32) -> (i32, i32, i32) {
    %c0_i32 = arith.constant 0 : i32
    %c0_i32_0 = arith.constant 0 : i32
    %c0_i32_1 = arith.constant 0 : i32
    return %arg0, %c0_i32, %c0_i32_0 : i32, i32, i32
  }
  func.func @transform_1(%arg0: i32) -> (i32, i32, i32) {
    %c0_i32 = arith.constant 0 : i32
    %c0_i32_0 = arith.constant 0 : i32
    %c0_i32_1 = arith.constant 0 : i32
    %c0_i32_2 = arith.constant 0 : i32
    return %c0_i32, %c0_i32_0, %c0_i32_1 : i32, i32, i32
  }
  func.func @transform_2(%arg0: i32) -> (i32, i32, i32) {
    %c0_i32 = arith.constant 0 : i32
    %c0_i32_0 = arith.constant 0 : i32
    %c0_i32_1 = arith.constant 0 : i32
    %c0_i32_2 = arith.constant 0 : i32
    return %c0_i32, %c0_i32_0, %c0_i32_1 : i32, i32, i32
  }
  func.func @transform_3(%arg0: i32) -> (i32, i32) {
    %c0_i32 = arith.constant 0 : i32
    %c0_i32_0 = arith.constant 0 : i32
    %c0_i32_1 = arith.constant 0 : i32
    return %c0_i32, %c0_i32_0 : i32, i32
  }
  func.func @transform_4(%arg0: i32) -> (i32, i32) {
    %c0_i32 = arith.constant 0 : i32
    %c0_i32_0 = arith.constant 0 : i32
    %c0_i32_1 = arith.constant 0 : i32
    return %c0_i32, %c0_i32_0 : i32, i32
  }
  func.func @transform_5(%arg0: i32) -> (i32, i32, i32) {
    %c0_i32 = arith.constant 0 : i32
    %c0_i32_0 = arith.constant 0 : i32
    %c0_i32_1 = arith.constant 0 : i32
    %c0_i32_2 = arith.constant 0 : i32
    return %c0_i32, %c0_i32_0, %c0_i32_1 : i32, i32, i32
  }
  func.func @transform_6(%arg0: i32) -> (i32, i32, i32) {
    %c0_i32 = arith.constant 0 : i32
    %c0_i32_0 = arith.constant 0 : i32
    %c0_i32_1 = arith.constant 0 : i32
    return %arg0, %c0_i32, %c0_i32_0 : i32, i32, i32
  }
}

module attributes {stable_mosaic.version = 11 : i64} {
  func.func @_window_kernel(%arg0: i32, %arg1: memref<1x16x128xf32, #tpu.memory_space<vmem>>, %arg2: memref<128x64xf32, #tpu.memory_space<vmem>>, %arg3: memref<1x64xf32, #tpu.memory_space<vmem>>, %arg4: memref<3x8x16xf32, #tpu.memory_space<vmem>>, %arg5: memref<3x64x128xf32, #tpu.memory_space<vmem>>, %arg6: memref<1x128xf32, #tpu.memory_space<vmem>>, %arg7: memref<3x4x8xf32, #tpu.memory_space<vmem>>, %arg8: memref<3x128x128xf32, #tpu.memory_space<vmem>>, %arg9: memref<1x128xf32, #tpu.memory_space<vmem>>, %arg10: memref<1x128xf32, #tpu.memory_space<vmem>>, %arg11: memref<1x128xf32, #tpu.memory_space<vmem>>, %arg12: memref<3x2x4xf32, #tpu.memory_space<vmem>>, %arg13: memref<3x128x128xf32, #tpu.memory_space<vmem>>, %arg14: memref<1x128xf32, #tpu.memory_space<vmem>>, %arg15: memref<1x128xf32, #tpu.memory_space<vmem>>, %arg16: memref<1x128xf32, #tpu.memory_space<vmem>>, %arg17: memref<2x128xf32, #tpu.memory_space<vmem>>, %arg18: memref<1x1xf32, #tpu.memory_space<vmem>>, %arg19: memref<1x1x1xf32, #tpu.memory_space<vmem>>) attributes {dimension_semantics = [#tpu.dimension_semantics<parallel>], iteration_bounds = array<i64: 2>, scalar_prefetch = 0 : i64, scratch_operands = 0 : i64, tpu.core_type = #tpu.core_type<tc>, window_params = [{transform_indices = @transform_0, window_bounds = array<i64: 1, 16, 128>}, {pipeline_mode = #tpu.pipeline_mode<synchronous>, transform_indices = @transform_1, window_bounds = array<i64: 128, 64>}, {pipeline_mode = #tpu.pipeline_mode<synchronous>, transform_indices = @transform_2, window_bounds = array<i64: 1, 64>}, {pipeline_mode = #tpu.pipeline_mode<synchronous>, transform_indices = @transform_3, window_bounds = array<i64: 3, 8, 16>}, {pipeline_mode = #tpu.pipeline_mode<synchronous>, transform_indices = @transform_4, window_bounds = array<i64: 3, 64, 128>}, {pipeline_mode = #tpu.pipeline_mode<synchronous>, transform_indices = @transform_5, window_bounds = array<i64: 1, 128>}, {pipeline_mode = #tpu.pipeline_mode<synchronous>, transform_indices = @transform_6, window_bounds = array<i64: 3, 4, 8>}, {pipeline_mode = #tpu.pipeline_mode<synchronous>, transform_indices = @transform_7, window_bounds = array<i64: 3, 128, 128>}, {pipeline_mode = #tpu.pipeline_mode<synchronous>, transform_indices = @transform_8, window_bounds = array<i64: 1, 128>}, {pipeline_mode = #tpu.pipeline_mode<synchronous>, transform_indices = @transform_9, window_bounds = array<i64: 1, 128>}, {pipeline_mode = #tpu.pipeline_mode<synchronous>, transform_indices = @transform_10, window_bounds = array<i64: 1, 128>}, {pipeline_mode = #tpu.pipeline_mode<synchronous>, transform_indices = @transform_11, window_bounds = array<i64: 3, 2, 4>}, {pipeline_mode = #tpu.pipeline_mode<synchronous>, transform_indices = @transform_12, window_bounds = array<i64: 3, 128, 128>}, {pipeline_mode = #tpu.pipeline_mode<synchronous>, transform_indices = @transform_13, window_bounds = array<i64: 1, 128>}, {pipeline_mode = #tpu.pipeline_mode<synchronous>, transform_indices = @transform_14, window_bounds = array<i64: 1, 128>}, {pipeline_mode = #tpu.pipeline_mode<synchronous>, transform_indices = @transform_15, window_bounds = array<i64: 1, 128>}, {pipeline_mode = #tpu.pipeline_mode<synchronous>, transform_indices = @transform_16, window_bounds = array<i64: 2, 128>}, {pipeline_mode = #tpu.pipeline_mode<synchronous>, transform_indices = @transform_17, window_bounds = array<i64: 1, 1>}, {transform_indices = @transform_18, window_bounds = array<i64: 1, 1, 1>}]} {
    %c0 = arith.constant 0 : index
    %c0_0 = arith.constant 0 : index
    %c0_1 = arith.constant 0 : index
    %0 = vector.load %arg1[%c0, %c0_0, %c0_1] : memref<1x16x128xf32, #tpu.memory_space<vmem>>, vector<1x16x128xf32>
    %1 = vector.shape_cast %0 : vector<1x16x128xf32> to vector<16x128xf32>
    %c0_2 = arith.constant 0 : index
    %c0_3 = arith.constant 0 : index
    %2 = vector.load %arg2[%c0_2, %c0_3] : memref<128x64xf32, #tpu.memory_space<vmem>>, vector<128x64xf32>
    %cst = arith.constant dense<0.000000e+00> : vector<16x64xf32>
    %3 = tpu.matmul %1, %2, %cst {dimension_numbers = #tpu.dot_dimension_numbers<[1], [0], [0], [1], [0, 0, 1, 1], [], []>} : vector<16x128xf32>, vector<128x64xf32>, vector<16x64xf32> -> vector<16x64xf32>
    %c0_4 = arith.constant 0 : index
    %c0_5 = arith.constant 0 : index
    %4 = vector.load %arg3[%c0_4, %c0_5] : memref<1x64xf32, #tpu.memory_space<vmem>>, vector<1x64xf32>
    %5 = vector.broadcast %4 : vector<1x64xf32> to vector<16x64xf32>
    %6 = arith.addf %3, %5 : vector<16x64xf32>
    %c0_6 = arith.constant 0 : index
    %c0_7 = arith.constant 0 : index
    %c0_8 = arith.constant 0 : index
    %7 = vector.load %arg4[%c0_6, %c0_7, %c0_8] : memref<3x8x16xf32, #tpu.memory_space<vmem>>, vector<1x8x16xf32>
    %8 = vector.shape_cast %7 : vector<1x8x16xf32> to vector<8x16xf32>
    %cst_9 = arith.constant dense<0.000000e+00> : vector<8x64xf32>
    %9 = tpu.matmul %8, %6, %cst_9 {dimension_numbers = #tpu.dot_dimension_numbers<[1], [0], [0], [1], [0, 0, 1, 1], [], []>} : vector<8x16xf32>, vector<16x64xf32>, vector<8x64xf32> -> vector<8x64xf32>
    %c0_10 = arith.constant 0 : index
    %c0_11 = arith.constant 0 : index
    %c0_12 = arith.constant 0 : index
    %10 = vector.load %arg5[%c0_10, %c0_11, %c0_12] : memref<3x64x128xf32, #tpu.memory_space<vmem>>, vector<1x64x128xf32>
    %11 = vector.shape_cast %10 : vector<1x64x128xf32> to vector<64x128xf32>
    %cst_13 = arith.constant dense<0.000000e+00> : vector<8x128xf32>
    %12 = tpu.matmul %9, %11, %cst_13 {dimension_numbers = #tpu.dot_dimension_numbers<[1], [0], [0], [1], [0, 0, 1, 1], [], []>} : vector<8x64xf32>, vector<64x128xf32>, vector<8x128xf32> -> vector<8x128xf32>
    %c1 = arith.constant 1 : index
    %c0_14 = arith.constant 0 : index
    %c0_15 = arith.constant 0 : index
    %13 = vector.load %arg4[%c1, %c0_14, %c0_15] : memref<3x8x16xf32, #tpu.memory_space<vmem>>, vector<1x8x16xf32>
    %14 = vector.shape_cast %13 : vector<1x8x16xf32> to vector<8x16xf32>
    %cst_16 = arith.constant dense<0.000000e+00> : vector<8x64xf32>
    %15 = tpu.matmul %14, %6, %cst_16 {dimension_numbers = #tpu.dot_dimension_numbers<[1], [0], [0], [1], [0, 0, 1, 1], [], []>} : vector<8x16xf32>, vector<16x64xf32>, vector<8x64xf32> -> vector<8x64xf32>
    %c1_17 = arith.constant 1 : index
    %c0_18 = arith.constant 0 : index
    %c0_19 = arith.constant 0 : index
    %16 = vector.load %arg5[%c1_17, %c0_18, %c0_19] : memref<3x64x128xf32, #tpu.memory_space<vmem>>, vector<1x64x128xf32>
    %17 = vector.shape_cast %16 : vector<1x64x128xf32> to vector<64x128xf32>
    %cst_20 = arith.constant dense<0.000000e+00> : vector<8x128xf32>
    %18 = tpu.matmul %15, %17, %cst_20 {dimension_numbers = #tpu.dot_dimension_numbers<[1], [0], [0], [1], [0, 0, 1, 1], [], []>} : vector<8x64xf32>, vector<64x128xf32>, vector<8x128xf32> -> vector<8x128xf32>
    %19 = arith.addf %12, %18 : vector<8x128xf32>
    %c2 = arith.constant 2 : index
    %c0_21 = arith.constant 0 : index
    %c0_22 = arith.constant 0 : index
    %20 = vector.load %arg4[%c2, %c0_21, %c0_22] : memref<3x8x16xf32, #tpu.memory_space<vmem>>, vector<1x8x16xf32>
    %21 = vector.shape_cast %20 : vector<1x8x16xf32> to vector<8x16xf32>
    %cst_23 = arith.constant dense<0.000000e+00> : vector<8x64xf32>
    %22 = tpu.matmul %21, %6, %cst_23 {dimension_numbers = #tpu.dot_dimension_numbers<[1], [0], [0], [1], [0, 0, 1, 1], [], []>} : vector<8x16xf32>, vector<16x64xf32>, vector<8x64xf32> -> vector<8x64xf32>
    %c2_24 = arith.constant 2 : index
    %c0_25 = arith.constant 0 : index
    %c0_26 = arith.constant 0 : index
    %23 = vector.load %arg5[%c2_24, %c0_25, %c0_26] : memref<3x64x128xf32, #tpu.memory_space<vmem>>, vector<1x64x128xf32>
    %24 = vector.shape_cast %23 : vector<1x64x128xf32> to vector<64x128xf32>
    %cst_27 = arith.constant dense<0.000000e+00> : vector<8x128xf32>
    %25 = tpu.matmul %22, %24, %cst_27 {dimension_numbers = #tpu.dot_dimension_numbers<[1], [0], [0], [1], [0, 0, 1, 1], [], []>} : vector<8x64xf32>, vector<64x128xf32>, vector<8x128xf32> -> vector<8x128xf32>
    %26 = arith.addf %19, %25 : vector<8x128xf32>
    %c0_28 = arith.constant 0 : index
    %c0_29 = arith.constant 0 : index
    %27 = vector.load %arg6[%c0_28, %c0_29] : memref<1x128xf32, #tpu.memory_space<vmem>>, vector<1x128xf32>
    %28 = vector.broadcast %27 : vector<1x128xf32> to vector<8x128xf32>
    %29 = arith.addf %26, %28 : vector<8x128xf32>
    %cst_30 = arith.constant 0.000000e+00 : f32
    %30 = vector.broadcast %cst_30 : f32 to vector<8x128xf32>
    %31 = arith.cmpf oge, %29, %30 : vector<8x128xf32>
    %cst_31 = arith.constant 2.000000e-01 : f32
    %32 = vector.broadcast %cst_31 : f32 to vector<8x128xf32>
    %33 = arith.mulf %32, %29 : vector<8x128xf32>
    %34 = arith.select %31, %29, %33 : vector<8x128xi1>, vector<8x128xf32>
    %c0_32 = arith.constant 0 : index
    %c0_33 = arith.constant 0 : index
    %c0_34 = arith.constant 0 : index
    %35 = vector.load %arg7[%c0_32, %c0_33, %c0_34] : memref<3x4x8xf32, #tpu.memory_space<vmem>>, vector<1x4x8xf32>
    %36 = vector.shape_cast %35 : vector<1x4x8xf32> to vector<4x8xf32>
    %cst_35 = arith.constant dense<0.000000e+00> : vector<4x128xf32>
    %37 = tpu.matmul %36, %34, %cst_35 {dimension_numbers = #tpu.dot_dimension_numbers<[1], [0], [0], [1], [0, 0, 1, 1], [], []>} : vector<4x8xf32>, vector<8x128xf32>, vector<4x128xf32> -> vector<4x128xf32>
    %c0_36 = arith.constant 0 : index
    %c0_37 = arith.constant 0 : index
    %c0_38 = arith.constant 0 : index
    %38 = vector.load %arg8[%c0_36, %c0_37, %c0_38] : memref<3x128x128xf32, #tpu.memory_space<vmem>>, vector<1x128x128xf32>
    %39 = vector.shape_cast %38 : vector<1x128x128xf32> to vector<128x128xf32>
    %cst_39 = arith.constant dense<0.000000e+00> : vector<4x128xf32>
    %40 = tpu.matmul %37, %39, %cst_39 {dimension_numbers = #tpu.dot_dimension_numbers<[1], [0], [0], [1], [0, 0, 1, 1], [], []>} : vector<4x128xf32>, vector<128x128xf32>, vector<4x128xf32> -> vector<4x128xf32>
    %c1_40 = arith.constant 1 : index
    %c0_41 = arith.constant 0 : index
    %c0_42 = arith.constant 0 : index
    %41 = vector.load %arg7[%c1_40, %c0_41, %c0_42] : memref<3x4x8xf32, #tpu.memory_space<vmem>>, vector<1x4x8xf32>
    %42 = vector.shape_cast %41 : vector<1x4x8xf32> to vector<4x8xf32>
    %cst_43 = arith.constant dense<0.000000e+00> : vector<4x128xf32>
    %43 = tpu.matmul %42, %34, %cst_43 {dimension_numbers = #tpu.dot_dimension_numbers<[1], [0], [0], [1], [0, 0, 1, 1], [], []>} : vector<4x8xf32>, vector<8x128xf32>, vector<4x128xf32> -> vector<4x128xf32>
    %c1_44 = arith.constant 1 : index
    %c0_45 = arith.constant 0 : index
    %c0_46 = arith.constant 0 : index
    %44 = vector.load %arg8[%c1_44, %c0_45, %c0_46] : memref<3x128x128xf32, #tpu.memory_space<vmem>>, vector<1x128x128xf32>
    %45 = vector.shape_cast %44 : vector<1x128x128xf32> to vector<128x128xf32>
    %cst_47 = arith.constant dense<0.000000e+00> : vector<4x128xf32>
    %46 = tpu.matmul %43, %45, %cst_47 {dimension_numbers = #tpu.dot_dimension_numbers<[1], [0], [0], [1], [0, 0, 1, 1], [], []>} : vector<4x128xf32>, vector<128x128xf32>, vector<4x128xf32> -> vector<4x128xf32>
    %47 = arith.addf %40, %46 : vector<4x128xf32>
    %c2_48 = arith.constant 2 : index
    %c0_49 = arith.constant 0 : index
    %c0_50 = arith.constant 0 : index
    %48 = vector.load %arg7[%c2_48, %c0_49, %c0_50] : memref<3x4x8xf32, #tpu.memory_space<vmem>>, vector<1x4x8xf32>
    %49 = vector.shape_cast %48 : vector<1x4x8xf32> to vector<4x8xf32>
    %cst_51 = arith.constant dense<0.000000e+00> : vector<4x128xf32>
    %50 = tpu.matmul %49, %34, %cst_51 {dimension_numbers = #tpu.dot_dimension_numbers<[1], [0], [0], [1], [0, 0, 1, 1], [], []>} : vector<4x8xf32>, vector<8x128xf32>, vector<4x128xf32> -> vector<4x128xf32>
    %c2_52 = arith.constant 2 : index
    %c0_53 = arith.constant 0 : index
    %c0_54 = arith.constant 0 : index
    %51 = vector.load %arg8[%c2_52, %c0_53, %c0_54] : memref<3x128x128xf32, #tpu.memory_space<vmem>>, vector<1x128x128xf32>
    %52 = vector.shape_cast %51 : vector<1x128x128xf32> to vector<128x128xf32>
    %cst_55 = arith.constant dense<0.000000e+00> : vector<4x128xf32>
    %53 = tpu.matmul %50, %52, %cst_55 {dimension_numbers = #tpu.dot_dimension_numbers<[1], [0], [0], [1], [0, 0, 1, 1], [], []>} : vector<4x128xf32>, vector<128x128xf32>, vector<4x128xf32> -> vector<4x128xf32>
    %54 = arith.addf %47, %53 : vector<4x128xf32>
    %c0_56 = arith.constant 0 : index
    %c0_57 = arith.constant 0 : index
    %55 = vector.load %arg9[%c0_56, %c0_57] : memref<1x128xf32, #tpu.memory_space<vmem>>, vector<1x128xf32>
    %56 = vector.broadcast %55 : vector<1x128xf32> to vector<4x128xf32>
    %57 = arith.addf %54, %56 : vector<4x128xf32>
    %cst_58 = arith.constant 0.000000e+00 : f32
    %58 = vector.broadcast %cst_58 : f32 to vector<4x128xf32>
    %59 = arith.cmpf oge, %57, %58 : vector<4x128xf32>
    %cst_59 = arith.constant 2.000000e-01 : f32
    %60 = vector.broadcast %cst_59 : f32 to vector<4x128xf32>
    %61 = arith.mulf %60, %57 : vector<4x128xf32>
    %62 = arith.select %59, %57, %61 : vector<4x128xi1>, vector<4x128xf32>
    %c0_60 = arith.constant 0 : index
    %c0_61 = arith.constant 0 : index
    %63 = vector.load %arg10[%c0_60, %c0_61] : memref<1x128xf32, #tpu.memory_space<vmem>>, vector<1x128xf32>
    %64 = vector.broadcast %63 : vector<1x128xf32> to vector<4x128xf32>
    %65 = arith.mulf %62, %64 : vector<4x128xf32>
    %c0_62 = arith.constant 0 : index
    %c0_63 = arith.constant 0 : index
    %66 = vector.load %arg11[%c0_62, %c0_63] : memref<1x128xf32, #tpu.memory_space<vmem>>, vector<1x128xf32>
    %67 = vector.broadcast %66 : vector<1x128xf32> to vector<4x128xf32>
    %68 = arith.addf %65, %67 : vector<4x128xf32>
    %c0_64 = arith.constant 0 : index
    %c0_65 = arith.constant 0 : index
    %c0_66 = arith.constant 0 : index
    %69 = vector.load %arg12[%c0_64, %c0_65, %c0_66] : memref<3x2x4xf32, #tpu.memory_space<vmem>>, vector<1x2x4xf32>
    %70 = vector.shape_cast %69 : vector<1x2x4xf32> to vector<2x4xf32>
    %cst_67 = arith.constant dense<0.000000e+00> : vector<2x128xf32>
    %71 = tpu.matmul %70, %68, %cst_67 {dimension_numbers = #tpu.dot_dimension_numbers<[1], [0], [0], [1], [0, 0, 1, 1], [], []>} : vector<2x4xf32>, vector<4x128xf32>, vector<2x128xf32> -> vector<2x128xf32>
    %c0_68 = arith.constant 0 : index
    %c0_69 = arith.constant 0 : index
    %c0_70 = arith.constant 0 : index
    %72 = vector.load %arg13[%c0_68, %c0_69, %c0_70] : memref<3x128x128xf32, #tpu.memory_space<vmem>>, vector<1x128x128xf32>
    %73 = vector.shape_cast %72 : vector<1x128x128xf32> to vector<128x128xf32>
    %cst_71 = arith.constant dense<0.000000e+00> : vector<2x128xf32>
    %74 = tpu.matmul %71, %73, %cst_71 {dimension_numbers = #tpu.dot_dimension_numbers<[1], [0], [0], [1], [0, 0, 1, 1], [], []>} : vector<2x128xf32>, vector<128x128xf32>, vector<2x128xf32> -> vector<2x128xf32>
    %c1_72 = arith.constant 1 : index
    %c0_73 = arith.constant 0 : index
    %c0_74 = arith.constant 0 : index
    %75 = vector.load %arg12[%c1_72, %c0_73, %c0_74] : memref<3x2x4xf32, #tpu.memory_space<vmem>>, vector<1x2x4xf32>
    %76 = vector.shape_cast %75 : vector<1x2x4xf32> to vector<2x4xf32>
    %cst_75 = arith.constant dense<0.000000e+00> : vector<2x128xf32>
    %77 = tpu.matmul %76, %68, %cst_75 {dimension_numbers = #tpu.dot_dimension_numbers<[1], [0], [0], [1], [0, 0, 1, 1], [], []>} : vector<2x4xf32>, vector<4x128xf32>, vector<2x128xf32> -> vector<2x128xf32>
    %c1_76 = arith.constant 1 : index
    %c0_77 = arith.constant 0 : index
    %c0_78 = arith.constant 0 : index
    %78 = vector.load %arg13[%c1_76, %c0_77, %c0_78] : memref<3x128x128xf32, #tpu.memory_space<vmem>>, vector<1x128x128xf32>
    %79 = vector.shape_cast %78 : vector<1x128x128xf32> to vector<128x128xf32>
    %cst_79 = arith.constant dense<0.000000e+00> : vector<2x128xf32>
    %80 = tpu.matmul %77, %79, %cst_79 {dimension_numbers = #tpu.dot_dimension_numbers<[1], [0], [0], [1], [0, 0, 1, 1], [], []>} : vector<2x128xf32>, vector<128x128xf32>, vector<2x128xf32> -> vector<2x128xf32>
    %81 = arith.addf %74, %80 : vector<2x128xf32>
    %c2_80 = arith.constant 2 : index
    %c0_81 = arith.constant 0 : index
    %c0_82 = arith.constant 0 : index
    %82 = vector.load %arg12[%c2_80, %c0_81, %c0_82] : memref<3x2x4xf32, #tpu.memory_space<vmem>>, vector<1x2x4xf32>
    %83 = vector.shape_cast %82 : vector<1x2x4xf32> to vector<2x4xf32>
    %cst_83 = arith.constant dense<0.000000e+00> : vector<2x128xf32>
    %84 = tpu.matmul %83, %68, %cst_83 {dimension_numbers = #tpu.dot_dimension_numbers<[1], [0], [0], [1], [0, 0, 1, 1], [], []>} : vector<2x4xf32>, vector<4x128xf32>, vector<2x128xf32> -> vector<2x128xf32>
    %c2_84 = arith.constant 2 : index
    %c0_85 = arith.constant 0 : index
    %c0_86 = arith.constant 0 : index
    %85 = vector.load %arg13[%c2_84, %c0_85, %c0_86] : memref<3x128x128xf32, #tpu.memory_space<vmem>>, vector<1x128x128xf32>
    %86 = vector.shape_cast %85 : vector<1x128x128xf32> to vector<128x128xf32>
    %cst_87 = arith.constant dense<0.000000e+00> : vector<2x128xf32>
    %87 = tpu.matmul %84, %86, %cst_87 {dimension_numbers = #tpu.dot_dimension_numbers<[1], [0], [0], [1], [0, 0, 1, 1], [], []>} : vector<2x128xf32>, vector<128x128xf32>, vector<2x128xf32> -> vector<2x128xf32>
    %88 = arith.addf %81, %87 : vector<2x128xf32>
    %c0_88 = arith.constant 0 : index
    %c0_89 = arith.constant 0 : index
    %89 = vector.load %arg14[%c0_88, %c0_89] : memref<1x128xf32, #tpu.memory_space<vmem>>, vector<1x128xf32>
    %90 = vector.broadcast %89 : vector<1x128xf32> to vector<2x128xf32>
    %91 = arith.addf %88, %90 : vector<2x128xf32>
    %cst_90 = arith.constant 0.000000e+00 : f32
    %92 = vector.broadcast %cst_90 : f32 to vector<2x128xf32>
    %93 = arith.cmpf oge, %91, %92 : vector<2x128xf32>
    %cst_91 = arith.constant 2.000000e-01 : f32
    %94 = vector.broadcast %cst_91 : f32 to vector<2x128xf32>
    %95 = arith.mulf %94, %91 : vector<2x128xf32>
    %96 = arith.select %93, %91, %95 : vector<2x128xi1>, vector<2x128xf32>
    %c0_92 = arith.constant 0 : index
    %c0_93 = arith.constant 0 : index
    %97 = vector.load %arg15[%c0_92, %c0_93] : memref<1x128xf32, #tpu.memory_space<vmem>>, vector<1x128xf32>
    %98 = vector.broadcast %97 : vector<1x128xf32> to vector<2x128xf32>
    %99 = arith.mulf %96, %98 : vector<2x128xf32>
    %c0_94 = arith.constant 0 : index
    %c0_95 = arith.constant 0 : index
    %100 = vector.load %arg16[%c0_94, %c0_95] : memref<1x128xf32, #tpu.memory_space<vmem>>, vector<1x128xf32>
    %101 = vector.broadcast %100 : vector<1x128xf32> to vector<2x128xf32>
    %102 = arith.addf %99, %101 : vector<2x128xf32>
    %c0_96 = arith.constant 0 : index
    %c0_97 = arith.constant 0 : index
    %103 = vector.load %arg17[%c0_96, %c0_97] : memref<2x128xf32, #tpu.memory_space<vmem>>, vector<2x128xf32>
    %104 = arith.mulf %102, %103 : vector<2x128xf32>
    %cst_98 = arith.constant dense<0.000000e+00> : vector<2xf32>
    %105 = vector.multi_reduction <add>, %104, %cst_98 [1] : vector<2x128xf32> to vector<2xf32>
    %106 = vector.shape_cast %105 : vector<2xf32> to vector<2x1xf32>
    %cst_99 = arith.constant dense<0.000000e+00> : vector<1xf32>
    %107 = vector.multi_reduction <add>, %106, %cst_99 [0] : vector<2x1xf32> to vector<1xf32>
    %108 = vector.shape_cast %107 : vector<1xf32> to vector<1x1xf32>
    %c0_100 = arith.constant 0 : index
    %c0_101 = arith.constant 0 : index
    %109 = vector.load %arg18[%c0_100, %c0_101] : memref<1x1xf32, #tpu.memory_space<vmem>>, vector<1x1xf32>
    %110 = arith.addf %108, %109 : vector<1x1xf32>
    %c0_102 = arith.constant 0 : index
    %c0_103 = arith.constant 0 : index
    %c0_104 = arith.constant 0 : index
    %111 = vector.load %arg19[%c0_102, %c0_103, %c0_104] : memref<1x1x1xf32, #tpu.memory_space<vmem>>, vector<1x1x1xf32>
    %112 = vector.shape_cast %111 : vector<1x1x1xf32> to vector<1x1xf32>
    %113 = vector.shape_cast %110 : vector<1x1xf32> to vector<1x1x1xf32>
    tpu.vector_store %arg19[%c0_102, %c0_103, %c0_104], %113 {strides = array<i32>} : memref<1x1x1xf32, #tpu.memory_space<vmem>>, vector<1x1x1xf32>,
    return
  }
  func.func @transform_0(%arg0: i32) -> (i32, i32, i32) {
    %c0_i32 = arith.constant 0 : i32
    %c0_i32_0 = arith.constant 0 : i32
    %c0_i32_1 = arith.constant 0 : i32
    return %arg0, %c0_i32, %c0_i32_0 : i32, i32, i32
  }
  func.func @transform_1(%arg0: i32) -> (i32, i32) {
    %c0_i32 = arith.constant 0 : i32
    %c0_i32_0 = arith.constant 0 : i32
    %c0_i32_1 = arith.constant 0 : i32
    return %c0_i32, %c0_i32_0 : i32, i32
  }
  func.func @transform_2(%arg0: i32) -> (i32, i32) {
    %c0_i32 = arith.constant 0 : i32
    %c0_i32_0 = arith.constant 0 : i32
    %c0_i32_1 = arith.constant 0 : i32
    return %c0_i32, %c0_i32_0 : i32, i32
  }
  func.func @transform_3(%arg0: i32) -> (i32, i32, i32) {
    %c0_i32 = arith.constant 0 : i32
    %c0_i32_0 = arith.constant 0 : i32
    %c0_i32_1 = arith.constant 0 : i32
    %c0_i32_2 = arith.constant 0 : i32
    return %c0_i32, %c0_i32_0, %c0_i32_1 : i32, i32, i32
  }
  func.func @transform_4(%arg0: i32) -> (i32, i32, i32) {
    %c0_i32 = arith.constant 0 : i32
    %c0_i32_0 = arith.constant 0 : i32
    %c0_i32_1 = arith.constant 0 : i32
    %c0_i32_2 = arith.constant 0 : i32
    return %c0_i32, %c0_i32_0, %c0_i32_1 : i32, i32, i32
  }
  func.func @transform_5(%arg0: i32) -> (i32, i32) {
    %c0_i32 = arith.constant 0 : i32
    %c0_i32_0 = arith.constant 0 : i32
    %c0_i32_1 = arith.constant 0 : i32
    return %c0_i32, %c0_i32_0 : i32, i32
  }
  func.func @transform_6(%arg0: i32) -> (i32, i32, i32) {
    %c0_i32 = arith.constant 0 : i32
    %c0_i32_0 = arith.constant 0 : i32
    %c0_i32_1 = arith.constant 0 : i32
    %c0_i32_2 = arith.constant 0 : i32
    return %c0_i32, %c0_i32_0, %c0_i32_1 : i32, i32, i32
  }
  func.func @transform_7(%arg0: i32) -> (i32, i32, i32) {
    %c0_i32 = arith.constant 0 : i32
    %c0_i32_0 = arith.constant 0 : i32
    %c0_i32_1 = arith.constant 0 : i32
    %c0_i32_2 = arith.constant 0 : i32
    return %c0_i32, %c0_i32_0, %c0_i32_1 : i32, i32, i32
  }
  func.func @transform_8(%arg0: i32) -> (i32, i32) {
    %c0_i32 = arith.constant 0 : i32
    %c0_i32_0 = arith.constant 0 : i32
    %c0_i32_1 = arith.constant 0 : i32
    return %c0_i32, %c0_i32_0 : i32, i32
  }
  func.func @transform_9(%arg0: i32) -> (i32, i32) {
    %c0_i32 = arith.constant 0 : i32
    %c0_i32_0 = arith.constant 0 : i32
    %c0_i32_1 = arith.constant 0 : i32
    return %c0_i32, %c0_i32_0 : i32, i32
  }
  func.func @transform_10(%arg0: i32) -> (i32, i32) {
    %c0_i32 = arith.constant 0 : i32
    %c0_i32_0 = arith.constant 0 : i32
    %c0_i32_1 = arith.constant 0 : i32
    return %c0_i32, %c0_i32_0 : i32, i32
  }
  func.func @transform_11(%arg0: i32) -> (i32, i32, i32) {
    %c0_i32 = arith.constant 0 : i32
    %c0_i32_0 = arith.constant 0 : i32
    %c0_i32_1 = arith.constant 0 : i32
    %c0_i32_2 = arith.constant 0 : i32
    return %c0_i32, %c0_i32_0, %c0_i32_1 : i32, i32, i32
  }
  func.func @transform_12(%arg0: i32) -> (i32, i32, i32) {
    %c0_i32 = arith.constant 0 : i32
    %c0_i32_0 = arith.constant 0 : i32
    %c0_i32_1 = arith.constant 0 : i32
    %c0_i32_2 = arith.constant 0 : i32
    return %c0_i32, %c0_i32_0, %c0_i32_1 : i32, i32, i32
  }
  func.func @transform_13(%arg0: i32) -> (i32, i32) {
    %c0_i32 = arith.constant 0 : i32
    %c0_i32_0 = arith.constant 0 : i32
    %c0_i32_1 = arith.constant 0 : i32
    return %c0_i32, %c0_i32_0 : i32, i32
  }
  func.func @transform_14(%arg0: i32) -> (i32, i32) {
    %c0_i32 = arith.constant 0 : i32
    %c0_i32_0 = arith.constant 0 : i32
    %c0_i32_1 = arith.constant 0 : i32
    return %c0_i32, %c0_i32_0 : i32, i32
  }
  func.func @transform_15(%arg0: i32) -> (i32, i32) {
    %c0_i32 = arith.constant 0 : i32
    %c0_i32_0 = arith.constant 0 : i32
    %c0_i32_1 = arith.constant 0 : i32
    return %c0_i32, %c0_i32_0 : i32, i32
  }
  func.func @transform_16(%arg0: i32) -> (i32, i32) {
    %c0_i32 = arith.constant 0 : i32
    %c0_i32_0 = arith.constant 0 : i32
    %c0_i32_1 = arith.constant 0 : i32
    return %c0_i32, %c0_i32_0 : i32, i32
  }
  func.func @transform_17(%arg0: i32) -> (i32, i32) {
    %c0_i32 = arith.constant 0 : i32
    %c0_i32_0 = arith.constant 0 : i32
    %c0_i32_1 = arith.constant 0 : i32
    return %c0_i32, %c0_i32_0 : i32, i32
  }
  func.func @transform_18(%arg0: i32) -> (i32, i32, i32) {
    %c0_i32 = arith.constant 0 : i32
    %c0_i32_0 = arith.constant 0 : i32
    %c0_i32_1 = arith.constant 0 : i32
    return %arg0, %c0_i32, %c0_i32_0 : i32, i32, i32
  }
}

module attributes {stable_mosaic.version = 11 : i64} {
  func.func @_window_kernel(%arg0: i32, %arg1: memref<1x8x128xf32, #tpu.memory_space<vmem>>, %arg2: memref<128x64xf32, #tpu.memory_space<vmem>>, %arg3: memref<1x64xf32, #tpu.memory_space<vmem>>, %arg4: memref<3x4x8xf32, #tpu.memory_space<vmem>>, %arg5: memref<3x64x128xf32, #tpu.memory_space<vmem>>, %arg6: memref<1x128xf32, #tpu.memory_space<vmem>>, %arg7: memref<3x2x4xf32, #tpu.memory_space<vmem>>, %arg8: memref<3x128x128xf32, #tpu.memory_space<vmem>>, %arg9: memref<1x128xf32, #tpu.memory_space<vmem>>, %arg10: memref<1x128xf32, #tpu.memory_space<vmem>>, %arg11: memref<1x128xf32, #tpu.memory_space<vmem>>, %arg12: memref<3x1x2xf32, #tpu.memory_space<vmem>>, %arg13: memref<3x128x128xf32, #tpu.memory_space<vmem>>, %arg14: memref<1x128xf32, #tpu.memory_space<vmem>>, %arg15: memref<1x128xf32, #tpu.memory_space<vmem>>, %arg16: memref<1x128xf32, #tpu.memory_space<vmem>>, %arg17: memref<1x128xf32, #tpu.memory_space<vmem>>, %arg18: memref<1x1xf32, #tpu.memory_space<vmem>>, %arg19: memref<1x1x1xf32, #tpu.memory_space<vmem>>) attributes {dimension_semantics = [#tpu.dimension_semantics<parallel>], iteration_bounds = array<i64: 2>, scalar_prefetch = 0 : i64, scratch_operands = 0 : i64, tpu.core_type = #tpu.core_type<tc>, window_params = [{transform_indices = @transform_0, window_bounds = array<i64: 1, 8, 128>}, {pipeline_mode = #tpu.pipeline_mode<synchronous>, transform_indices = @transform_1, window_bounds = array<i64: 128, 64>}, {pipeline_mode = #tpu.pipeline_mode<synchronous>, transform_indices = @transform_2, window_bounds = array<i64: 1, 64>}, {pipeline_mode = #tpu.pipeline_mode<synchronous>, transform_indices = @transform_3, window_bounds = array<i64: 3, 4, 8>}, {pipeline_mode = #tpu.pipeline_mode<synchronous>, transform_indices = @transform_4, window_bounds = array<i64: 3, 64, 128>}, {pipeline_mode = #tpu.pipeline_mode<synchronous>, transform_indices = @transform_5, window_bounds = array<i64: 1, 128>}, {pipeline_mode = #tpu.pipeline_mode<synchronous>, transform_indices = @transform_6, window_bounds = array<i64: 3, 2, 4>}, {pipeline_mode = #tpu.pipeline_mode<synchronous>, transform_indices = @transform_7, window_bounds = array<i64: 3, 128, 128>}, {pipeline_mode = #tpu.pipeline_mode<synchronous>, transform_indices = @transform_8, window_bounds = array<i64: 1, 128>}, {pipeline_mode = #tpu.pipeline_mode<synchronous>, transform_indices = @transform_9, window_bounds = array<i64: 1, 128>}, {pipeline_mode = #tpu.pipeline_mode<synchronous>, transform_indices = @transform_10, window_bounds = array<i64: 1, 128>}, {pipeline_mode = #tpu.pipeline_mode<synchronous>, transform_indices = @transform_11, window_bounds = array<i64: 3, 1, 2>}, {pipeline_mode = #tpu.pipeline_mode<synchronous>, transform_indices = @transform_12, window_bounds = array<i64: 3, 128, 128>}, {pipeline_mode = #tpu.pipeline_mode<synchronous>, transform_indices = @transform_13, window_bounds = array<i64: 1, 128>}, {pipeline_mode = #tpu.pipeline_mode<synchronous>, transform_indices = @transform_14, window_bounds = array<i64: 1, 128>}, {pipeline_mode = #tpu.pipeline_mode<synchronous>, transform_indices = @transform_15, window_bounds = array<i64: 1, 128>}, {pipeline_mode = #tpu.pipeline_mode<synchronous>, transform_indices = @transform_16, window_bounds = array<i64: 1, 128>}, {pipeline_mode = #tpu.pipeline_mode<synchronous>, transform_indices = @transform_17, window_bounds = array<i64: 1, 1>}, {transform_indices = @transform_18, window_bounds = array<i64: 1, 1, 1>}]} {
    %c0 = arith.constant 0 : index
    %c0_0 = arith.constant 0 : index
    %c0_1 = arith.constant 0 : index
    %0 = vector.load %arg1[%c0, %c0_0, %c0_1] : memref<1x8x128xf32, #tpu.memory_space<vmem>>, vector<1x8x128xf32>
    %1 = vector.shape_cast %0 : vector<1x8x128xf32> to vector<8x128xf32>
    %c0_2 = arith.constant 0 : index
    %c0_3 = arith.constant 0 : index
    %2 = vector.load %arg2[%c0_2, %c0_3] : memref<128x64xf32, #tpu.memory_space<vmem>>, vector<128x64xf32>
    %cst = arith.constant dense<0.000000e+00> : vector<8x64xf32>
    %3 = tpu.matmul %1, %2, %cst {dimension_numbers = #tpu.dot_dimension_numbers<[1], [0], [0], [1], [0, 0, 1, 1], [], []>} : vector<8x128xf32>, vector<128x64xf32>, vector<8x64xf32> -> vector<8x64xf32>
    %c0_4 = arith.constant 0 : index
    %c0_5 = arith.constant 0 : index
    %4 = vector.load %arg3[%c0_4, %c0_5] : memref<1x64xf32, #tpu.memory_space<vmem>>, vector<1x64xf32>
    %5 = vector.broadcast %4 : vector<1x64xf32> to vector<8x64xf32>
    %6 = arith.addf %3, %5 : vector<8x64xf32>
    %c0_6 = arith.constant 0 : index
    %c0_7 = arith.constant 0 : index
    %c0_8 = arith.constant 0 : index
    %7 = vector.load %arg4[%c0_6, %c0_7, %c0_8] : memref<3x4x8xf32, #tpu.memory_space<vmem>>, vector<1x4x8xf32>
    %8 = vector.shape_cast %7 : vector<1x4x8xf32> to vector<4x8xf32>
    %cst_9 = arith.constant dense<0.000000e+00> : vector<4x64xf32>
    %9 = tpu.matmul %8, %6, %cst_9 {dimension_numbers = #tpu.dot_dimension_numbers<[1], [0], [0], [1], [0, 0, 1, 1], [], []>} : vector<4x8xf32>, vector<8x64xf32>, vector<4x64xf32> -> vector<4x64xf32>
    %c0_10 = arith.constant 0 : index
    %c0_11 = arith.constant 0 : index
    %c0_12 = arith.constant 0 : index
    %10 = vector.load %arg5[%c0_10, %c0_11, %c0_12] : memref<3x64x128xf32, #tpu.memory_space<vmem>>, vector<1x64x128xf32>
    %11 = vector.shape_cast %10 : vector<1x64x128xf32> to vector<64x128xf32>
    %cst_13 = arith.constant dense<0.000000e+00> : vector<4x128xf32>
    %12 = tpu.matmul %9, %11, %cst_13 {dimension_numbers = #tpu.dot_dimension_numbers<[1], [0], [0], [1], [0, 0, 1, 1], [], []>} : vector<4x64xf32>, vector<64x128xf32>, vector<4x128xf32> -> vector<4x128xf32>
    %c1 = arith.constant 1 : index
    %c0_14 = arith.constant 0 : index
    %c0_15 = arith.constant 0 : index
    %13 = vector.load %arg4[%c1, %c0_14, %c0_15] : memref<3x4x8xf32, #tpu.memory_space<vmem>>, vector<1x4x8xf32>
    %14 = vector.shape_cast %13 : vector<1x4x8xf32> to vector<4x8xf32>
    %cst_16 = arith.constant dense<0.000000e+00> : vector<4x64xf32>
    %15 = tpu.matmul %14, %6, %cst_16 {dimension_numbers = #tpu.dot_dimension_numbers<[1], [0], [0], [1], [0, 0, 1, 1], [], []>} : vector<4x8xf32>, vector<8x64xf32>, vector<4x64xf32> -> vector<4x64xf32>
    %c1_17 = arith.constant 1 : index
    %c0_18 = arith.constant 0 : index
    %c0_19 = arith.constant 0 : index
    %16 = vector.load %arg5[%c1_17, %c0_18, %c0_19] : memref<3x64x128xf32, #tpu.memory_space<vmem>>, vector<1x64x128xf32>
    %17 = vector.shape_cast %16 : vector<1x64x128xf32> to vector<64x128xf32>
    %cst_20 = arith.constant dense<0.000000e+00> : vector<4x128xf32>
    %18 = tpu.matmul %15, %17, %cst_20 {dimension_numbers = #tpu.dot_dimension_numbers<[1], [0], [0], [1], [0, 0, 1, 1], [], []>} : vector<4x64xf32>, vector<64x128xf32>, vector<4x128xf32> -> vector<4x128xf32>
    %19 = arith.addf %12, %18 : vector<4x128xf32>
    %c2 = arith.constant 2 : index
    %c0_21 = arith.constant 0 : index
    %c0_22 = arith.constant 0 : index
    %20 = vector.load %arg4[%c2, %c0_21, %c0_22] : memref<3x4x8xf32, #tpu.memory_space<vmem>>, vector<1x4x8xf32>
    %21 = vector.shape_cast %20 : vector<1x4x8xf32> to vector<4x8xf32>
    %cst_23 = arith.constant dense<0.000000e+00> : vector<4x64xf32>
    %22 = tpu.matmul %21, %6, %cst_23 {dimension_numbers = #tpu.dot_dimension_numbers<[1], [0], [0], [1], [0, 0, 1, 1], [], []>} : vector<4x8xf32>, vector<8x64xf32>, vector<4x64xf32> -> vector<4x64xf32>
    %c2_24 = arith.constant 2 : index
    %c0_25 = arith.constant 0 : index
    %c0_26 = arith.constant 0 : index
    %23 = vector.load %arg5[%c2_24, %c0_25, %c0_26] : memref<3x64x128xf32, #tpu.memory_space<vmem>>, vector<1x64x128xf32>
    %24 = vector.shape_cast %23 : vector<1x64x128xf32> to vector<64x128xf32>
    %cst_27 = arith.constant dense<0.000000e+00> : vector<4x128xf32>
    %25 = tpu.matmul %22, %24, %cst_27 {dimension_numbers = #tpu.dot_dimension_numbers<[1], [0], [0], [1], [0, 0, 1, 1], [], []>} : vector<4x64xf32>, vector<64x128xf32>, vector<4x128xf32> -> vector<4x128xf32>
    %26 = arith.addf %19, %25 : vector<4x128xf32>
    %c0_28 = arith.constant 0 : index
    %c0_29 = arith.constant 0 : index
    %27 = vector.load %arg6[%c0_28, %c0_29] : memref<1x128xf32, #tpu.memory_space<vmem>>, vector<1x128xf32>
    %28 = vector.broadcast %27 : vector<1x128xf32> to vector<4x128xf32>
    %29 = arith.addf %26, %28 : vector<4x128xf32>
    %cst_30 = arith.constant 0.000000e+00 : f32
    %30 = vector.broadcast %cst_30 : f32 to vector<4x128xf32>
    %31 = arith.cmpf oge, %29, %30 : vector<4x128xf32>
    %cst_31 = arith.constant 2.000000e-01 : f32
    %32 = vector.broadcast %cst_31 : f32 to vector<4x128xf32>
    %33 = arith.mulf %32, %29 : vector<4x128xf32>
    %34 = arith.select %31, %29, %33 : vector<4x128xi1>, vector<4x128xf32>
    %c0_32 = arith.constant 0 : index
    %c0_33 = arith.constant 0 : index
    %c0_34 = arith.constant 0 : index
    %35 = vector.load %arg7[%c0_32, %c0_33, %c0_34] : memref<3x2x4xf32, #tpu.memory_space<vmem>>, vector<1x2x4xf32>
    %36 = vector.shape_cast %35 : vector<1x2x4xf32> to vector<2x4xf32>
    %cst_35 = arith.constant dense<0.000000e+00> : vector<2x128xf32>
    %37 = tpu.matmul %36, %34, %cst_35 {dimension_numbers = #tpu.dot_dimension_numbers<[1], [0], [0], [1], [0, 0, 1, 1], [], []>} : vector<2x4xf32>, vector<4x128xf32>, vector<2x128xf32> -> vector<2x128xf32>
    %c0_36 = arith.constant 0 : index
    %c0_37 = arith.constant 0 : index
    %c0_38 = arith.constant 0 : index
    %38 = vector.load %arg8[%c0_36, %c0_37, %c0_38] : memref<3x128x128xf32, #tpu.memory_space<vmem>>, vector<1x128x128xf32>
    %39 = vector.shape_cast %38 : vector<1x128x128xf32> to vector<128x128xf32>
    %cst_39 = arith.constant dense<0.000000e+00> : vector<2x128xf32>
    %40 = tpu.matmul %37, %39, %cst_39 {dimension_numbers = #tpu.dot_dimension_numbers<[1], [0], [0], [1], [0, 0, 1, 1], [], []>} : vector<2x128xf32>, vector<128x128xf32>, vector<2x128xf32> -> vector<2x128xf32>
    %c1_40 = arith.constant 1 : index
    %c0_41 = arith.constant 0 : index
    %c0_42 = arith.constant 0 : index
    %41 = vector.load %arg7[%c1_40, %c0_41, %c0_42] : memref<3x2x4xf32, #tpu.memory_space<vmem>>, vector<1x2x4xf32>
    %42 = vector.shape_cast %41 : vector<1x2x4xf32> to vector<2x4xf32>
    %cst_43 = arith.constant dense<0.000000e+00> : vector<2x128xf32>
    %43 = tpu.matmul %42, %34, %cst_43 {dimension_numbers = #tpu.dot_dimension_numbers<[1], [0], [0], [1], [0, 0, 1, 1], [], []>} : vector<2x4xf32>, vector<4x128xf32>, vector<2x128xf32> -> vector<2x128xf32>
    %c1_44 = arith.constant 1 : index
    %c0_45 = arith.constant 0 : index
    %c0_46 = arith.constant 0 : index
    %44 = vector.load %arg8[%c1_44, %c0_45, %c0_46] : memref<3x128x128xf32, #tpu.memory_space<vmem>>, vector<1x128x128xf32>
    %45 = vector.shape_cast %44 : vector<1x128x128xf32> to vector<128x128xf32>
    %cst_47 = arith.constant dense<0.000000e+00> : vector<2x128xf32>
    %46 = tpu.matmul %43, %45, %cst_47 {dimension_numbers = #tpu.dot_dimension_numbers<[1], [0], [0], [1], [0, 0, 1, 1], [], []>} : vector<2x128xf32>, vector<128x128xf32>, vector<2x128xf32> -> vector<2x128xf32>
    %47 = arith.addf %40, %46 : vector<2x128xf32>
    %c2_48 = arith.constant 2 : index
    %c0_49 = arith.constant 0 : index
    %c0_50 = arith.constant 0 : index
    %48 = vector.load %arg7[%c2_48, %c0_49, %c0_50] : memref<3x2x4xf32, #tpu.memory_space<vmem>>, vector<1x2x4xf32>
    %49 = vector.shape_cast %48 : vector<1x2x4xf32> to vector<2x4xf32>
    %cst_51 = arith.constant dense<0.000000e+00> : vector<2x128xf32>
    %50 = tpu.matmul %49, %34, %cst_51 {dimension_numbers = #tpu.dot_dimension_numbers<[1], [0], [0], [1], [0, 0, 1, 1], [], []>} : vector<2x4xf32>, vector<4x128xf32>, vector<2x128xf32> -> vector<2x128xf32>
    %c2_52 = arith.constant 2 : index
    %c0_53 = arith.constant 0 : index
    %c0_54 = arith.constant 0 : index
    %51 = vector.load %arg8[%c2_52, %c0_53, %c0_54] : memref<3x128x128xf32, #tpu.memory_space<vmem>>, vector<1x128x128xf32>
    %52 = vector.shape_cast %51 : vector<1x128x128xf32> to vector<128x128xf32>
    %cst_55 = arith.constant dense<0.000000e+00> : vector<2x128xf32>
    %53 = tpu.matmul %50, %52, %cst_55 {dimension_numbers = #tpu.dot_dimension_numbers<[1], [0], [0], [1], [0, 0, 1, 1], [], []>} : vector<2x128xf32>, vector<128x128xf32>, vector<2x128xf32> -> vector<2x128xf32>
    %54 = arith.addf %47, %53 : vector<2x128xf32>
    %c0_56 = arith.constant 0 : index
    %c0_57 = arith.constant 0 : index
    %55 = vector.load %arg9[%c0_56, %c0_57] : memref<1x128xf32, #tpu.memory_space<vmem>>, vector<1x128xf32>
    %56 = vector.broadcast %55 : vector<1x128xf32> to vector<2x128xf32>
    %57 = arith.addf %54, %56 : vector<2x128xf32>
    %cst_58 = arith.constant 0.000000e+00 : f32
    %58 = vector.broadcast %cst_58 : f32 to vector<2x128xf32>
    %59 = arith.cmpf oge, %57, %58 : vector<2x128xf32>
    %cst_59 = arith.constant 2.000000e-01 : f32
    %60 = vector.broadcast %cst_59 : f32 to vector<2x128xf32>
    %61 = arith.mulf %60, %57 : vector<2x128xf32>
    %62 = arith.select %59, %57, %61 : vector<2x128xi1>, vector<2x128xf32>
    %c0_60 = arith.constant 0 : index
    %c0_61 = arith.constant 0 : index
    %63 = vector.load %arg10[%c0_60, %c0_61] : memref<1x128xf32, #tpu.memory_space<vmem>>, vector<1x128xf32>
    %64 = vector.broadcast %63 : vector<1x128xf32> to vector<2x128xf32>
    %65 = arith.mulf %62, %64 : vector<2x128xf32>
    %c0_62 = arith.constant 0 : index
    %c0_63 = arith.constant 0 : index
    %66 = vector.load %arg11[%c0_62, %c0_63] : memref<1x128xf32, #tpu.memory_space<vmem>>, vector<1x128xf32>
    %67 = vector.broadcast %66 : vector<1x128xf32> to vector<2x128xf32>
    %68 = arith.addf %65, %67 : vector<2x128xf32>
    %c0_64 = arith.constant 0 : index
    %c0_65 = arith.constant 0 : index
    %c0_66 = arith.constant 0 : index
    %69 = vector.load %arg12[%c0_64, %c0_65, %c0_66] : memref<3x1x2xf32, #tpu.memory_space<vmem>>, vector<1x1x2xf32>
    %70 = vector.shape_cast %69 : vector<1x1x2xf32> to vector<1x2xf32>
    %cst_67 = arith.constant dense<0.000000e+00> : vector<1x128xf32>
    %71 = tpu.matmul %70, %68, %cst_67 {dimension_numbers = #tpu.dot_dimension_numbers<[1], [0], [0], [1], [0, 0, 1, 1], [], []>} : vector<1x2xf32>, vector<2x128xf32>, vector<1x128xf32> -> vector<1x128xf32>
    %c0_68 = arith.constant 0 : index
    %c0_69 = arith.constant 0 : index
    %c0_70 = arith.constant 0 : index
    %72 = vector.load %arg13[%c0_68, %c0_69, %c0_70] : memref<3x128x128xf32, #tpu.memory_space<vmem>>, vector<1x128x128xf32>
    %73 = vector.shape_cast %72 : vector<1x128x128xf32> to vector<128x128xf32>
    %cst_71 = arith.constant dense<0.000000e+00> : vector<1x128xf32>
    %74 = tpu.matmul %71, %73, %cst_71 {dimension_numbers = #tpu.dot_dimension_numbers<[1], [0], [0], [1], [0, 0, 1, 1], [], []>} : vector<1x128xf32>, vector<128x128xf32>, vector<1x128xf32> -> vector<1x128xf32>
    %c1_72 = arith.constant 1 : index
    %c0_73 = arith.constant 0 : index
    %c0_74 = arith.constant 0 : index
    %75 = vector.load %arg12[%c1_72, %c0_73, %c0_74] : memref<3x1x2xf32, #tpu.memory_space<vmem>>, vector<1x1x2xf32>
    %76 = vector.shape_cast %75 : vector<1x1x2xf32> to vector<1x2xf32>
    %cst_75 = arith.constant dense<0.000000e+00> : vector<1x128xf32>
    %77 = tpu.matmul %76, %68, %cst_75 {dimension_numbers = #tpu.dot_dimension_numbers<[1], [0], [0], [1], [0, 0, 1, 1], [], []>} : vector<1x2xf32>, vector<2x128xf32>, vector<1x128xf32> -> vector<1x128xf32>
    %c1_76 = arith.constant 1 : index
    %c0_77 = arith.constant 0 : index
    %c0_78 = arith.constant 0 : index
    %78 = vector.load %arg13[%c1_76, %c0_77, %c0_78] : memref<3x128x128xf32, #tpu.memory_space<vmem>>, vector<1x128x128xf32>
    %79 = vector.shape_cast %78 : vector<1x128x128xf32> to vector<128x128xf32>
    %cst_79 = arith.constant dense<0.000000e+00> : vector<1x128xf32>
    %80 = tpu.matmul %77, %79, %cst_79 {dimension_numbers = #tpu.dot_dimension_numbers<[1], [0], [0], [1], [0, 0, 1, 1], [], []>} : vector<1x128xf32>, vector<128x128xf32>, vector<1x128xf32> -> vector<1x128xf32>
    %81 = arith.addf %74, %80 : vector<1x128xf32>
    %c2_80 = arith.constant 2 : index
    %c0_81 = arith.constant 0 : index
    %c0_82 = arith.constant 0 : index
    %82 = vector.load %arg12[%c2_80, %c0_81, %c0_82] : memref<3x1x2xf32, #tpu.memory_space<vmem>>, vector<1x1x2xf32>
    %83 = vector.shape_cast %82 : vector<1x1x2xf32> to vector<1x2xf32>
    %cst_83 = arith.constant dense<0.000000e+00> : vector<1x128xf32>
    %84 = tpu.matmul %83, %68, %cst_83 {dimension_numbers = #tpu.dot_dimension_numbers<[1], [0], [0], [1], [0, 0, 1, 1], [], []>} : vector<1x2xf32>, vector<2x128xf32>, vector<1x128xf32> -> vector<1x128xf32>
    %c2_84 = arith.constant 2 : index
    %c0_85 = arith.constant 0 : index
    %c0_86 = arith.constant 0 : index
    %85 = vector.load %arg13[%c2_84, %c0_85, %c0_86] : memref<3x128x128xf32, #tpu.memory_space<vmem>>, vector<1x128x128xf32>
    %86 = vector.shape_cast %85 : vector<1x128x128xf32> to vector<128x128xf32>
    %cst_87 = arith.constant dense<0.000000e+00> : vector<1x128xf32>
    %87 = tpu.matmul %84, %86, %cst_87 {dimension_numbers = #tpu.dot_dimension_numbers<[1], [0], [0], [1], [0, 0, 1, 1], [], []>} : vector<1x128xf32>, vector<128x128xf32>, vector<1x128xf32> -> vector<1x128xf32>
    %88 = arith.addf %81, %87 : vector<1x128xf32>
    %c0_88 = arith.constant 0 : index
    %c0_89 = arith.constant 0 : index
    %89 = vector.load %arg14[%c0_88, %c0_89] : memref<1x128xf32, #tpu.memory_space<vmem>>, vector<1x128xf32>
    %90 = arith.addf %88, %89 : vector<1x128xf32>
    %cst_90 = arith.constant 0.000000e+00 : f32
    %91 = vector.broadcast %cst_90 : f32 to vector<1x128xf32>
    %92 = arith.cmpf oge, %90, %91 : vector<1x128xf32>
    %cst_91 = arith.constant 2.000000e-01 : f32
    %93 = vector.broadcast %cst_91 : f32 to vector<1x128xf32>
    %94 = arith.mulf %93, %90 : vector<1x128xf32>
    %95 = arith.select %92, %90, %94 : vector<1x128xi1>, vector<1x128xf32>
    %c0_92 = arith.constant 0 : index
    %c0_93 = arith.constant 0 : index
    %96 = vector.load %arg15[%c0_92, %c0_93] : memref<1x128xf32, #tpu.memory_space<vmem>>, vector<1x128xf32>
    %97 = arith.mulf %95, %96 : vector<1x128xf32>
    %c0_94 = arith.constant 0 : index
    %c0_95 = arith.constant 0 : index
    %98 = vector.load %arg16[%c0_94, %c0_95] : memref<1x128xf32, #tpu.memory_space<vmem>>, vector<1x128xf32>
    %99 = arith.addf %97, %98 : vector<1x128xf32>
    %c0_96 = arith.constant 0 : index
    %c0_97 = arith.constant 0 : index
    %100 = vector.load %arg17[%c0_96, %c0_97] : memref<1x128xf32, #tpu.memory_space<vmem>>, vector<1x128xf32>
    %101 = arith.mulf %99, %100 : vector<1x128xf32>
    %cst_98 = arith.constant dense<0.000000e+00> : vector<1xf32>
    %102 = vector.multi_reduction <add>, %101, %cst_98 [1] : vector<1x128xf32> to vector<1xf32>
    %103 = vector.shape_cast %102 : vector<1xf32> to vector<1x1xf32>
    %cst_99 = arith.constant dense<0.000000e+00> : vector<1xf32>
    %104 = vector.multi_reduction <add>, %103, %cst_99 [0] : vector<1x1xf32> to vector<1xf32>
    %105 = vector.shape_cast %104 : vector<1xf32> to vector<1x1xf32>
    %c0_100 = arith.constant 0 : index
    %c0_101 = arith.constant 0 : index
    %106 = vector.load %arg18[%c0_100, %c0_101] : memref<1x1xf32, #tpu.memory_space<vmem>>, vector<1x1xf32>
    %107 = arith.addf %105, %106 : vector<1x1xf32>
    %c0_102 = arith.constant 0 : index
    %c0_103 = arith.constant 0 : index
    %c0_104 = arith.constant 0 : index
    %108 = vector.load %arg19[%c0_102, %c0_103, %c0_104] : memref<1x1x1xf32, #tpu.memory_space<vmem>>, vector<1x1x1xf32>
    %109 = vector.shape_cast %108 : vector<1x1x1xf32> to vector<1x1xf32>
    %110 = vector.shape_cast %107 : vector<1x1xf32> to vector<1x1x1xf32>
    tpu.vector_store %arg19[%c0_102, %c0_103, %c0_104], %110 {strides = array<i32>} : memref<1x1x1xf32, #tpu.memory_space<vmem>>, vector<1x1x1xf32>,
    return
  }
  func.func @transform_0(%arg0: i32) -> (i32, i32, i32) {
    %c0_i32 = arith.constant 0 : i32
    %c0_i32_0 = arith.constant 0 : i32
    %c0_i32_1 = arith.constant 0 : i32
    return %arg0, %c0_i32, %c0_i32_0 : i32, i32, i32
  }
  func.func @transform_1(%arg0: i32) -> (i32, i32) {
    %c0_i32 = arith.constant 0 : i32
    %c0_i32_0 = arith.constant 0 : i32
    %c0_i32_1 = arith.constant 0 : i32
    return %c0_i32, %c0_i32_0 : i32, i32
  }
  func.func @transform_2(%arg0: i32) -> (i32, i32) {
    %c0_i32 = arith.constant 0 : i32
    %c0_i32_0 = arith.constant 0 : i32
    %c0_i32_1 = arith.constant 0 : i32
    return %c0_i32, %c0_i32_0 : i32, i32
  }
  func.func @transform_3(%arg0: i32) -> (i32, i32, i32) {
    %c0_i32 = arith.constant 0 : i32
    %c0_i32_0 = arith.constant 0 : i32
    %c0_i32_1 = arith.constant 0 : i32
    %c0_i32_2 = arith.constant 0 : i32
    return %c0_i32, %c0_i32_0, %c0_i32_1 : i32, i32, i32
  }
  func.func @transform_4(%arg0: i32) -> (i32, i32, i32) {
    %c0_i32 = arith.constant 0 : i32
    %c0_i32_0 = arith.constant 0 : i32
    %c0_i32_1 = arith.constant 0 : i32
    %c0_i32_2 = arith.constant 0 : i32
    return %c0_i32, %c0_i32_0, %c0_i32_1 : i32, i32, i32
  }
  func.func @transform_5(%arg0: i32) -> (i32, i32) {
    %c0_i32 = arith.constant 0 : i32
    %c0_i32_0 = arith.constant 0 : i32
    %c0_i32_1 = arith.constant 0 : i32
    return %c0_i32, %c0_i32_0 : i32, i32
  }
  func.func @transform_6(%arg0: i32) -> (i32, i32, i32) {
    %c0_i32 = arith.constant 0 : i32
    %c0_i32_0 = arith.constant 0 : i32
    %c0_i32_1 = arith.constant 0 : i32
    %c0_i32_2 = arith.constant 0 : i32
    return %c0_i32, %c0_i32_0, %c0_i32_1 : i32, i32, i32
  }
  func.func @transform_7(%arg0: i32) -> (i32, i32, i32) {
    %c0_i32 = arith.constant 0 : i32
    %c0_i32_0 = arith.constant 0 : i32
    %c0_i32_1 = arith.constant 0 : i32
    %c0_i32_2 = arith.constant 0 : i32
    return %c0_i32, %c0_i32_0, %c0_i32_1 : i32, i32, i32
  }
  func.func @transform_8(%arg0: i32) -> (i32, i32) {
    %c0_i32 = arith.constant 0 : i32
    %c0_i32_0 = arith.constant 0 : i32
    %c0_i32_1 = arith.constant 0 : i32
    return %c0_i32, %c0_i32_0 : i32, i32
  }
  func.func @transform_9(%arg0: i32) -> (i32, i32) {
    %c0_i32 = arith.constant 0 : i32
    %c0_i32_0 = arith.constant 0 : i32
    %c0_i32_1 = arith.constant 0 : i32
    return %c0_i32, %c0_i32_0 : i32, i32
  }
  func.func @transform_10(%arg0: i32) -> (i32, i32) {
    %c0_i32 = arith.constant 0 : i32
    %c0_i32_0 = arith.constant 0 : i32
    %c0_i32_1 = arith.constant 0 : i32
    return %c0_i32, %c0_i32_0 : i32, i32
  }
  func.func @transform_11(%arg0: i32) -> (i32, i32, i32) {
    %c0_i32 = arith.constant 0 : i32
    %c0_i32_0 = arith.constant 0 : i32
    %c0_i32_1 = arith.constant 0 : i32
    %c0_i32_2 = arith.constant 0 : i32
    return %c0_i32, %c0_i32_0, %c0_i32_1 : i32, i32, i32
  }
  func.func @transform_12(%arg0: i32) -> (i32, i32, i32) {
    %c0_i32 = arith.constant 0 : i32
    %c0_i32_0 = arith.constant 0 : i32
    %c0_i32_1 = arith.constant 0 : i32
    %c0_i32_2 = arith.constant 0 : i32
    return %c0_i32, %c0_i32_0, %c0_i32_1 : i32, i32, i32
  }
  func.func @transform_13(%arg0: i32) -> (i32, i32) {
    %c0_i32 = arith.constant 0 : i32
    %c0_i32_0 = arith.constant 0 : i32
    %c0_i32_1 = arith.constant 0 : i32
    return %c0_i32, %c0_i32_0 : i32, i32
  }
  func.func @transform_14(%arg0: i32) -> (i32, i32) {
    %c0_i32 = arith.constant 0 : i32
    %c0_i32_0 = arith.constant 0 : i32
    %c0_i32_1 = arith.constant 0 : i32
    return %c0_i32, %c0_i32_0 : i32, i32
  }
  func.func @transform_15(%arg0: i32) -> (i32, i32) {
    %c0_i32 = arith.constant 0 : i32
    %c0_i32_0 = arith.constant 0 : i32
    %c0_i32_1 = arith.constant 0 : i32
    return %c0_i32, %c0_i32_0 : i32, i32
  }
  func.func @transform_16(%arg0: i32) -> (i32, i32) {
    %c0_i32 = arith.constant 0 : i32
    %c0_i32_0 = arith.constant 0 : i32
    %c0_i32_1 = arith.constant 0 : i32
    return %c0_i32, %c0_i32_0 : i32, i32
  }
  func.func @transform_17(%arg0: i32) -> (i32, i32) {
    %c0_i32 = arith.constant 0 : i32
    %c0_i32_0 = arith.constant 0 : i32
    %c0_i32_1 = arith.constant 0 : i32
    return %c0_i32, %c0_i32_0 : i32, i32
  }
  func.func @transform_18(%arg0: i32) -> (i32, i32, i32) {
    %c0_i32 = arith.constant 0 : i32
    %c0_i32_0 = arith.constant 0 : i32
    %c0_i32_1 = arith.constant 0 : i32
    return %arg0, %c0_i32, %c0_i32_0 : i32, i32, i32
  }
}

module attributes {stable_mosaic.version = 11 : i64} {
  func.func @_window_kernel(%arg0: i32, %arg1: memref<1x32x128xf32, #tpu.memory_space<vmem>>, %arg2: memref<128x64xf32, #tpu.memory_space<vmem>>, %arg3: memref<1x64xf32, #tpu.memory_space<vmem>>, %arg4: memref<3x16x32xf32, #tpu.memory_space<vmem>>, %arg5: memref<3x64x128xf32, #tpu.memory_space<vmem>>, %arg6: memref<1x128xf32, #tpu.memory_space<vmem>>, %arg7: memref<3x8x16xf32, #tpu.memory_space<vmem>>, %arg8: memref<3x128x128xf32, #tpu.memory_space<vmem>>, %arg9: memref<1x128xf32, #tpu.memory_space<vmem>>, %arg10: memref<1x128xf32, #tpu.memory_space<vmem>>, %arg11: memref<1x128xf32, #tpu.memory_space<vmem>>, %arg12: memref<3x4x8xf32, #tpu.memory_space<vmem>>, %arg13: memref<3x128x128xf32, #tpu.memory_space<vmem>>, %arg14: memref<1x128xf32, #tpu.memory_space<vmem>>, %arg15: memref<1x128xf32, #tpu.memory_space<vmem>>, %arg16: memref<1x128xf32, #tpu.memory_space<vmem>>, %arg17: memref<4x128xf32, #tpu.memory_space<vmem>>, %arg18: memref<1x1xf32, #tpu.memory_space<vmem>>, %arg19: memref<1x1x1xf32, #tpu.memory_space<vmem>>) attributes {dimension_semantics = [#tpu.dimension_semantics<parallel>], iteration_bounds = array<i64: 2>, scalar_prefetch = 0 : i64, scratch_operands = 0 : i64, tpu.core_type = #tpu.core_type<tc>, window_params = [{transform_indices = @transform_0, window_bounds = array<i64: 1, 32, 128>}, {pipeline_mode = #tpu.pipeline_mode<synchronous>, transform_indices = @transform_1, window_bounds = array<i64: 128, 64>}, {pipeline_mode = #tpu.pipeline_mode<synchronous>, transform_indices = @transform_2, window_bounds = array<i64: 1, 64>}, {pipeline_mode = #tpu.pipeline_mode<synchronous>, transform_indices = @transform_3, window_bounds = array<i64: 3, 16, 32>}, {pipeline_mode = #tpu.pipeline_mode<synchronous>, transform_indices = @transform_4, window_bounds = array<i64: 3, 64, 128>}, {pipeline_mode = #tpu.pipeline_mode<synchronous>, transform_indices = @transform_5, window_bounds = array<i64: 1, 128>}, {pipeline_mode = #tpu.pipeline_mode<synchronous>, transform_indices = @transform_6, window_bounds = array<i64: 3, 8, 16>}, {pipeline_mode = #tpu.pipeline_mode<synchronous>, transform_indices = @transform_7, window_bounds = array<i64: 3, 128, 128>}, {pipeline_mode = #tpu.pipeline_mode<synchronous>, transform_indices = @transform_8, window_bounds = array<i64: 1, 128>}, {pipeline_mode = #tpu.pipeline_mode<synchronous>, transform_indices = @transform_9, window_bounds = array<i64: 1, 128>}, {pipeline_mode = #tpu.pipeline_mode<synchronous>, transform_indices = @transform_10, window_bounds = array<i64: 1, 128>}, {pipeline_mode = #tpu.pipeline_mode<synchronous>, transform_indices = @transform_11, window_bounds = array<i64: 3, 4, 8>}, {pipeline_mode = #tpu.pipeline_mode<synchronous>, transform_indices = @transform_12, window_bounds = array<i64: 3, 128, 128>}, {pipeline_mode = #tpu.pipeline_mode<synchronous>, transform_indices = @transform_13, window_bounds = array<i64: 1, 128>}, {pipeline_mode = #tpu.pipeline_mode<synchronous>, transform_indices = @transform_14, window_bounds = array<i64: 1, 128>}, {pipeline_mode = #tpu.pipeline_mode<synchronous>, transform_indices = @transform_15, window_bounds = array<i64: 1, 128>}, {pipeline_mode = #tpu.pipeline_mode<synchronous>, transform_indices = @transform_16, window_bounds = array<i64: 4, 128>}, {pipeline_mode = #tpu.pipeline_mode<synchronous>, transform_indices = @transform_17, window_bounds = array<i64: 1, 1>}, {transform_indices = @transform_18, window_bounds = array<i64: 1, 1, 1>}]} {
    %c0 = arith.constant 0 : index
    %c0_0 = arith.constant 0 : index
    %c0_1 = arith.constant 0 : index
    %0 = vector.load %arg1[%c0, %c0_0, %c0_1] : memref<1x32x128xf32, #tpu.memory_space<vmem>>, vector<1x32x128xf32>
    %1 = vector.shape_cast %0 : vector<1x32x128xf32> to vector<32x128xf32>
    %c0_2 = arith.constant 0 : index
    %c0_3 = arith.constant 0 : index
    %2 = vector.load %arg2[%c0_2, %c0_3] : memref<128x64xf32, #tpu.memory_space<vmem>>, vector<128x64xf32>
    %cst = arith.constant dense<0.000000e+00> : vector<32x64xf32>
    %3 = tpu.matmul %1, %2, %cst {dimension_numbers = #tpu.dot_dimension_numbers<[1], [0], [0], [1], [0, 0, 1, 1], [], []>} : vector<32x128xf32>, vector<128x64xf32>, vector<32x64xf32> -> vector<32x64xf32>
    %c0_4 = arith.constant 0 : index
    %c0_5 = arith.constant 0 : index
    %4 = vector.load %arg3[%c0_4, %c0_5] : memref<1x64xf32, #tpu.memory_space<vmem>>, vector<1x64xf32>
    %5 = vector.broadcast %4 : vector<1x64xf32> to vector<32x64xf32>
    %6 = arith.addf %3, %5 : vector<32x64xf32>
    %c0_6 = arith.constant 0 : index
    %c0_7 = arith.constant 0 : index
    %c0_8 = arith.constant 0 : index
    %7 = vector.load %arg4[%c0_6, %c0_7, %c0_8] : memref<3x16x32xf32, #tpu.memory_space<vmem>>, vector<1x16x32xf32>
    %8 = vector.shape_cast %7 : vector<1x16x32xf32> to vector<16x32xf32>
    %cst_9 = arith.constant dense<0.000000e+00> : vector<16x64xf32>
    %9 = tpu.matmul %8, %6, %cst_9 {dimension_numbers = #tpu.dot_dimension_numbers<[1], [0], [0], [1], [0, 0, 1, 1], [], []>} : vector<16x32xf32>, vector<32x64xf32>, vector<16x64xf32> -> vector<16x64xf32>
    %c0_10 = arith.constant 0 : index
    %c0_11 = arith.constant 0 : index
    %c0_12 = arith.constant 0 : index
    %10 = vector.load %arg5[%c0_10, %c0_11, %c0_12] : memref<3x64x128xf32, #tpu.memory_space<vmem>>, vector<1x64x128xf32>
    %11 = vector.shape_cast %10 : vector<1x64x128xf32> to vector<64x128xf32>
    %cst_13 = arith.constant dense<0.000000e+00> : vector<16x128xf32>
    %12 = tpu.matmul %9, %11, %cst_13 {dimension_numbers = #tpu.dot_dimension_numbers<[1], [0], [0], [1], [0, 0, 1, 1], [], []>} : vector<16x64xf32>, vector<64x128xf32>, vector<16x128xf32> -> vector<16x128xf32>
    %c1 = arith.constant 1 : index
    %c0_14 = arith.constant 0 : index
    %c0_15 = arith.constant 0 : index
    %13 = vector.load %arg4[%c1, %c0_14, %c0_15] : memref<3x16x32xf32, #tpu.memory_space<vmem>>, vector<1x16x32xf32>
    %14 = vector.shape_cast %13 : vector<1x16x32xf32> to vector<16x32xf32>
    %cst_16 = arith.constant dense<0.000000e+00> : vector<16x64xf32>
    %15 = tpu.matmul %14, %6, %cst_16 {dimension_numbers = #tpu.dot_dimension_numbers<[1], [0], [0], [1], [0, 0, 1, 1], [], []>} : vector<16x32xf32>, vector<32x64xf32>, vector<16x64xf32> -> vector<16x64xf32>
    %c1_17 = arith.constant 1 : index
    %c0_18 = arith.constant 0 : index
    %c0_19 = arith.constant 0 : index
    %16 = vector.load %arg5[%c1_17, %c0_18, %c0_19] : memref<3x64x128xf32, #tpu.memory_space<vmem>>, vector<1x64x128xf32>
    %17 = vector.shape_cast %16 : vector<1x64x128xf32> to vector<64x128xf32>
    %cst_20 = arith.constant dense<0.000000e+00> : vector<16x128xf32>
    %18 = tpu.matmul %15, %17, %cst_20 {dimension_numbers = #tpu.dot_dimension_numbers<[1], [0], [0], [1], [0, 0, 1, 1], [], []>} : vector<16x64xf32>, vector<64x128xf32>, vector<16x128xf32> -> vector<16x128xf32>
    %19 = arith.addf %12, %18 : vector<16x128xf32>
    %c2 = arith.constant 2 : index
    %c0_21 = arith.constant 0 : index
    %c0_22 = arith.constant 0 : index
    %20 = vector.load %arg4[%c2, %c0_21, %c0_22] : memref<3x16x32xf32, #tpu.memory_space<vmem>>, vector<1x16x32xf32>
    %21 = vector.shape_cast %20 : vector<1x16x32xf32> to vector<16x32xf32>
    %cst_23 = arith.constant dense<0.000000e+00> : vector<16x64xf32>
    %22 = tpu.matmul %21, %6, %cst_23 {dimension_numbers = #tpu.dot_dimension_numbers<[1], [0], [0], [1], [0, 0, 1, 1], [], []>} : vector<16x32xf32>, vector<32x64xf32>, vector<16x64xf32> -> vector<16x64xf32>
    %c2_24 = arith.constant 2 : index
    %c0_25 = arith.constant 0 : index
    %c0_26 = arith.constant 0 : index
    %23 = vector.load %arg5[%c2_24, %c0_25, %c0_26] : memref<3x64x128xf32, #tpu.memory_space<vmem>>, vector<1x64x128xf32>
    %24 = vector.shape_cast %23 : vector<1x64x128xf32> to vector<64x128xf32>
    %cst_27 = arith.constant dense<0.000000e+00> : vector<16x128xf32>
    %25 = tpu.matmul %22, %24, %cst_27 {dimension_numbers = #tpu.dot_dimension_numbers<[1], [0], [0], [1], [0, 0, 1, 1], [], []>} : vector<16x64xf32>, vector<64x128xf32>, vector<16x128xf32> -> vector<16x128xf32>
    %26 = arith.addf %19, %25 : vector<16x128xf32>
    %c0_28 = arith.constant 0 : index
    %c0_29 = arith.constant 0 : index
    %27 = vector.load %arg6[%c0_28, %c0_29] : memref<1x128xf32, #tpu.memory_space<vmem>>, vector<1x128xf32>
    %28 = vector.broadcast %27 : vector<1x128xf32> to vector<16x128xf32>
    %29 = arith.addf %26, %28 : vector<16x128xf32>
    %cst_30 = arith.constant 0.000000e+00 : f32
    %30 = vector.broadcast %cst_30 : f32 to vector<16x128xf32>
    %31 = arith.cmpf oge, %29, %30 : vector<16x128xf32>
    %cst_31 = arith.constant 2.000000e-01 : f32
    %32 = vector.broadcast %cst_31 : f32 to vector<16x128xf32>
    %33 = arith.mulf %32, %29 : vector<16x128xf32>
    %34 = arith.select %31, %29, %33 : vector<16x128xi1>, vector<16x128xf32>
    %c0_32 = arith.constant 0 : index
    %c0_33 = arith.constant 0 : index
    %c0_34 = arith.constant 0 : index
    %35 = vector.load %arg7[%c0_32, %c0_33, %c0_34] : memref<3x8x16xf32, #tpu.memory_space<vmem>>, vector<1x8x16xf32>
    %36 = vector.shape_cast %35 : vector<1x8x16xf32> to vector<8x16xf32>
    %cst_35 = arith.constant dense<0.000000e+00> : vector<8x128xf32>
    %37 = tpu.matmul %36, %34, %cst_35 {dimension_numbers = #tpu.dot_dimension_numbers<[1], [0], [0], [1], [0, 0, 1, 1], [], []>} : vector<8x16xf32>, vector<16x128xf32>, vector<8x128xf32> -> vector<8x128xf32>
    %c0_36 = arith.constant 0 : index
    %c0_37 = arith.constant 0 : index
    %c0_38 = arith.constant 0 : index
    %38 = vector.load %arg8[%c0_36, %c0_37, %c0_38] : memref<3x128x128xf32, #tpu.memory_space<vmem>>, vector<1x128x128xf32>
    %39 = vector.shape_cast %38 : vector<1x128x128xf32> to vector<128x128xf32>
    %cst_39 = arith.constant dense<0.000000e+00> : vector<8x128xf32>
    %40 = tpu.matmul %37, %39, %cst_39 {dimension_numbers = #tpu.dot_dimension_numbers<[1], [0], [0], [1], [0, 0, 1, 1], [], []>} : vector<8x128xf32>, vector<128x128xf32>, vector<8x128xf32> -> vector<8x128xf32>
    %c1_40 = arith.constant 1 : index
    %c0_41 = arith.constant 0 : index
    %c0_42 = arith.constant 0 : index
    %41 = vector.load %arg7[%c1_40, %c0_41, %c0_42] : memref<3x8x16xf32, #tpu.memory_space<vmem>>, vector<1x8x16xf32>
    %42 = vector.shape_cast %41 : vector<1x8x16xf32> to vector<8x16xf32>
    %cst_43 = arith.constant dense<0.000000e+00> : vector<8x128xf32>
    %43 = tpu.matmul %42, %34, %cst_43 {dimension_numbers = #tpu.dot_dimension_numbers<[1], [0], [0], [1], [0, 0, 1, 1], [], []>} : vector<8x16xf32>, vector<16x128xf32>, vector<8x128xf32> -> vector<8x128xf32>
    %c1_44 = arith.constant 1 : index
    %c0_45 = arith.constant 0 : index
    %c0_46 = arith.constant 0 : index
    %44 = vector.load %arg8[%c1_44, %c0_45, %c0_46] : memref<3x128x128xf32, #tpu.memory_space<vmem>>, vector<1x128x128xf32>
    %45 = vector.shape_cast %44 : vector<1x128x128xf32> to vector<128x128xf32>
    %cst_47 = arith.constant dense<0.000000e+00> : vector<8x128xf32>
    %46 = tpu.matmul %43, %45, %cst_47 {dimension_numbers = #tpu.dot_dimension_numbers<[1], [0], [0], [1], [0, 0, 1, 1], [], []>} : vector<8x128xf32>, vector<128x128xf32>, vector<8x128xf32> -> vector<8x128xf32>
    %47 = arith.addf %40, %46 : vector<8x128xf32>
    %c2_48 = arith.constant 2 : index
    %c0_49 = arith.constant 0 : index
    %c0_50 = arith.constant 0 : index
    %48 = vector.load %arg7[%c2_48, %c0_49, %c0_50] : memref<3x8x16xf32, #tpu.memory_space<vmem>>, vector<1x8x16xf32>
    %49 = vector.shape_cast %48 : vector<1x8x16xf32> to vector<8x16xf32>
    %cst_51 = arith.constant dense<0.000000e+00> : vector<8x128xf32>
    %50 = tpu.matmul %49, %34, %cst_51 {dimension_numbers = #tpu.dot_dimension_numbers<[1], [0], [0], [1], [0, 0, 1, 1], [], []>} : vector<8x16xf32>, vector<16x128xf32>, vector<8x128xf32> -> vector<8x128xf32>
    %c2_52 = arith.constant 2 : index
    %c0_53 = arith.constant 0 : index
    %c0_54 = arith.constant 0 : index
    %51 = vector.load %arg8[%c2_52, %c0_53, %c0_54] : memref<3x128x128xf32, #tpu.memory_space<vmem>>, vector<1x128x128xf32>
    %52 = vector.shape_cast %51 : vector<1x128x128xf32> to vector<128x128xf32>
    %cst_55 = arith.constant dense<0.000000e+00> : vector<8x128xf32>
    %53 = tpu.matmul %50, %52, %cst_55 {dimension_numbers = #tpu.dot_dimension_numbers<[1], [0], [0], [1], [0, 0, 1, 1], [], []>} : vector<8x128xf32>, vector<128x128xf32>, vector<8x128xf32> -> vector<8x128xf32>
    %54 = arith.addf %47, %53 : vector<8x128xf32>
    %c0_56 = arith.constant 0 : index
    %c0_57 = arith.constant 0 : index
    %55 = vector.load %arg9[%c0_56, %c0_57] : memref<1x128xf32, #tpu.memory_space<vmem>>, vector<1x128xf32>
    %56 = vector.broadcast %55 : vector<1x128xf32> to vector<8x128xf32>
    %57 = arith.addf %54, %56 : vector<8x128xf32>
    %cst_58 = arith.constant 0.000000e+00 : f32
    %58 = vector.broadcast %cst_58 : f32 to vector<8x128xf32>
    %59 = arith.cmpf oge, %57, %58 : vector<8x128xf32>
    %cst_59 = arith.constant 2.000000e-01 : f32
    %60 = vector.broadcast %cst_59 : f32 to vector<8x128xf32>
    %61 = arith.mulf %60, %57 : vector<8x128xf32>
    %62 = arith.select %59, %57, %61 : vector<8x128xi1>, vector<8x128xf32>
    %c0_60 = arith.constant 0 : index
    %c0_61 = arith.constant 0 : index
    %63 = vector.load %arg10[%c0_60, %c0_61] : memref<1x128xf32, #tpu.memory_space<vmem>>, vector<1x128xf32>
    %64 = vector.broadcast %63 : vector<1x128xf32> to vector<8x128xf32>
    %65 = arith.mulf %62, %64 : vector<8x128xf32>
    %c0_62 = arith.constant 0 : index
    %c0_63 = arith.constant 0 : index
    %66 = vector.load %arg11[%c0_62, %c0_63] : memref<1x128xf32, #tpu.memory_space<vmem>>, vector<1x128xf32>
    %67 = vector.broadcast %66 : vector<1x128xf32> to vector<8x128xf32>
    %68 = arith.addf %65, %67 : vector<8x128xf32>
    %c0_64 = arith.constant 0 : index
    %c0_65 = arith.constant 0 : index
    %c0_66 = arith.constant 0 : index
    %69 = vector.load %arg12[%c0_64, %c0_65, %c0_66] : memref<3x4x8xf32, #tpu.memory_space<vmem>>, vector<1x4x8xf32>
    %70 = vector.shape_cast %69 : vector<1x4x8xf32> to vector<4x8xf32>
    %cst_67 = arith.constant dense<0.000000e+00> : vector<4x128xf32>
    %71 = tpu.matmul %70, %68, %cst_67 {dimension_numbers = #tpu.dot_dimension_numbers<[1], [0], [0], [1], [0, 0, 1, 1], [], []>} : vector<4x8xf32>, vector<8x128xf32>, vector<4x128xf32> -> vector<4x128xf32>
    %c0_68 = arith.constant 0 : index
    %c0_69 = arith.constant 0 : index
    %c0_70 = arith.constant 0 : index
    %72 = vector.load %arg13[%c0_68, %c0_69, %c0_70] : memref<3x128x128xf32, #tpu.memory_space<vmem>>, vector<1x128x128xf32>
    %73 = vector.shape_cast %72 : vector<1x128x128xf32> to vector<128x128xf32>
    %cst_71 = arith.constant dense<0.000000e+00> : vector<4x128xf32>
    %74 = tpu.matmul %71, %73, %cst_71 {dimension_numbers = #tpu.dot_dimension_numbers<[1], [0], [0], [1], [0, 0, 1, 1], [], []>} : vector<4x128xf32>, vector<128x128xf32>, vector<4x128xf32> -> vector<4x128xf32>
    %c1_72 = arith.constant 1 : index
    %c0_73 = arith.constant 0 : index
    %c0_74 = arith.constant 0 : index
    %75 = vector.load %arg12[%c1_72, %c0_73, %c0_74] : memref<3x4x8xf32, #tpu.memory_space<vmem>>, vector<1x4x8xf32>
    %76 = vector.shape_cast %75 : vector<1x4x8xf32> to vector<4x8xf32>
    %cst_75 = arith.constant dense<0.000000e+00> : vector<4x128xf32>
    %77 = tpu.matmul %76, %68, %cst_75 {dimension_numbers = #tpu.dot_dimension_numbers<[1], [0], [0], [1], [0, 0, 1, 1], [], []>} : vector<4x8xf32>, vector<8x128xf32>, vector<4x128xf32> -> vector<4x128xf32>
    %c1_76 = arith.constant 1 : index
    %c0_77 = arith.constant 0 : index
    %c0_78 = arith.constant 0 : index
    %78 = vector.load %arg13[%c1_76, %c0_77, %c0_78] : memref<3x128x128xf32, #tpu.memory_space<vmem>>, vector<1x128x128xf32>
    %79 = vector.shape_cast %78 : vector<1x128x128xf32> to vector<128x128xf32>
    %cst_79 = arith.constant dense<0.000000e+00> : vector<4x128xf32>
    %80 = tpu.matmul %77, %79, %cst_79 {dimension_numbers = #tpu.dot_dimension_numbers<[1], [0], [0], [1], [0, 0, 1, 1], [], []>} : vector<4x128xf32>, vector<128x128xf32>, vector<4x128xf32> -> vector<4x128xf32>
    %81 = arith.addf %74, %80 : vector<4x128xf32>
    %c2_80 = arith.constant 2 : index
    %c0_81 = arith.constant 0 : index
    %c0_82 = arith.constant 0 : index
    %82 = vector.load %arg12[%c2_80, %c0_81, %c0_82] : memref<3x4x8xf32, #tpu.memory_space<vmem>>, vector<1x4x8xf32>
    %83 = vector.shape_cast %82 : vector<1x4x8xf32> to vector<4x8xf32>
    %cst_83 = arith.constant dense<0.000000e+00> : vector<4x128xf32>
    %84 = tpu.matmul %83, %68, %cst_83 {dimension_numbers = #tpu.dot_dimension_numbers<[1], [0], [0], [1], [0, 0, 1, 1], [], []>} : vector<4x8xf32>, vector<8x128xf32>, vector<4x128xf32> -> vector<4x128xf32>
    %c2_84 = arith.constant 2 : index
    %c0_85 = arith.constant 0 : index
    %c0_86 = arith.constant 0 : index
    %85 = vector.load %arg13[%c2_84, %c0_85, %c0_86] : memref<3x128x128xf32, #tpu.memory_space<vmem>>, vector<1x128x128xf32>
    %86 = vector.shape_cast %85 : vector<1x128x128xf32> to vector<128x128xf32>
    %cst_87 = arith.constant dense<0.000000e+00> : vector<4x128xf32>
    %87 = tpu.matmul %84, %86, %cst_87 {dimension_numbers = #tpu.dot_dimension_numbers<[1], [0], [0], [1], [0, 0, 1, 1], [], []>} : vector<4x128xf32>, vector<128x128xf32>, vector<4x128xf32> -> vector<4x128xf32>
    %88 = arith.addf %81, %87 : vector<4x128xf32>
    %c0_88 = arith.constant 0 : index
    %c0_89 = arith.constant 0 : index
    %89 = vector.load %arg14[%c0_88, %c0_89] : memref<1x128xf32, #tpu.memory_space<vmem>>, vector<1x128xf32>
    %90 = vector.broadcast %89 : vector<1x128xf32> to vector<4x128xf32>
    %91 = arith.addf %88, %90 : vector<4x128xf32>
    %cst_90 = arith.constant 0.000000e+00 : f32
    %92 = vector.broadcast %cst_90 : f32 to vector<4x128xf32>
    %93 = arith.cmpf oge, %91, %92 : vector<4x128xf32>
    %cst_91 = arith.constant 2.000000e-01 : f32
    %94 = vector.broadcast %cst_91 : f32 to vector<4x128xf32>
    %95 = arith.mulf %94, %91 : vector<4x128xf32>
    %96 = arith.select %93, %91, %95 : vector<4x128xi1>, vector<4x128xf32>
    %c0_92 = arith.constant 0 : index
    %c0_93 = arith.constant 0 : index
    %97 = vector.load %arg15[%c0_92, %c0_93] : memref<1x128xf32, #tpu.memory_space<vmem>>, vector<1x128xf32>
    %98 = vector.broadcast %97 : vector<1x128xf32> to vector<4x128xf32>
    %99 = arith.mulf %96, %98 : vector<4x128xf32>
    %c0_94 = arith.constant 0 : index
    %c0_95 = arith.constant 0 : index
    %100 = vector.load %arg16[%c0_94, %c0_95] : memref<1x128xf32, #tpu.memory_space<vmem>>, vector<1x128xf32>
    %101 = vector.broadcast %100 : vector<1x128xf32> to vector<4x128xf32>
    %102 = arith.addf %99, %101 : vector<4x128xf32>
    %c0_96 = arith.constant 0 : index
    %c0_97 = arith.constant 0 : index
    %103 = vector.load %arg17[%c0_96, %c0_97] : memref<4x128xf32, #tpu.memory_space<vmem>>, vector<4x128xf32>
    %104 = arith.mulf %102, %103 : vector<4x128xf32>
    %cst_98 = arith.constant dense<0.000000e+00> : vector<4xf32>
    %105 = vector.multi_reduction <add>, %104, %cst_98 [1] : vector<4x128xf32> to vector<4xf32>
    %106 = vector.shape_cast %105 : vector<4xf32> to vector<4x1xf32>
    %cst_99 = arith.constant dense<0.000000e+00> : vector<1xf32>
    %107 = vector.multi_reduction <add>, %106, %cst_99 [0] : vector<4x1xf32> to vector<1xf32>
    %108 = vector.shape_cast %107 : vector<1xf32> to vector<1x1xf32>
    %c0_100 = arith.constant 0 : index
    %c0_101 = arith.constant 0 : index
    %109 = vector.load %arg18[%c0_100, %c0_101] : memref<1x1xf32, #tpu.memory_space<vmem>>, vector<1x1xf32>
    %110 = arith.addf %108, %109 : vector<1x1xf32>
    %c0_102 = arith.constant 0 : index
    %c0_103 = arith.constant 0 : index
    %c0_104 = arith.constant 0 : index
    %111 = vector.load %arg19[%c0_102, %c0_103, %c0_104] : memref<1x1x1xf32, #tpu.memory_space<vmem>>, vector<1x1x1xf32>
    %112 = vector.shape_cast %111 : vector<1x1x1xf32> to vector<1x1xf32>
    %113 = vector.shape_cast %110 : vector<1x1xf32> to vector<1x1x1xf32>
    tpu.vector_store %arg19[%c0_102, %c0_103, %c0_104], %113 {strides = array<i32>} : memref<1x1x1xf32, #tpu.memory_space<vmem>>, vector<1x1x1xf32>,
    return
  }
  func.func @transform_0(%arg0: i32) -> (i32, i32, i32) {
    %c0_i32 = arith.constant 0 : i32
    %c0_i32_0 = arith.constant 0 : i32
    %c0_i32_1 = arith.constant 0 : i32
    return %arg0, %c0_i32, %c0_i32_0 : i32, i32, i32
  }
  func.func @transform_1(%arg0: i32) -> (i32, i32) {
    %c0_i32 = arith.constant 0 : i32
    %c0_i32_0 = arith.constant 0 : i32
    %c0_i32_1 = arith.constant 0 : i32
    return %c0_i32, %c0_i32_0 : i32, i32
  }
  func.func @transform_2(%arg0: i32) -> (i32, i32) {
    %c0_i32 = arith.constant 0 : i32
    %c0_i32_0 = arith.constant 0 : i32
    %c0_i32_1 = arith.constant 0 : i32
    return %c0_i32, %c0_i32_0 : i32, i32
  }
  func.func @transform_3(%arg0: i32) -> (i32, i32, i32) {
    %c0_i32 = arith.constant 0 : i32
    %c0_i32_0 = arith.constant 0 : i32
    %c0_i32_1 = arith.constant 0 : i32
    %c0_i32_2 = arith.constant 0 : i32
    return %c0_i32, %c0_i32_0, %c0_i32_1 : i32, i32, i32
  }
  func.func @transform_4(%arg0: i32) -> (i32, i32, i32) {
    %c0_i32 = arith.constant 0 : i32
    %c0_i32_0 = arith.constant 0 : i32
    %c0_i32_1 = arith.constant 0 : i32
    %c0_i32_2 = arith.constant 0 : i32
    return %c0_i32, %c0_i32_0, %c0_i32_1 : i32, i32, i32
  }
  func.func @transform_5(%arg0: i32) -> (i32, i32) {
    %c0_i32 = arith.constant 0 : i32
    %c0_i32_0 = arith.constant 0 : i32
    %c0_i32_1 = arith.constant 0 : i32
    return %c0_i32, %c0_i32_0 : i32, i32
  }
  func.func @transform_6(%arg0: i32) -> (i32, i32, i32) {
    %c0_i32 = arith.constant 0 : i32
    %c0_i32_0 = arith.constant 0 : i32
    %c0_i32_1 = arith.constant 0 : i32
    %c0_i32_2 = arith.constant 0 : i32
    return %c0_i32, %c0_i32_0, %c0_i32_1 : i32, i32, i32
  }
  func.func @transform_7(%arg0: i32) -> (i32, i32, i32) {
    %c0_i32 = arith.constant 0 : i32
    %c0_i32_0 = arith.constant 0 : i32
    %c0_i32_1 = arith.constant 0 : i32
    %c0_i32_2 = arith.constant 0 : i32
    return %c0_i32, %c0_i32_0, %c0_i32_1 : i32, i32, i32
  }
  func.func @transform_8(%arg0: i32) -> (i32, i32) {
    %c0_i32 = arith.constant 0 : i32
    %c0_i32_0 = arith.constant 0 : i32
    %c0_i32_1 = arith.constant 0 : i32
    return %c0_i32, %c0_i32_0 : i32, i32
  }
  func.func @transform_9(%arg0: i32) -> (i32, i32) {
    %c0_i32 = arith.constant 0 : i32
    %c0_i32_0 = arith.constant 0 : i32
    %c0_i32_1 = arith.constant 0 : i32
    return %c0_i32, %c0_i32_0 : i32, i32
  }
  func.func @transform_10(%arg0: i32) -> (i32, i32) {
    %c0_i32 = arith.constant 0 : i32
    %c0_i32_0 = arith.constant 0 : i32
    %c0_i32_1 = arith.constant 0 : i32
    return %c0_i32, %c0_i32_0 : i32, i32
  }
  func.func @transform_11(%arg0: i32) -> (i32, i32, i32) {
    %c0_i32 = arith.constant 0 : i32
    %c0_i32_0 = arith.constant 0 : i32
    %c0_i32_1 = arith.constant 0 : i32
    %c0_i32_2 = arith.constant 0 : i32
    return %c0_i32, %c0_i32_0, %c0_i32_1 : i32, i32, i32
  }
  func.func @transform_12(%arg0: i32) -> (i32, i32, i32) {
    %c0_i32 = arith.constant 0 : i32
    %c0_i32_0 = arith.constant 0 : i32
    %c0_i32_1 = arith.constant 0 : i32
    %c0_i32_2 = arith.constant 0 : i32
    return %c0_i32, %c0_i32_0, %c0_i32_1 : i32, i32, i32
  }
  func.func @transform_13(%arg0: i32) -> (i32, i32) {
    %c0_i32 = arith.constant 0 : i32
    %c0_i32_0 = arith.constant 0 : i32
    %c0_i32_1 = arith.constant 0 : i32
    return %c0_i32, %c0_i32_0 : i32, i32
  }
  func.func @transform_14(%arg0: i32) -> (i32, i32) {
    %c0_i32 = arith.constant 0 : i32
    %c0_i32_0 = arith.constant 0 : i32
    %c0_i32_1 = arith.constant 0 : i32
    return %c0_i32, %c0_i32_0 : i32, i32
  }
  func.func @transform_15(%arg0: i32) -> (i32, i32) {
    %c0_i32 = arith.constant 0 : i32
    %c0_i32_0 = arith.constant 0 : i32
    %c0_i32_1 = arith.constant 0 : i32
    return %c0_i32, %c0_i32_0 : i32, i32
  }
  func.func @transform_16(%arg0: i32) -> (i32, i32) {
    %c0_i32 = arith.constant 0 : i32
    %c0_i32_0 = arith.constant 0 : i32
    %c0_i32_1 = arith.constant 0 : i32
    return %c0_i32, %c0_i32_0 : i32, i32
  }
  func.func @transform_17(%arg0: i32) -> (i32, i32) {
    %c0_i32 = arith.constant 0 : i32
    %c0_i32_0 = arith.constant 0 : i32
    %c0_i32_1 = arith.constant 0 : i32
    return %c0_i32, %c0_i32_0 : i32, i32
  }
  func.func @transform_18(%arg0: i32) -> (i32, i32, i32) {
    %c0_i32 = arith.constant 0 : i32
    %c0_i32_0 = arith.constant 0 : i32
    %c0_i32_1 = arith.constant 0 : i32
    return %arg0, %c0_i32, %c0_i32_0 : i32, i32, i32
  }
}

</mosaic_0001>

<bundles_post_ra>
// kernel: squeeze.13
= control target key start
LH: loop header
LB: loop body
LE: loop exit
PB: predicated region body
PF: predicated region fallthrough
CT: control target
= control target key end

     0   :  { %s706_s8 = smov 122   ;;  %s707_s9 = smov 124   ;;  %vm7_vm0 = vcmask 15360   ;;  %s1293_s0 = inlined_call_operand.vmem [shape: f32[256], index: 0, kind: input, shape index: {}]   ;;  %s1294_s1 = inlined_call_operand.vmem [shape: f32[128,2], index: 1, kind: output, shape index: {}]  }
   0x1   :  { %v4_v0 = vld [vmem:[%s1293_s0] sm:$0x3]  ;;  %s705_s0 = smov 126   ;;  %s708_s10 = smov 120  }
   0x2   :  { %5 = vst [vmem:[#allocation0] sm:$0x3] %v4_v0  ;;  %s709_s11 = smov 118   ;;  %s710_s12 = smov 116  }
   0x3   :  { %s711_s13 = smov 114   ;;  %s712_s14 = smov 112  }
   0x4   :  { %s713_s15 = smov 110   ;;  %s714_s16 = smov 108  }
   0x5   :  { %s715_s17 = smov 106   ;;  %s716_s18 = smov 104  }
   0x6   :  { %s717_s19 = smov 102   ;;  %s718_s20 = smov 100  }
   0x7   :  { %s719_s21 = smov 98   ;;  %s720_s22 = smov 96  }
   0x8   :  { %s721_s23 = smov 94   ;;  %s722_s24 = smov 92  }
   0x9   :  { %v11_v1 = vld [vmem:[#allocation0] sm:$0x3]   ;;  %s723_s25 = smov 90   ;;  %s724_s26 = smov 88  }
   0xa   :  { %v27_v2 = vld [vmem:[#allocation0] sm:$0x3]   ;;  %12 = vrot.lane.b32.xlu0 %v11_v1, %s705_s0  ;;  %s725_s27 = smov 86   ;;  %s726_s28 = smov 84  }
   0xb   :  { %28 = vrot.lane.b32.xlu1 %v27_v2, %s706_s8  ;;  %v19_v3 = vld [vmem:[#allocation0] sm:$0x3]   ;;  %s727_s29 = smov 82   ;;  %s728_s30 = smov 80  }
   0xc   :  { %v35_v4 = vld [vmem:[#allocation0] sm:$0x3]   ;;  %s729_s2 = smov 78   ;;  %s730_s3 = smov 76  }
   0xd   :  { %v43_v5 = vld [vmem:[#allocation0] sm:$0x3]   ;;  %s731_s4 = smov 74   ;;  %s732_s5 = smov 72  }
   0xe   :  { %20 = vrot.lane.b32.xlu0 %v19_v3, %s707_s9  ;;  %v51_v6 = vld [vmem:[#allocation0] sm:$0x3]   ;;  %s733_s6 = smov 70   ;;  %s734_s7 = smov 68  }
   0xf   :  { %36 = vrot.lane.b32.xlu1 %v35_v4, %s708_s10  ;;  %v59_v7 = vld [vmem:[#allocation0] sm:$0x3]   ;;  %s735_s0 = smov 66   ;;  %s736_s8 = smov 64  }
  0x10   :  { %v67_v8 = vld [vmem:[#allocation0] sm:$0x3]   ;;  %s737_s9 = smov 62   ;;  %s738_s10 = smov 60  }
  0x11   :  { %v75_v9 = vld [vmem:[#allocation0] sm:$0x3]  }
  0x12   :  { %44 = vrot.lane.b32.xlu0 %v43_v5, %s709_s11  ;;  %v83_v10 = vld [vmem:[#allocation0] sm:$0x3]   ;;  %s739_s11 = smov 58  }
  0x13   :  { %52 = vrot.lane.b32.xlu1 %v51_v6, %s710_s12  ;;  %v91_v11 = vld [vmem:[#allocation0] sm:$0x3]   ;;  %s740_s12 = smov 56  }
  0x14   :  { %v99_v12 = vld [vmem:[#allocation0] sm:$0x3]  }
  0x15   :  { %v107_v13 = vld [vmem:[#allocation0] sm:$0x3]  }
  0x16   :  { %60 = vrot.lane.b32.xlu0 %v59_v7, %s711_s13  ;;  %v115_v14 = vld [vmem:[#allocation0] sm:$0x3]   ;;  %s741_s13 = smov 54  }
  0x17   :  { %68 = vrot.lane.b32.xlu1 %v67_v8, %s712_s14  ;;  %v123_v15 = vld [vmem:[#allocation0] sm:$0x3]   ;;  %s742_s14 = smov 52  }
  0x18   :  { %v131_v16 = vld [vmem:[#allocation0] sm:$0x3]  }
  0x19   :  { %v139_v17 = vld [vmem:[#allocation0] sm:$0x3]  }
  0x1a   :  { %76 = vrot.lane.b32.xlu0 %v75_v9, %s713_s15  ;;  %v147_v18 = vld [vmem:[#allocation0] sm:$0x3]   ;;  %s743_s15 = smov 50  }
  0x1b   :  { %84 = vrot.lane.b32.xlu1 %v83_v10, %s714_s16  ;;  %v155_v19 = vld [vmem:[#allocation0] sm:$0x3]   ;;  %s744_s16 = smov 48  }
  0x1c   :  { %v163_v20 = vld [vmem:[#allocation0] sm:$0x3]  }
  0x1d   :  { %v171_v21 = vld [vmem:[#allocation0] sm:$0x3]  }
  0x1e   :  { %92 = vrot.lane.b32.xlu0 %v91_v11, %s715_s17  ;;  %v179_v22 = vld [vmem:[#allocation0] sm:$0x3]   ;;  %s745_s17 = smov 46  }
  0x1f   :  { %100 = vrot.lane.b32.xlu1 %v99_v12, %s716_s18  ;;  %v187_v23 = vld [vmem:[#allocation0] sm:$0x3]   ;;  %s746_s18 = smov 44  }
  0x20   :  { %v195_v24 = vld [vmem:[#allocation0] sm:$0x3]  }
  0x21   :  { %v203_v25 = vld [vmem:[#allocation0] sm:$0x3]  }
  0x22   :  { %108 = vrot.lane.b32.xlu0 %v107_v13, %s717_s19  ;;  %v211_v26 = vld [vmem:[#allocation0] sm:$0x3]   ;;  %s747_s19 = smov 42  }
  0x23   :  { %116 = vrot.lane.b32.xlu1 %v115_v14, %s718_s20  ;;  %v219_v27 = vld [vmem:[#allocation0] sm:$0x3]   ;;  %s748_s20 = smov 40  }
  0x24   :  { %v227_v28 = vld [vmem:[#allocation0] sm:$0x3]  }
  0x25   :  { %v235_v29 = vld [vmem:[#allocation0] sm:$0x3]  }
  0x26   :  { %124 = vrot.lane.b32.xlu0 %v123_v15, %s719_s21  ;;  %v243_v30 = vld [vmem:[#allocation0] sm:$0x3]   ;;  %s749_s21 = smov 38  }
  0x27   :  { %132 = vrot.lane.b32.xlu1 %v131_v16, %s720_s22  ;;  %v251_v31 = vld [vmem:[#allocation0] sm:$0x3]   ;;  %s750_s22 = smov 36  }
  0x28   :  { %v259_v32 = vld [vmem:[#allocation0] sm:$0x3]  }
  0x29   :  { %v267_v33 = vld [vmem:[#allocation0] sm:$0x3]  }
  0x2a   :  { %140 = vrot.lane.b32.xlu0 %v139_v17, %s721_s23  ;;  %v275_v34 = vld [vmem:[#allocation0] sm:$0x3]   ;;  %s751_s23 = smov 34  }
  0x2b   :  { %148 = vrot.lane.b32.xlu1 %v147_v18, %s722_s24  ;;  %v283_v35 = vld [vmem:[#allocation0] sm:$0x3]   ;;  %s752_s24 = smov 32  }
  0x2c   :  { %v291_v36 = vld [vmem:[#allocation0] sm:$0x3]  }
  0x2d   :  { %v299_v37 = vld [vmem:[#allocation0] sm:$0x3]  }
  0x2e   :  { %156 = vrot.lane.b32.xlu0 %v155_v19, %s723_s25  ;;  %v307_v38 = vld [vmem:[#allocation0] sm:$0x3]   ;;  %s753_s25 = smov 30  }
  0x2f   :  { %164 = vrot.lane.b32.xlu1 %v163_v20, %s724_s26  ;;  %v315_v39 = vld [vmem:[#allocation0] sm:$0x3]   ;;  %s754_s26 = smov 28  }
  0x30   :  { %v323_v40 = vld [vmem:[#allocation0] sm:$0x3]  }
  0x31   :  { %v331_v41 = vld [vmem:[#allocation0] sm:$0x3]  }
  0x32   :  { %172 = vrot.lane.b32.xlu0 %v171_v21, %s725_s27  ;;  %v339_v42 = vld [vmem:[#allocation0] sm:$0x3]   ;;  %s755_s27 = smov 26  }
  0x33   :  { %180 = vrot.lane.b32.xlu1 %v179_v22, %s726_s28  ;;  %v347_v43 = vld [vmem:[#allocation0] sm:$0x3]   ;;  %s756_s28 = smov 24  }
  0x34   :  { %v355_v44 = vld [vmem:[#allocation0] sm:$0x3]  }
  0x35   :  { %v363_v45 = vld [vmem:[#allocation0] sm:$0x3]  }
  0x36   :  { %188 = vrot.lane.b32.xlu0 %v187_v23, %s727_s29  ;;  %v371_v46 = vld [vmem:[#allocation0] sm:$0x3]   ;;  %s757_s29 = smov 22  }
  0x37   :  { %196 = vrot.lane.b32.xlu1 %v195_v24, %s728_s30  ;;  %v379_v47 = vld [vmem:[#allocation0] sm:$0x3]   ;;  %s758_s30 = smov 20  }
  0x38   :  { %v387_v48 = vld [vmem:[#allocation0] sm:$0x3]  }
  0x39   :  { %v395_v49 = vld [vmem:[#allocation0] sm:$0x3]  }
  0x3a   :  { %204 = vrot.lane.b32.xlu0 %v203_v25, %s729_s2  ;;  %v403_v50 = vld [vmem:[#allocation0] sm:$0x3]   ;;  %s759_s2 = smov 18  }
  0x3b   :  { %212 = vrot.lane.b32.xlu1 %v211_v26, %s730_s3  ;;  %v411_v51 = vld [vmem:[#allocation0] sm:$0x3]   ;;  %s760_s3 = smov 16  }
  0x3c   :  { %v419_v52 = vld [vmem:[#allocation0] sm:$0x3]  }
  0x3d   :  { %v427_v53 = vld [vmem:[#allocation0] sm:$0x3]  }
  0x3e   :  { %220 = vrot.lane.b32.xlu0 %v219_v27, %s731_s4  ;;  %v435_v54 = vld [vmem:[#allocation0] sm:$0x3]  }
  0x3f   :  { %228 = vrot.lane.b32.xlu1 %v227_v28, %s732_s5  ;;  %v443_v55 = vld [vmem:[#allocation0] sm:$0x3]  }
  0x40   :  { %v451_v56 = vld [vmem:[#allocation0] sm:$0x3]  }
  0x41   :  { %v459_v57 = vld [vmem:[#allocation0] sm:$0x3]  }
  0x42   :  { %236 = vrot.lane.b32.xlu0 %v235_v29, %s733_s6  ;;  %v467_v58 = vld [vmem:[#allocation0] sm:$0x3]  }
  0x43   :  { %244 = vrot.lane.b32.xlu1 %v243_v30, %s734_s7  ;;  %v6_v59 = vld [vmem:[#allocation0] sm:$0x3]  }
  0x44   :  { %8 = vst.msk [vmem:[%s1294_s1] sm:$0x1] %vm7_vm0, %v6_v59   ;;  %515 = vst.msk [vmem:[%s1294_s1 + $0x3f] sm:$0x2] %vm7_vm0, %v6_v59   ;;  %v475_v60 = vld [vmem:[#allocation0] sm:$0x3]  }
  0x45   :  { %v483_v61 = vld [vmem:[#allocation0] sm:$0x3]  }
  0x46   :  { %252 = vrot.lane.b32.xlu0 %v251_v31, %s735_s0  ;;  %s761_s0 = smov 14   ;;  %v491_v0 = vld [vmem:[#allocation0] sm:$0x3]  }
  0x47   :  { %260 = vrot.lane.b32.xlu1 %v259_v32, %s736_s8  ;;  %s762_s8 = smov 12   ;;  %v499_v1 = vld [vmem:[#allocation0] sm:$0x3]  }
  0x48   :  { %v507_v4 = vld [vmem:[#allocation0] sm:$0x3]  }
  0x4a   :  { %268 = vrot.lane.b32.xlu0 %v267_v33, %s737_s9 }
  0x4b   :  { %276 = vrot.lane.b32.xlu1 %v275_v34, %s738_s10 }
  0x4e   :  { %284 = vrot.lane.b32.xlu0 %v283_v35, %s739_s11 }
  0x4f   :  { %292 = vrot.lane.b32.xlu1 %v291_v36, %s740_s12 }
  0x52   :  { %300 = vrot.lane.b32.xlu0 %v299_v37, %s741_s13 }
  0x53   :  { %308 = vrot.lane.b32.xlu1 %v307_v38, %s742_s14 }
  0x56   :  { %316 = vrot.lane.b32.xlu0 %v315_v39, %s743_s15 }
  0x57   :  { %324 = vrot.lane.b32.xlu1 %v323_v40, %s744_s16 }
  0x5a   :  { %332 = vrot.lane.b32.xlu0 %v331_v41, %s745_s17  ;;  %s763_s17 = smov 10  }
  0x5b   :  { %340 = vrot.lane.b32.xlu1 %v339_v42, %s746_s18  ;;  %s764_s18 = smov 8  }
  0x5e   :  { %348 = vrot.lane.b32.xlu0 %v347_v43, %s747_s19 }
  0x5f   :  { %356 = vrot.lane.b32.xlu1 %v355_v44, %s748_s20 }
  0x62   :  { %364 = vrot.lane.b32.xlu0 %v363_v45, %s749_s21 }
  0x63   :  { %372 = vrot.lane.b32.xlu1 %v371_v46, %s750_s22 }
  0x66   :  { %380 = vrot.lane.b32.xlu0 %v379_v47, %s751_s23 }
  0x67   :  { %388 = vrot.lane.b32.xlu1 %v387_v48, %s752_s24 }
  0x6a   :  { %396 = vrot.lane.b32.xlu0 %v395_v49, %s753_s25 }
  0x6b   :  { %404 = vrot.lane.b32.xlu1 %v403_v50, %s754_s26 }
  0x6e   :  { %412 = vrot.lane.b32.xlu0 %v411_v51, %s755_s27  ;;  %s765_s27 = smov 6  }
  0x6f   :  { %420 = vrot.lane.b32.xlu1 %v419_v52, %s756_s28  ;;  %s766_s28 = smov 4  }
  0x72   :  { %428 = vrot.lane.b32.xlu0 %v427_v53, %s757_s29 }
  0x73   :  { %436 = vrot.lane.b32.xlu1 %v435_v54, %s758_s30 }
  0x76   :  { %444 = vrot.lane.b32.xlu0 %v443_v55, %s759_s2 }
  0x77   :  { %452 = vrot.lane.b32.xlu1 %v451_v56, %s760_s3 }
  0x7a   :  { %460 = vrot.lane.b32.xlu0 %v459_v57, %s761_s0  ;;  %s767_s0 = smov 2  }
  0x7b   :  { %468 = vrot.lane.b32.xlu1 %v467_v58, %s762_s8 }
  0x7c   :  { %v13_v62 = vpop.permute.xlu0 %12  }
  0x7d   :  { %v29_v63 = vpop.permute.xlu1 %28   ;;  %516 = vst.msk [vmem:[%s1294_s1 + $0x1] sm:$0x1] %vm7_vm0, %v13_v62   ;;  %517 = vst.msk [vmem:[%s1294_s1 + $0x40] sm:$0x2] %vm7_vm0, %v13_v62  }
  0x7e   :  { %520 = vst.msk [vmem:[%s1294_s1 + $0x3] sm:$0x1] %vm7_vm0, %v29_v63   ;;  %521 = vst.msk [vmem:[%s1294_s1 + $0x42] sm:$0x2] %vm7_vm0, %v29_v63   ;;  %476 = vrot.lane.b32.xlu0 %v475_v60, %s763_s17 }
  0x7f   :  { %484 = vrot.lane.b32.xlu1 %v483_v61, %s764_s18 }
  0x80   :  { %v21_v2 = vpop.permute.xlu0 %20  }
  0x81   :  { %v37_v3 = vpop.permute.xlu1 %36   ;;  %518 = vst.msk [vmem:[%s1294_s1 + $0x2] sm:$0x1] %vm7_vm0, %v21_v2   ;;  %519 = vst.msk [vmem:[%s1294_s1 + $0x41] sm:$0x2] %vm7_vm0, %v21_v2  }
  0x82   :  { %522 = vst.msk [vmem:[%s1294_s1 + $0x4] sm:$0x1] %vm7_vm0, %v37_v3   ;;  %523 = vst.msk [vmem:[%s1294_s1 + $0x43] sm:$0x2] %vm7_vm0, %v37_v3   ;;  %492 = vrot.lane.b32.xlu0 %v491_v0, %s765_s27 }
  0x83   :  { %500 = vrot.lane.b32.xlu1 %v499_v1, %s766_s28 }
  0x84   :  { %v45_v5 = vpop.permute.xlu0 %44  }
  0x85   :  { %v53_v6 = vpop.permute.xlu1 %52   ;;  %524 = vst.msk [vmem:[%s1294_s1 + $0x5] sm:$0x1] %vm7_vm0, %v45_v5   ;;  %525 = vst.msk [vmem:[%s1294_s1 + $0x44] sm:$0x2] %vm7_vm0, %v45_v5  }
  0x86   :  { %526 = vst.msk [vmem:[%s1294_s1 + $0x6] sm:$0x1] %vm7_vm0, %v53_v6   ;;  %527 = vst.msk [vmem:[%s1294_s1 + $0x45] sm:$0x2] %vm7_vm0, %v53_v6   ;;  %508 = vrot.lane.b32.xlu0 %v507_v4, %s767_s0 }
  0x88   :  { %v61_v7 = vpop.permute.xlu0 %60  }
  0x89   :  { %v69_v8 = vpop.permute.xlu1 %68   ;;  %528 = vst.msk [vmem:[%s1294_s1 + $0x7] sm:$0x1] %vm7_vm0, %v61_v7   ;;  %529 = vst.msk [vmem:[%s1294_s1 + $0x46] sm:$0x2] %vm7_vm0, %v61_v7  }
  0x8a   :  { %530 = vst.msk [vmem:[%s1294_s1 + $0x8] sm:$0x1] %vm7_vm0, %v69_v8   ;;  %531 = vst.msk [vmem:[%s1294_s1 + $0x47] sm:$0x2] %vm7_vm0, %v69_v8  }
  0x8c   :  { %v77_v9 = vpop.permute.xlu0 %76  }
  0x8d   :  { %v85_v10 = vpop.permute.xlu1 %84   ;;  %532 = vst.msk [vmem:[%s1294_s1 + $0x9] sm:$0x1] %vm7_vm0, %v77_v9   ;;  %533 = vst.msk [vmem:[%s1294_s1 + $0x48] sm:$0x2] %vm7_vm0, %v77_v9  }
  0x8e   :  { %534 = vst.msk [vmem:[%s1294_s1 + $0xa] sm:$0x1] %vm7_vm0, %v85_v10   ;;  %535 = vst.msk [vmem:[%s1294_s1 + $0x49] sm:$0x2] %vm7_vm0, %v85_v10  }
  0x90   :  { %v93_v11 = vpop.permute.xlu0 %92  }
  0x91   :  { %v101_v12 = vpop.permute.xlu1 %100   ;;  %536 = vst.msk [vmem:[%s1294_s1 + $0xb] sm:$0x1] %vm7_vm0, %v93_v11   ;;  %537 = vst.msk [vmem:[%s1294_s1 + $0x4a] sm:$0x2] %vm7_vm0, %v93_v11  }
  0x92   :  { %538 = vst.msk [vmem:[%s1294_s1 + $0xc] sm:$0x1] %vm7_vm0, %v101_v12   ;;  %539 = vst.msk [vmem:[%s1294_s1 + $0x4b] sm:$0x2] %vm7_vm0, %v101_v12  }
  0x94   :  { %v109_v13 = vpop.permute.xlu0 %108  }
  0x95   :  { %v117_v14 = vpop.permute.xlu1 %116   ;;  %540 = vst.msk [vmem:[%s1294_s1 + $0xd] sm:$0x1] %vm7_vm0, %v109_v13   ;;  %541 = vst.msk [vmem:[%s1294_s1 + $0x4c] sm:$0x2] %vm7_vm0, %v109_v13  }
  0x96   :  { %542 = vst.msk [vmem:[%s1294_s1 + $0xe] sm:$0x1] %vm7_vm0, %v117_v14   ;;  %543 = vst.msk [vmem:[%s1294_s1 + $0x4d] sm:$0x2] %vm7_vm0, %v117_v14  }
  0x98   :  { %v125_v15 = vpop.permute.xlu0 %124  }
  0x99   :  { %v133_v16 = vpop.permute.xlu1 %132   ;;  %544 = vst.msk [vmem:[%s1294_s1 + $0xf] sm:$0x1] %vm7_vm0, %v125_v15   ;;  %545 = vst.msk [vmem:[%s1294_s1 + $0x4e] sm:$0x2] %vm7_vm0, %v125_v15  }
  0x9a   :  { %546 = vst.msk [vmem:[%s1294_s1 + $0x10] sm:$0x1] %vm7_vm0, %v133_v16   ;;  %547 = vst.msk [vmem:[%s1294_s1 + $0x4f] sm:$0x2] %vm7_vm0, %v133_v16  }
  0x9c   :  { %v141_v17 = vpop.permute.xlu0 %140  }
  0x9d   :  { %v149_v18 = vpop.permute.xlu1 %148   ;;  %548 = vst.msk [vmem:[%s1294_s1 + $0x11] sm:$0x1] %vm7_vm0, %v141_v17   ;;  %549 = vst.msk [vmem:[%s1294_s1 + $0x50] sm:$0x2] %vm7_vm0, %v141_v17  }
  0x9e   :  { %550 = vst.msk [vmem:[%s1294_s1 + $0x12] sm:$0x1] %vm7_vm0, %v149_v18   ;;  %551 = vst.msk [vmem:[%s1294_s1 + $0x51] sm:$0x2] %vm7_vm0, %v149_v18  }
  0xa0   :  { %v157_v19 = vpop.permute.xlu0 %156  }
  0xa1   :  { %v165_v20 = vpop.permute.xlu1 %164   ;;  %552 = vst.msk [vmem:[%s1294_s1 + $0x13] sm:$0x1] %vm7_vm0, %v157_v19   ;;  %553 = vst.msk [vmem:[%s1294_s1 + $0x52] sm:$0x2] %vm7_vm0, %v157_v19  }
  0xa2   :  { %554 = vst.msk [vmem:[%s1294_s1 + $0x14] sm:$0x1] %vm7_vm0, %v165_v20   ;;  %555 = vst.msk [vmem:[%s1294_s1 + $0x53] sm:$0x2] %vm7_vm0, %v165_v20  }
  0xa4   :  { %v173_v21 = vpop.permute.xlu0 %172  }
  0xa5   :  { %v181_v22 = vpop.permute.xlu1 %180   ;;  %556 = vst.msk [vmem:[%s1294_s1 + $0x15] sm:$0x1] %vm7_vm0, %v173_v21   ;;  %557 = vst.msk [vmem:[%s1294_s1 + $0x54] sm:$0x2] %vm7_vm0, %v173_v21  }
  0xa6   :  { %558 = vst.msk [vmem:[%s1294_s1 + $0x16] sm:$0x1] %vm7_vm0, %v181_v22   ;;  %559 = vst.msk [vmem:[%s1294_s1 + $0x55] sm:$0x2] %vm7_vm0, %v181_v22  }
  0xa8   :  { %v189_v23 = vpop.permute.xlu0 %188  }
  0xa9   :  { %v197_v24 = vpop.permute.xlu1 %196   ;;  %560 = vst.msk [vmem:[%s1294_s1 + $0x17] sm:$0x1] %vm7_vm0, %v189_v23   ;;  %561 = vst.msk [vmem:[%s1294_s1 + $0x56] sm:$0x2] %vm7_vm0, %v189_v23  }
  0xaa   :  { %562 = vst.msk [vmem:[%s1294_s1 + $0x18] sm:$0x1] %vm7_vm0, %v197_v24   ;;  %563 = vst.msk [vmem:[%s1294_s1 + $0x57] sm:$0x2] %vm7_vm0, %v197_v24  }
  0xac   :  { %v205_v25 = vpop.permute.xlu0 %204  }
  0xad   :  { %v213_v26 = vpop.permute.xlu1 %212   ;;  %564 = vst.msk [vmem:[%s1294_s1 + $0x19] sm:$0x1] %vm7_vm0, %v205_v25   ;;  %565 = vst.msk [vmem:[%s1294_s1 + $0x58] sm:$0x2] %vm7_vm0, %v205_v25  }
  0xae   :  { %566 = vst.msk [vmem:[%s1294_s1 + $0x1a] sm:$0x1] %vm7_vm0, %v213_v26   ;;  %567 = vst.msk [vmem:[%s1294_s1 + $0x59] sm:$0x2] %vm7_vm0, %v213_v26  }
  0xb0   :  { %v221_v27 = vpop.permute.xlu0 %220  }
  0xb1   :  { %v229_v28 = vpop.permute.xlu1 %228   ;;  %568 = vst.msk [vmem:[%s1294_s1 + $0x1b] sm:$0x1] %vm7_vm0, %v221_v27   ;;  %569 = vst.msk [vmem:[%s1294_s1 + $0x5a] sm:$0x2] %vm7_vm0, %v221_v27  }
  0xb2   :  { %570 = vst.msk [vmem:[%s1294_s1 + $0x1c] sm:$0x1] %vm7_vm0, %v229_v28   ;;  %571 = vst.msk [vmem:[%s1294_s1 + $0x5b] sm:$0x2] %vm7_vm0, %v229_v28  }
  0xb4   :  { %v237_v29 = vpop.permute.xlu0 %236  }
  0xb5   :  { %v245_v30 = vpop.permute.xlu1 %244   ;;  %572 = vst.msk [vmem:[%s1294_s1 + $0x1d] sm:$0x1] %vm7_vm0, %v237_v29   ;;  %573 = vst.msk [vmem:[%s1294_s1 + $0x5c] sm:$0x2] %vm7_vm0, %v237_v29  }
  0xb6   :  { %574 = vst.msk [vmem:[%s1294_s1 + $0x1e] sm:$0x1] %vm7_vm0, %v245_v30   ;;  %575 = vst.msk [vmem:[%s1294_s1 + $0x5d] sm:$0x2] %vm7_vm0, %v245_v30  }
  0xb8   :  { %v253_v31 = vpop.permute.xlu0 %252  }
  0xb9   :  { %v261_v32 = vpop.permute.xlu1 %260   ;;  %576 = vst.msk [vmem:[%s1294_s1 + $0x1f] sm:$0x1] %vm7_vm0, %v253_v31   ;;  %577 = vst.msk [vmem:[%s1294_s1 + $0x5e] sm:$0x2] %vm7_vm0, %v253_v31  }
  0xba   :  { %578 = vst.msk [vmem:[%s1294_s1 + $0x20] sm:$0x1] %vm7_vm0, %v261_v32   ;;  %579 = vst.msk [vmem:[%s1294_s1 + $0x5f] sm:$0x2] %vm7_vm0, %v261_v32  }
  0xbc   :  { %v269_v33 = vpop.permute.xlu0 %268  }
  0xbd   :  { %v277_v34 = vpop.permute.xlu1 %276   ;;  %580 = vst.msk [vmem:[%s1294_s1 + $0x21] sm:$0x1] %vm7_vm0, %v269_v33   ;;  %581 = vst.msk [vmem:[%s1294_s1 + $0x60] sm:$0x2] %vm7_vm0, %v269_v33  }
  0xbe   :  { %582 = vst.msk [vmem:[%s1294_s1 + $0x22] sm:$0x1] %vm7_vm0, %v277_v34   ;;  %583 = vst.msk [vmem:[%s1294_s1 + $0x61] sm:$0x2] %vm7_vm0, %v277_v34  }
  0xc0   :  { %v285_v35 = vpop.permute.xlu0 %284  }
  0xc1   :  { %v293_v36 = vpop.permute.xlu1 %292   ;;  %584 = vst.msk [vmem:[%s1294_s1 + $0x23] sm:$0x1] %vm7_vm0, %v285_v35   ;;  %585 = vst.msk [vmem:[%s1294_s1 + $0x62] sm:$0x2] %vm7_vm0, %v285_v35  }
  0xc2   :  { %586 = vst.msk [vmem:[%s1294_s1 + $0x24] sm:$0x1] %vm7_vm0, %v293_v36   ;;  %587 = vst.msk [vmem:[%s1294_s1 + $0x63] sm:$0x2] %vm7_vm0, %v293_v36  }
  0xc4   :  { %v301_v37 = vpop.permute.xlu0 %300  }
  0xc5   :  { %v309_v38 = vpop.permute.xlu1 %308   ;;  %588 = vst.msk [vmem:[%s1294_s1 + $0x25] sm:$0x1] %vm7_vm0, %v301_v37   ;;  %589 = vst.msk [vmem:[%s1294_s1 + $0x64] sm:$0x2] %vm7_vm0, %v301_v37  }
  0xc6   :  { %590 = vst.msk [vmem:[%s1294_s1 + $0x26] sm:$0x1] %vm7_vm0, %v309_v38   ;;  %591 = vst.msk [vmem:[%s1294_s1 + $0x65] sm:$0x2] %vm7_vm0, %v309_v38  }
  0xc8   :  { %v317_v39 = vpop.permute.xlu0 %316  }
  0xc9   :  { %v325_v40 = vpop.permute.xlu1 %324   ;;  %592 = vst.msk [vmem:[%s1294_s1 + $0x27] sm:$0x1] %vm7_vm0, %v317_v39   ;;  %593 = vst.msk [vmem:[%s1294_s1 + $0x66] sm:$0x2] %vm7_vm0, %v317_v39  }
  0xca   :  { %594 = vst.msk [vmem:[%s1294_s1 + $0x28] sm:$0x1] %vm7_vm0, %v325_v40   ;;  %595 = vst.msk [vmem:[%s1294_s1 + $0x67] sm:$0x2] %vm7_vm0, %v325_v40  }
  0xcc   :  { %v333_v41 = vpop.permute.xlu0 %332  }
  0xcd   :  { %v341_v42 = vpop.permute.xlu1 %340   ;;  %596 = vst.msk [vmem:[%s1294_s1 + $0x29] sm:$0x1] %vm7_vm0, %v333_v41   ;;  %597 = vst.msk [vmem:[%s1294_s1 + $0x68] sm:$0x2] %vm7_vm0, %v333_v41  }
  0xce   :  { %598 = vst.msk [vmem:[%s1294_s1 + $0x2a] sm:$0x1] %vm7_vm0, %v341_v42   ;;  %599 = vst.msk [vmem:[%s1294_s1 + $0x69] sm:$0x2] %vm7_vm0, %v341_v42  }
  0xd0   :  { %v349_v43 = vpop.permute.xlu0 %348  }
  0xd1   :  { %v357_v44 = vpop.permute.xlu1 %356   ;;  %600 = vst.msk [vmem:[%s1294_s1 + $0x2b] sm:$0x1] %vm7_vm0, %v349_v43   ;;  %601 = vst.msk [vmem:[%s1294_s1 + $0x6a] sm:$0x2] %vm7_vm0, %v349_v43  }
  0xd2   :  { %602 = vst.msk [vmem:[%s1294_s1 + $0x2c] sm:$0x1] %vm7_vm0, %v357_v44   ;;  %603 = vst.msk [vmem:[%s1294_s1 + $0x6b] sm:$0x2] %vm7_vm0, %v357_v44  }
  0xd4   :  { %v365_v45 = vpop.permute.xlu0 %364  }
  0xd5   :  { %v373_v46 = vpop.permute.xlu1 %372   ;;  %604 = vst.msk [vmem:[%s1294_s1 + $0x2d] sm:$0x1] %vm7_vm0, %v365_v45   ;;  %605 = vst.msk [vmem:[%s1294_s1 + $0x6c] sm:$0x2] %vm7_vm0, %v365_v45  }
  0xd6   :  { %606 = vst.msk [vmem:[%s1294_s1 + $0x2e] sm:$0x1] %vm7_vm0, %v373_v46   ;;  %607 = vst.msk [vmem:[%s1294_s1 + $0x6d] sm:$0x2] %vm7_vm0, %v373_v46  }
  0xd8   :  { %v381_v47 = vpop.permute.xlu0 %380  }
  0xd9   :  { %v389_v48 = vpop.permute.xlu1 %388   ;;  %608 = vst.msk [vmem:[%s1294_s1 + $0x2f] sm:$0x1] %vm7_vm0, %v381_v47   ;;  %609 = vst.msk [vmem:[%s1294_s1 + $0x6e] sm:$0x2] %vm7_vm0, %v381_v47  }
  0xda   :  { %610 = vst.msk [vmem:[%s1294_s1 + $0x30] sm:$0x1] %vm7_vm0, %v389_v48   ;;  %611 = vst.msk [vmem:[%s1294_s1 + $0x6f] sm:$0x2] %vm7_vm0, %v389_v48  }
  0xdc   :  { %v397_v49 = vpop.permute.xlu0 %396  }
  0xdd   :  { %v405_v50 = vpop.permute.xlu1 %404   ;;  %612 = vst.msk [vmem:[%s1294_s1 + $0x31] sm:$0x1] %vm7_vm0, %v397_v49   ;;  %613 = vst.msk [vmem:[%s1294_s1 + $0x70] sm:$0x2] %vm7_vm0, %v397_v49  }
  0xde   :  { %614 = vst.msk [vmem:[%s1294_s1 + $0x32] sm:$0x1] %vm7_vm0, %v405_v50   ;;  %615 = vst.msk [vmem:[%s1294_s1 + $0x71] sm:$0x2] %vm7_vm0, %v405_v50  }
  0xe0   :  { %v413_v51 = vpop.permute.xlu0 %412  }
  0xe1   :  { %v421_v52 = vpop.permute.xlu1 %420   ;;  %616 = vst.msk [vmem:[%s1294_s1 + $0x33] sm:$0x1] %vm7_vm0, %v413_v51   ;;  %617 = vst.msk [vmem:[%s1294_s1 + $0x72] sm:$0x2] %vm7_vm0, %v413_v51  }
  0xe2   :  { %618 = vst.msk [vmem:[%s1294_s1 + $0x34] sm:$0x1] %vm7_vm0, %v421_v52   ;;  %619 = vst.msk [vmem:[%s1294_s1 + $0x73] sm:$0x2] %vm7_vm0, %v421_v52  }
  0xe4   :  { %v429_v53 = vpop.permute.xlu0 %428  }
  0xe5   :  { %v437_v54 = vpop.permute.xlu1 %436   ;;  %620 = vst.msk [vmem:[%s1294_s1 + $0x35] sm:$0x1] %vm7_vm0, %v429_v53   ;;  %621 = vst.msk [vmem:[%s1294_s1 + $0x74] sm:$0x2] %vm7_vm0, %v429_v53  }
  0xe6   :  { %622 = vst.msk [vmem:[%s1294_s1 + $0x36] sm:$0x1] %vm7_vm0, %v437_v54   ;;  %623 = vst.msk [vmem:[%s1294_s1 + $0x75] sm:$0x2] %vm7_vm0, %v437_v54  }
  0xe8   :  { %v445_v55 = vpop.permute.xlu0 %444  }
  0xe9   :  { %v453_v56 = vpop.permute.xlu1 %452   ;;  %624 = vst.msk [vmem:[%s1294_s1 + $0x37] sm:$0x1] %vm7_vm0, %v445_v55   ;;  %625 = vst.msk [vmem:[%s1294_s1 + $0x76] sm:$0x2] %vm7_vm0, %v445_v55  }
  0xea   :  { %626 = vst.msk [vmem:[%s1294_s1 + $0x38] sm:$0x1] %vm7_vm0, %v453_v56   ;;  %627 = vst.msk [vmem:[%s1294_s1 + $0x77] sm:$0x2] %vm7_vm0, %v453_v56  }
  0xec   :  { %v461_v57 = vpop.permute.xlu0 %460  }
  0xed   :  { %v469_v58 = vpop.permute.xlu1 %468   ;;  %628 = vst.msk [vmem:[%s1294_s1 + $0x39] sm:$0x1] %vm7_vm0, %v461_v57   ;;  %629 = vst.msk [vmem:[%s1294_s1 + $0x78] sm:$0x2] %vm7_vm0, %v461_v57  }
  0xee   :  { %630 = vst.msk [vmem:[%s1294_s1 + $0x3a] sm:$0x1] %vm7_vm0, %v469_v58   ;;  %631 = vst.msk [vmem:[%s1294_s1 + $0x79] sm:$0x2] %vm7_vm0, %v469_v58  }
  0xf0   :  { %v477_v59 = vpop.permute.xlu0 %476  }
  0xf1   :  { %v485_v60 = vpop.permute.xlu1 %484   ;;  %632 = vst.msk [vmem:[%s1294_s1 + $0x3b] sm:$0x1] %vm7_vm0, %v477_v59   ;;  %633 = vst.msk [vmem:[%s1294_s1 + $0x7a] sm:$0x2] %vm7_vm0, %v477_v59  }
  0xf2   :  { %634 = vst.msk [vmem:[%s1294_s1 + $0x3c] sm:$0x1] %vm7_vm0, %v485_v60   ;;  %635 = vst.msk [vmem:[%s1294_s1 + $0x7b] sm:$0x2] %vm7_vm0, %v485_v60  }
  0xf4   :  { %v493_v61 = vpop.permute.xlu0 %492  }
  0xf5   :  { %v501_v62 = vpop.permute.xlu1 %500   ;;  %636 = vst.msk [vmem:[%s1294_s1 + $0x3d] sm:$0x1] %vm7_vm0, %v493_v61   ;;  %637 = vst.msk [vmem:[%s1294_s1 + $0x7c] sm:$0x2] %vm7_vm0, %v493_v61  }
  0xf6   :  { %638 = vst.msk [vmem:[%s1294_s1 + $0x3e] sm:$0x1] %vm7_vm0, %v501_v62   ;;  %639 = vst.msk [vmem:[%s1294_s1 + $0x7d] sm:$0x2] %vm7_vm0, %v501_v62  }
  0xf8   :  { %v509_v63 = vpop.permute.xlu0 %508  }
  0xf9   :  { %640 = vst.msk [vmem:[%s1294_s1 + $0x3f] sm:$0x1] %vm7_vm0, %v509_v63   ;;  %641 = vst.msk [vmem:[%s1294_s1 + $0x7e] sm:$0x2] %vm7_vm0, %v509_v63  }

// kernel: squeeze.16
= control target key start
LH: loop header
LB: loop body
LE: loop exit
PB: predicated region body
PF: predicated region fallthrough
CT: control target
= control target key end

     0   :  { %s546_s8 = smov 116   ;;  %s547_s9 = smov 120   ;;  %vm7_vm0 = vcmask 31744   ;;  %s1101_s0 = inlined_call_operand.vmem [shape: f32[512], index: 0, kind: input, shape index: {}]   ;;  %s1102_s1 = inlined_call_operand.vmem [shape: f32[128,4], index: 1, kind: output, shape index: {}]  }
   0x1   :  { %v4_v0 = vld [vmem:[%s1101_s0] sm:$0xf]  ;;  %s545_s0 = smov 124   ;;  %s548_s10 = smov 112  }
   0x2   :  { %5 = vst [vmem:[#allocation0] sm:$0xf] %v4_v0  ;;  %s549_s11 = smov 108   ;;  %s550_s12 = smov 104  }
   0x3   :  { %s551_s13 = smov 100   ;;  %s552_s14 = smov 96  }
   0x4   :  { %s553_s15 = smov 92   ;;  %s554_s16 = smov 88  }
   0x5   :  { %s555_s17 = smov 84   ;;  %s556_s18 = smov 80  }
   0x6   :  { %s557_s19 = smov 76   ;;  %s558_s20 = smov 72  }
   0x7   :  { %s559_s21 = smov 68   ;;  %s560_s22 = smov 64  }
   0x8   :  { %s561_s23 = smov 60   ;;  %s562_s24 = smov 56  }
   0x9   :  { %v15_v1 = vld [vmem:[#allocation0] sm:$0xf]   ;;  %s563_s25 = smov 52   ;;  %s564_s26 = smov 48  }
   0xa   :  { %v39_v2 = vld [vmem:[#allocation0] sm:$0xf]   ;;  %16 = vrot.lane.b32.xlu0 %v15_v1, %s545_s0  ;;  %s565_s27 = smov 44   ;;  %s566_s28 = smov 40  }
   0xb   :  { %40 = vrot.lane.b32.xlu1 %v39_v2, %s546_s8  ;;  %v27_v3 = vld [vmem:[#allocation0] sm:$0xf]   ;;  %s567_s29 = smov 36   ;;  %s568_s30 = smov 32  }
   0xc   :  { %v51_v4 = vld [vmem:[#allocation0] sm:$0xf]  }
   0xd   :  { %v63_v5 = vld [vmem:[#allocation0] sm:$0xf]  }
   0xe   :  { %28 = vrot.lane.b32.xlu0 %v27_v3, %s547_s9  ;;  %v75_v6 = vld [vmem:[#allocation0] sm:$0xf]   ;;  %s569_s9 = smov 28  }
   0xf   :  { %52 = vrot.lane.b32.xlu1 %v51_v4, %s548_s10  ;;  %v87_v7 = vld [vmem:[#allocation0] sm:$0xf]   ;;  %s570_s10 = smov 24  }
  0x10   :  { %v99_v8 = vld [vmem:[#allocation0] sm:$0xf]  }
  0x11   :  { %v111_v9 = vld [vmem:[#allocation0] sm:$0xf]  }
  0x12   :  { %64 = vrot.lane.b32.xlu0 %v63_v5, %s549_s11  ;;  %v123_v10 = vld [vmem:[#allocation0] sm:$0xf]   ;;  %s571_s11 = smov 20  }
  0x13   :  { %76 = vrot.lane.b32.xlu1 %v75_v6, %s550_s12  ;;  %v135_v11 = vld [vmem:[#allocation0] sm:$0xf]   ;;  %s572_s12 = smov 16  }
  0x14   :  { %v147_v12 = vld [vmem:[#allocation0] sm:$0xf]  }
  0x15   :  { %v159_v13 = vld [vmem:[#allocation0] sm:$0xf]  }
  0x16   :  { %88 = vrot.lane.b32.xlu0 %v87_v7, %s551_s13  ;;  %v171_v14 = vld [vmem:[#allocation0] sm:$0xf]   ;;  %s573_s13 = smov 12  }
  0x17   :  { %100 = vrot.lane.b32.xlu1 %v99_v8, %s552_s14  ;;  %v183_v15 = vld [vmem:[#allocation0] sm:$0xf]   ;;  %s574_s14 = smov 8  }
  0x18   :  { %v195_v16 = vld [vmem:[#allocation0] sm:$0xf]  }
  0x19   :  { %v207_v17 = vld [vmem:[#allocation0] sm:$0xf]  }
  0x1a   :  { %112 = vrot.lane.b32.xlu0 %v111_v9, %s553_s15  ;;  %v219_v18 = vld [vmem:[#allocation0] sm:$0xf]   ;;  %s575_s15 = smov 4  }
  0x1b   :  { %124 = vrot.lane.b32.xlu1 %v123_v10, %s554_s16  ;;  %v231_v19 = vld [vmem:[#allocation0] sm:$0xf]  }
  0x1c   :  { %v243_v20 = vld [vmem:[#allocation0] sm:$0xf]  }
  0x1d   :  { %v255_v21 = vld [vmem:[#allocation0] sm:$0xf]  }
  0x1e   :  { %136 = vrot.lane.b32.xlu0 %v135_v11, %s555_s17  ;;  %v267_v22 = vld [vmem:[#allocation0] sm:$0xf]  }
  0x1f   :  { %148 = vrot.lane.b32.xlu1 %v147_v12, %s556_s18  ;;  %v279_v23 = vld [vmem:[#allocation0] sm:$0xf]  }
  0x20   :  { %v291_v24 = vld [vmem:[#allocation0] sm:$0xf]  }
  0x21   :  { %v303_v25 = vld [vmem:[#allocation0] sm:$0xf]  }
  0x22   :  { %160 = vrot.lane.b32.xlu0 %v159_v13, %s557_s19  ;;  %v315_v26 = vld [vmem:[#allocation0] sm:$0xf]  }
  0x23   :  { %172 = vrot.lane.b32.xlu1 %v171_v14, %s558_s20  ;;  %v6_v27 = vld [vmem:[#allocation0] sm:$0xf]  }
  0x24   :  { %8 = vst.msk [vmem:[%s1102_s1] sm:$0x1] %vm7_vm0, %v6_v27   ;;  %387 = vst.msk [vmem:[%s1102_s1 + $0x1f] sm:$0x2] %vm7_vm0, %v6_v27   ;;  %v327_v28 = vld [vmem:[#allocation0] sm:$0xf]  }
  0x25   :  { %388 = vst.msk [vmem:[%s1102_s1 + $0x3e] sm:$0x4] %vm7_vm0, %v6_v27   ;;  %389 = vst.msk [vmem:[%s1102_s1 + $0x5d] sm:$0x8] %vm7_vm0, %v6_v27   ;;  %v339_v29 = vld [vmem:[#allocation0] sm:$0xf]  }
  0x26   :  { %184 = vrot.lane.b32.xlu0 %v183_v15, %s559_s21  ;;  %v351_v30 = vld [vmem:[#allocation0] sm:$0xf]  }
  0x27   :  { %196 = vrot.lane.b32.xlu1 %v195_v16, %s560_s22  ;;  %v363_v31 = vld [vmem:[#allocation0] sm:$0xf]  }
  0x28   :  { %v375_v32 = vld [vmem:[#allocation0] sm:$0xf]  }
  0x2a   :  { %208 = vrot.lane.b32.xlu0 %v207_v17, %s561_s23 }
  0x2b   :  { %220 = vrot.lane.b32.xlu1 %v219_v18, %s562_s24 }
  0x2e   :  { %232 = vrot.lane.b32.xlu0 %v231_v19, %s563_s25 }
  0x2f   :  { %244 = vrot.lane.b32.xlu1 %v243_v20, %s564_s26 }
  0x32   :  { %256 = vrot.lane.b32.xlu0 %v255_v21, %s565_s27 }
  0x33   :  { %268 = vrot.lane.b32.xlu1 %v267_v22, %s566_s28 }
  0x36   :  { %280 = vrot.lane.b32.xlu0 %v279_v23, %s567_s29 }
  0x37   :  { %292 = vrot.lane.b32.xlu1 %v291_v24, %s568_s30 }
  0x3a   :  { %304 = vrot.lane.b32.xlu0 %v303_v25, %s569_s9 }
  0x3b   :  { %316 = vrot.lane.b32.xlu1 %v315_v26, %s570_s10 }
  0x3e   :  { %328 = vrot.lane.b32.xlu0 %v327_v28, %s571_s11 }
  0x3f   :  { %340 = vrot.lane.b32.xlu1 %v339_v29, %s572_s12 }
  0x42   :  { %352 = vrot.lane.b32.xlu0 %v351_v30, %s573_s13 }
  0x43   :  { %364 = vrot.lane.b32.xlu1 %v363_v31, %s574_s14 }
  0x46   :  { %376 = vrot.lane.b32.xlu0 %v375_v32, %s575_s15 }
  0x7c   :  { %v17_v33 = vpop.permute.xlu0 %16  }
  0x7d   :  { %v41_v34 = vpop.permute.xlu1 %40   ;;  %390 = vst.msk [vmem:[%s1102_s1 + $0x1] sm:$0x1] %vm7_vm0, %v17_v33   ;;  %391 = vst.msk [vmem:[%s1102_s1 + $0x20] sm:$0x2] %vm7_vm0, %v17_v33  }
  0x7e   :  { %392 = vst.msk [vmem:[%s1102_s1 + $0x3f] sm:$0x4] %vm7_vm0, %v17_v33   ;;  %393 = vst.msk [vmem:[%s1102_s1 + $0x5e] sm:$0x8] %vm7_vm0, %v17_v33  }
  0x7f   :  { %398 = vst.msk [vmem:[%s1102_s1 + $0x3] sm:$0x1] %vm7_vm0, %v41_v34   ;;  %399 = vst.msk [vmem:[%s1102_s1 + $0x22] sm:$0x2] %vm7_vm0, %v41_v34  }
  0x80   :  { %400 = vst.msk [vmem:[%s1102_s1 + $0x41] sm:$0x4] %vm7_vm0, %v41_v34   ;;  %401 = vst.msk [vmem:[%s1102_s1 + $0x60] sm:$0x8] %vm7_vm0, %v41_v34   ;;  %v29_v35 = vpop.permute.xlu0 %28  }
  0x81   :  { %v53_v36 = vpop.permute.xlu1 %52   ;;  %394 = vst.msk [vmem:[%s1102_s1 + $0x2] sm:$0x1] %vm7_vm0, %v29_v35   ;;  %395 = vst.msk [vmem:[%s1102_s1 + $0x21] sm:$0x2] %vm7_vm0, %v29_v35  }
  0x82   :  { %396 = vst.msk [vmem:[%s1102_s1 + $0x40] sm:$0x4] %vm7_vm0, %v29_v35   ;;  %397 = vst.msk [vmem:[%s1102_s1 + $0x5f] sm:$0x8] %vm7_vm0, %v29_v35  }
  0x83   :  { %402 = vst.msk [vmem:[%s1102_s1 + $0x4] sm:$0x1] %vm7_vm0, %v53_v36   ;;  %403 = vst.msk [vmem:[%s1102_s1 + $0x23] sm:$0x2] %vm7_vm0, %v53_v36  }
  0x84   :  { %404 = vst.msk [vmem:[%s1102_s1 + $0x42] sm:$0x4] %vm7_vm0, %v53_v36   ;;  %405 = vst.msk [vmem:[%s1102_s1 + $0x61] sm:$0x8] %vm7_vm0, %v53_v36   ;;  %v65_v37 = vpop.permute.xlu0 %64  }
  0x85   :  { %v77_v38 = vpop.permute.xlu1 %76   ;;  %406 = vst.msk [vmem:[%s1102_s1 + $0x5] sm:$0x1] %vm7_vm0, %v65_v37   ;;  %407 = vst.msk [vmem:[%s1102_s1 + $0x24] sm:$0x2] %vm7_vm0, %v65_v37  }
  0x86   :  { %408 = vst.msk [vmem:[%s1102_s1 + $0x43] sm:$0x4] %vm7_vm0, %v65_v37   ;;  %409 = vst.msk [vmem:[%s1102_s1 + $0x62] sm:$0x8] %vm7_vm0, %v65_v37  }
  0x87   :  { %410 = vst.msk [vmem:[%s1102_s1 + $0x6] sm:$0x1] %vm7_vm0, %v77_v38   ;;  %411 = vst.msk [vmem:[%s1102_s1 + $0x25] sm:$0x2] %vm7_vm0, %v77_v38  }
  0x88   :  { %412 = vst.msk [vmem:[%s1102_s1 + $0x44] sm:$0x4] %vm7_vm0, %v77_v38   ;;  %413 = vst.msk [vmem:[%s1102_s1 + $0x63] sm:$0x8] %vm7_vm0, %v77_v38   ;;  %v89_v39 = vpop.permute.xlu0 %88  }
  0x89   :  { %v101_v40 = vpop.permute.xlu1 %100   ;;  %414 = vst.msk [vmem:[%s1102_s1 + $0x7] sm:$0x1] %vm7_vm0, %v89_v39   ;;  %415 = vst.msk [vmem:[%s1102_s1 + $0x26] sm:$0x2] %vm7_vm0, %v89_v39  }
  0x8a   :  { %416 = vst.msk [vmem:[%s1102_s1 + $0x45] sm:$0x4] %vm7_vm0, %v89_v39   ;;  %417 = vst.msk [vmem:[%s1102_s1 + $0x64] sm:$0x8] %vm7_vm0, %v89_v39  }
  0x8b   :  { %418 = vst.msk [vmem:[%s1102_s1 + $0x8] sm:$0x1] %vm7_vm0, %v101_v40   ;;  %419 = vst.msk [vmem:[%s1102_s1 + $0x27] sm:$0x2] %vm7_vm0, %v101_v40  }
  0x8c   :  { %420 = vst.msk [vmem:[%s1102_s1 + $0x46] sm:$0x4] %vm7_vm0, %v101_v40   ;;  %421 = vst.msk [vmem:[%s1102_s1 + $0x65] sm:$0x8] %vm7_vm0, %v101_v40   ;;  %v113_v41 = vpop.permute.xlu0 %112  }
  0x8d   :  { %v125_v42 = vpop.permute.xlu1 %124   ;;  %422 = vst.msk [vmem:[%s1102_s1 + $0x9] sm:$0x1] %vm7_vm0, %v113_v41   ;;  %423 = vst.msk [vmem:[%s1102_s1 + $0x28] sm:$0x2] %vm7_vm0, %v113_v41  }
  0x8e   :  { %424 = vst.msk [vmem:[%s1102_s1 + $0x47] sm:$0x4] %vm7_vm0, %v113_v41   ;;  %425 = vst.msk [vmem:[%s1102_s1 + $0x66] sm:$0x8] %vm7_vm0, %v113_v41  }
  0x8f   :  { %426 = vst.msk [vmem:[%s1102_s1 + $0xa] sm:$0x1] %vm7_vm0, %v125_v42   ;;  %427 = vst.msk [vmem:[%s1102_s1 + $0x29] sm:$0x2] %vm7_vm0, %v125_v42  }
  0x90   :  { %428 = vst.msk [vmem:[%s1102_s1 + $0x48] sm:$0x4] %vm7_vm0, %v125_v42   ;;  %429 = vst.msk [vmem:[%s1102_s1 + $0x67] sm:$0x8] %vm7_vm0, %v125_v42   ;;  %v137_v43 = vpop.permute.xlu0 %136  }
  0x91   :  { %v149_v44 = vpop.permute.xlu1 %148   ;;  %430 = vst.msk [vmem:[%s1102_s1 + $0xb] sm:$0x1] %vm7_vm0, %v137_v43   ;;  %431 = vst.msk [vmem:[%s1102_s1 + $0x2a] sm:$0x2] %vm7_vm0, %v137_v43  }
  0x92   :  { %432 = vst.msk [vmem:[%s1102_s1 + $0x49] sm:$0x4] %vm7_vm0, %v137_v43   ;;  %433 = vst.msk [vmem:[%s1102_s1 + $0x68] sm:$0x8] %vm7_vm0, %v137_v43  }
  0x93   :  { %434 = vst.msk [vmem:[%s1102_s1 + $0xc] sm:$0x1] %vm7_vm0, %v149_v44   ;;  %435 = vst.msk [vmem:[%s1102_s1 + $0x2b] sm:$0x2] %vm7_vm0, %v149_v44  }
  0x94   :  { %436 = vst.msk [vmem:[%s1102_s1 + $0x4a] sm:$0x4] %vm7_vm0, %v149_v44   ;;  %437 = vst.msk [vmem:[%s1102_s1 + $0x69] sm:$0x8] %vm7_vm0, %v149_v44   ;;  %v161_v45 = vpop.permute.xlu0 %160  }
  0x95   :  { %v173_v46 = vpop.permute.xlu1 %172   ;;  %438 = vst.msk [vmem:[%s1102_s1 + $0xd] sm:$0x1] %vm7_vm0, %v161_v45   ;;  %439 = vst.msk [vmem:[%s1102_s1 + $0x2c] sm:$0x2] %vm7_vm0, %v161_v45  }
  0x96   :  { %440 = vst.msk [vmem:[%s1102_s1 + $0x4b] sm:$0x4] %vm7_vm0, %v161_v45   ;;  %441 = vst.msk [vmem:[%s1102_s1 + $0x6a] sm:$0x8] %vm7_vm0, %v161_v45  }
  0x97   :  { %442 = vst.msk [vmem:[%s1102_s1 + $0xe] sm:$0x1] %vm7_vm0, %v173_v46   ;;  %443 = vst.msk [vmem:[%s1102_s1 + $0x2d] sm:$0x2] %vm7_vm0, %v173_v46  }
  0x98   :  { %444 = vst.msk [vmem:[%s1102_s1 + $0x4c] sm:$0x4] %vm7_vm0, %v173_v46   ;;  %445 = vst.msk [vmem:[%s1102_s1 + $0x6b] sm:$0x8] %vm7_vm0, %v173_v46   ;;  %v185_v47 = vpop.permute.xlu0 %184  }
  0x99   :  { %v197_v48 = vpop.permute.xlu1 %196   ;;  %446 = vst.msk [vmem:[%s1102_s1 + $0xf] sm:$0x1] %vm7_vm0, %v185_v47   ;;  %447 = vst.msk [vmem:[%s1102_s1 + $0x2e] sm:$0x2] %vm7_vm0, %v185_v47  }
  0x9a   :  { %448 = vst.msk [vmem:[%s1102_s1 + $0x4d] sm:$0x4] %vm7_vm0, %v185_v47   ;;  %449 = vst.msk [vmem:[%s1102_s1 + $0x6c] sm:$0x8] %vm7_vm0, %v185_v47  }
  0x9b   :  { %450 = vst.msk [vmem:[%s1102_s1 + $0x10] sm:$0x1] %vm7_vm0, %v197_v48   ;;  %451 = vst.msk [vmem:[%s1102_s1 + $0x2f] sm:$0x2] %vm7_vm0, %v197_v48  }
  0x9c   :  { %452 = vst.msk [vmem:[%s1102_s1 + $0x4e] sm:$0x4] %vm7_vm0, %v197_v48   ;;  %453 = vst.msk [vmem:[%s1102_s1 + $0x6d] sm:$0x8] %vm7_vm0, %v197_v48   ;;  %v209_v49 = vpop.permute.xlu0 %208  }
  0x9d   :  { %v221_v50 = vpop.permute.xlu1 %220   ;;  %454 = vst.msk [vmem:[%s1102_s1 + $0x11] sm:$0x1] %vm7_vm0, %v209_v49   ;;  %455 = vst.msk [vmem:[%s1102_s1 + $0x30] sm:$0x2] %vm7_vm0, %v209_v49  }
  0x9e   :  { %456 = vst.msk [vmem:[%s1102_s1 + $0x4f] sm:$0x4] %vm7_vm0, %v209_v49   ;;  %457 = vst.msk [vmem:[%s1102_s1 + $0x6e] sm:$0x8] %vm7_vm0, %v209_v49  }
  0x9f   :  { %458 = vst.msk [vmem:[%s1102_s1 + $0x12] sm:$0x1] %vm7_vm0, %v221_v50   ;;  %459 = vst.msk [vmem:[%s1102_s1 + $0x31] sm:$0x2] %vm7_vm0, %v221_v50  }
  0xa0   :  { %460 = vst.msk [vmem:[%s1102_s1 + $0x50] sm:$0x4] %vm7_vm0, %v221_v50   ;;  %461 = vst.msk [vmem:[%s1102_s1 + $0x6f] sm:$0x8] %vm7_vm0, %v221_v50   ;;  %v233_v51 = vpop.permute.xlu0 %232  }
  0xa1   :  { %v245_v52 = vpop.permute.xlu1 %244   ;;  %462 = vst.msk [vmem:[%s1102_s1 + $0x13] sm:$0x1] %vm7_vm0, %v233_v51   ;;  %463 = vst.msk [vmem:[%s1102_s1 + $0x32] sm:$0x2] %vm7_vm0, %v233_v51  }
  0xa2   :  { %464 = vst.msk [vmem:[%s1102_s1 + $0x51] sm:$0x4] %vm7_vm0, %v233_v51   ;;  %465 = vst.msk [vmem:[%s1102_s1 + $0x70] sm:$0x8] %vm7_vm0, %v233_v51  }
  0xa3   :  { %466 = vst.msk [vmem:[%s1102_s1 + $0x14] sm:$0x1] %vm7_vm0, %v245_v52   ;;  %467 = vst.msk [vmem:[%s1102_s1 + $0x33] sm:$0x2] %vm7_vm0, %v245_v52  }
  0xa4   :  { %468 = vst.msk [vmem:[%s1102_s1 + $0x52] sm:$0x4] %vm7_vm0, %v245_v52   ;;  %469 = vst.msk [vmem:[%s1102_s1 + $0x71] sm:$0x8] %vm7_vm0, %v245_v52   ;;  %v257_v53 = vpop.permute.xlu0 %256  }
  0xa5   :  { %v269_v54 = vpop.permute.xlu1 %268   ;;  %470 = vst.msk [vmem:[%s1102_s1 + $0x15] sm:$0x1] %vm7_vm0, %v257_v53   ;;  %471 = vst.msk [vmem:[%s1102_s1 + $0x34] sm:$0x2] %vm7_vm0, %v257_v53  }
  0xa6   :  { %472 = vst.msk [vmem:[%s1102_s1 + $0x53] sm:$0x4] %vm7_vm0, %v257_v53   ;;  %473 = vst.msk [vmem:[%s1102_s1 + $0x72] sm:$0x8] %vm7_vm0, %v257_v53  }
  0xa7   :  { %474 = vst.msk [vmem:[%s1102_s1 + $0x16] sm:$0x1] %vm7_vm0, %v269_v54   ;;  %475 = vst.msk [vmem:[%s1102_s1 + $0x35] sm:$0x2] %vm7_vm0, %v269_v54  }
  0xa8   :  { %476 = vst.msk [vmem:[%s1102_s1 + $0x54] sm:$0x4] %vm7_vm0, %v269_v54   ;;  %477 = vst.msk [vmem:[%s1102_s1 + $0x73] sm:$0x8] %vm7_vm0, %v269_v54   ;;  %v281_v55 = vpop.permute.xlu0 %280  }
  0xa9   :  { %v293_v56 = vpop.permute.xlu1 %292   ;;  %478 = vst.msk [vmem:[%s1102_s1 + $0x17] sm:$0x1] %vm7_vm0, %v281_v55   ;;  %479 = vst.msk [vmem:[%s1102_s1 + $0x36] sm:$0x2] %vm7_vm0, %v281_v55  }
  0xaa   :  { %480 = vst.msk [vmem:[%s1102_s1 + $0x55] sm:$0x4] %vm7_vm0, %v281_v55   ;;  %481 = vst.msk [vmem:[%s1102_s1 + $0x74] sm:$0x8] %vm7_vm0, %v281_v55  }
  0xab   :  { %482 = vst.msk [vmem:[%s1102_s1 + $0x18] sm:$0x1] %vm7_vm0, %v293_v56   ;;  %483 = vst.msk [vmem:[%s1102_s1 + $0x37] sm:$0x2] %vm7_vm0, %v293_v56  }
  0xac   :  { %484 = vst.msk [vmem:[%s1102_s1 + $0x56] sm:$0x4] %vm7_vm0, %v293_v56   ;;  %485 = vst.msk [vmem:[%s1102_s1 + $0x75] sm:$0x8] %vm7_vm0, %v293_v56   ;;  %v305_v57 = vpop.permute.xlu0 %304  }
  0xad   :  { %v317_v58 = vpop.permute.xlu1 %316   ;;  %486 = vst.msk [vmem:[%s1102_s1 + $0x19] sm:$0x1] %vm7_vm0, %v305_v57   ;;  %487 = vst.msk [vmem:[%s1102_s1 + $0x38] sm:$0x2] %vm7_vm0, %v305_v57  }
  0xae   :  { %488 = vst.msk [vmem:[%s1102_s1 + $0x57] sm:$0x4] %vm7_vm0, %v305_v57   ;;  %489 = vst.msk [vmem:[%s1102_s1 + $0x76] sm:$0x8] %vm7_vm0, %v305_v57  }
  0xaf   :  { %490 = vst.msk [vmem:[%s1102_s1 + $0x1a] sm:$0x1] %vm7_vm0, %v317_v58   ;;  %491 = vst.msk [vmem:[%s1102_s1 + $0x39] sm:$0x2] %vm7_vm0, %v317_v58  }
  0xb0   :  { %492 = vst.msk [vmem:[%s1102_s1 + $0x58] sm:$0x4] %vm7_vm0, %v317_v58   ;;  %493 = vst.msk [vmem:[%s1102_s1 + $0x77] sm:$0x8] %vm7_vm0, %v317_v58   ;;  %v329_v59 = vpop.permute.xlu0 %328  }
  0xb1   :  { %v341_v60 = vpop.permute.xlu1 %340   ;;  %494 = vst.msk [vmem:[%s1102_s1 + $0x1b] sm:$0x1] %vm7_vm0, %v329_v59   ;;  %495 = vst.msk [vmem:[%s1102_s1 + $0x3a] sm:$0x2] %vm7_vm0, %v329_v59  }
  0xb2   :  { %496 = vst.msk [vmem:[%s1102_s1 + $0x59] sm:$0x4] %vm7_vm0, %v329_v59   ;;  %497 = vst.msk [vmem:[%s1102_s1 + $0x78] sm:$0x8] %vm7_vm0, %v329_v59  }
  0xb3   :  { %498 = vst.msk [vmem:[%s1102_s1 + $0x1c] sm:$0x1] %vm7_vm0, %v341_v60   ;;  %499 = vst.msk [vmem:[%s1102_s1 + $0x3b] sm:$0x2] %vm7_vm0, %v341_v60  }
  0xb4   :  { %500 = vst.msk [vmem:[%s1102_s1 + $0x5a] sm:$0x4] %vm7_vm0, %v341_v60   ;;  %501 = vst.msk [vmem:[%s1102_s1 + $0x79] sm:$0x8] %vm7_vm0, %v341_v60   ;;  %v353_v61 = vpop.permute.xlu0 %352  }
  0xb5   :  { %v365_v62 = vpop.permute.xlu1 %364   ;;  %502 = vst.msk [vmem:[%s1102_s1 + $0x1d] sm:$0x1] %vm7_vm0, %v353_v61   ;;  %503 = vst.msk [vmem:[%s1102_s1 + $0x3c] sm:$0x2] %vm7_vm0, %v353_v61  }
  0xb6   :  { %504 = vst.msk [vmem:[%s1102_s1 + $0x5b] sm:$0x4] %vm7_vm0, %v353_v61   ;;  %505 = vst.msk [vmem:[%s1102_s1 + $0x7a] sm:$0x8] %vm7_vm0, %v353_v61  }
  0xb7   :  { %506 = vst.msk [vmem:[%s1102_s1 + $0x1e] sm:$0x1] %vm7_vm0, %v365_v62   ;;  %507 = vst.msk [vmem:[%s1102_s1 + $0x3d] sm:$0x2] %vm7_vm0, %v365_v62  }
  0xb8   :  { %508 = vst.msk [vmem:[%s1102_s1 + $0x5c] sm:$0x4] %vm7_vm0, %v365_v62   ;;  %509 = vst.msk [vmem:[%s1102_s1 + $0x7b] sm:$0x8] %vm7_vm0, %v365_v62   ;;  %v377_v63 = vpop.permute.xlu0 %376  }
  0xb9   :  { %510 = vst.msk [vmem:[%s1102_s1 + $0x1f] sm:$0x1] %vm7_vm0, %v377_v63   ;;  %511 = vst.msk [vmem:[%s1102_s1 + $0x3e] sm:$0x2] %vm7_vm0, %v377_v63  }
  0xba   :  { %512 = vst.msk [vmem:[%s1102_s1 + $0x5d] sm:$0x4] %vm7_vm0, %v377_v63   ;;  %513 = vst.msk [vmem:[%s1102_s1 + $0x7c] sm:$0x8] %vm7_vm0, %v377_v63  }

// kernel: _forward_impl.4
= control target key start
LH: loop header
LB: loop body
LE: loop exit
PB: predicated region body
PF: predicated region fallthrough
CT: control target
= control target key end

     0   :  { %s2260_s21 = smov 0   ;;  %s2606_s0 = inlined_call_operand.vmem [shape: f32[2,32,80], index: 0, kind: input, shape index: {}]   ;;  %s2607_s1 = inlined_call_operand.vmem [shape: f32[3,32,32], index: 1, kind: input, shape index: {}]   ;;  %s2608_s2 = inlined_call_operand.vmem [shape: f32[3,80,64], index: 2, kind: input, shape index: {}]   ;;  %s2609_s3 = inlined_call_operand.vmem [shape: f32[1,64], index: 3, kind: input, shape index: {}]   ;;  %s2610_s4 = inlined_call_operand.vmem [shape: f32[1,64], index: 4, kind: input, shape index: {}]   ;;  %s2611_s5 = inlined_call_operand.vmem [shape: f32[3,64,64], index: 5, kind: input, shape index: {}]   ;;  %s2612_s6 = inlined_call_operand.vmem [shape: f32[2,32,64], index: 6, kind: output, shape index: {}]  }
   0x1 LB: > { %s1568_s22 = sadd.s32 4294967295, %s2223_s21   ;;  %p1572_p0 = scmp.ge.s32.totalorder %s2223_s21, 1  ;;  %s2223_s21 = sphi %s2260_s21, %s16_s21  }
   0x2   : > { %p212_p1 = scmp.lt.s32.totalorder %s2223_s21, 3 }
   0x4   : > { %p213_p2 = pnand %p1572_p0, %p212_p1 }
   0x5   : > { %p242_p3 = scmp.lt.s32.totalorder (!%p213_p2), %s1568_s22, 1  ;;  %v256_v0 = vld [vmem:[%s2607_s1] sm:$0xff] (!%p213_p2)  ;;  %vm260_vm0 = vcmask (!%p213_p2), 261120   ;;  %v2290_v8 = vld [vmem:[%s2607_s1 + $0x8] sm:$0xff] (!%p213_p2)  ;;  %v2300_v10 = vld [vmem:[%s2607_s1 + $0x10] sm:$0xff] (!%p213_p2)  ;;  %vm481_vm1 = vcmask (!%p213_p2), 654336  }
   0x6   : > { %216 = sbr.rel (%p213_p2) target bundleno = 1211 (0x4bb), region = 44  ;;  %1809 = vmatprep.mubr.msk.f32.mxu0 (!%p213_p2), %vm260_vm0, %v256_v0  ;;  %v2277_v1 = vld [vmem:[%s2607_s1 + $0x40] sm:$0xff] (!%p213_p2)  ;;  %v2295_v9 = vld [vmem:[%s2607_s1 + $0x48] sm:$0xff] (!%p213_p2)  ;;  %v2305_v11 = vld [vmem:[%s2607_s1 + $0x50] sm:$0xff] (!%p213_p2)  ;;  %vm1119_vm2 = vcmask (!%p213_p2), 523264  }
   0x7   : > { %1889 = vmatprep.mubr.msk.f32.mxu1 (!%p213_p2), %vm260_vm0, %v2277_v1  ;;  %v1589_v12 = vld [vmem:[%s2608_s2 + $0x50] sm:$0xff] (!%p213_p2)  ;;  %v1590_v13 = vld [vmem:[%s2608_s2 + $0x58] sm:$0xff] (!%p213_p2)  ;;  %v2332_v16 = vld [vmem:[%s2607_s1 + $0x20] sm:$0xff] (!%p213_p2) }
   0x8   : > { %v2322_v14 = vld [vmem:[%s2607_s1 + $0x18] sm:$0xff] (!%p213_p2)  ;;  %v2045_v17 = vpack.c.bf16 (!%p213_p2), %v1590_v13, %v1589_v12  ;;  %v1591_v18 = vld [vmem:[%s2608_s2 + $0x60] sm:$0xff] (!%p213_p2)  ;;  %v1592_v19 = vld [vmem:[%s2608_s2 + $0x68] sm:$0xff] (!%p213_p2) }
   0x9   : > { %v2327_v15 = vld [vmem:[%s2607_s1 + $0x58] sm:$0xff] (!%p213_p2)  ;;  %v2351_v20 = vld [vmem:[%s2607_s1 + $0x28] sm:$0xff] (!%p213_p2)  ;;  %v2356_v21 = vld [vmem:[%s2607_s1 + $0x30] sm:$0xff] (!%p213_p2)  ;;  %v2049_v22 = vpack.c.bf16 (!%p213_p2), %v1592_v19, %v1591_v18 }
   0xa   : > { %v1593_v23 = vld [vmem:[%s2608_s2 + $0x70] sm:$0xff] (!%p213_p2)  ;;  %v1594_v24 = vld [vmem:[%s2608_s2 + $0x78] sm:$0xff] (!%p213_p2)  ;;  %v1595_v27 = vld [vmem:[%s2608_s2 + $0x80] sm:$0xff] (!%p213_p2) }
   0xb   : > { %v2372_v25 = vld [vmem:[%s2607_s1 + $0x38] sm:$0xff] (!%p213_p2)  ;;  %v2053_v26 = vpack.c.bf16 (!%p213_p2), %v1594_v24, %v1593_v23  ;;  %v1596_v28 = vld [vmem:[%s2608_s2 + $0x88] sm:$0xff] (!%p213_p2)  ;;  %v1597_v30 = vld [vmem:[%s2608_s2 + $0x90] sm:$0xff] (!%p213_p2) }
   0xc   : > { %v2057_v29 = vpack.c.bf16 (!%p213_p2), %v1596_v28, %v1595_v27  ;;  %v1598_v31 = vld [vmem:[%s2608_s2 + $0x98] sm:$0xff] (!%p213_p2)  ;;  %v358_v33 = vld [vmem:[%s2608_s2] sm:$0xff] (!%p213_p2)  ;;  %v359_v34 = vld [vmem:[%s2608_s2 + $0x8] sm:$0xff] (!%p213_p2) }
   0xd   : > { %s2614_s22 = smov (!%p242_p3, %s1568_s22), 1  ;;  %v2061_v32 = vpack.c.bf16 %v1598_v31, %v1597_v30  ;;  %v2065_v35 = vpack.c.bf16 %v359_v34, %v358_v33  ;;  %v360_v44 = vld [vmem:[%s2608_s2 + $0x10] sm:$0xff]  ;;  %v361_v45 = vld [vmem:[%s2608_s2 + $0x18] sm:$0xff]  ;;  %v362_v49 = vld [vmem:[%s2608_s2 + $0x20] sm:$0xff] }
   0xe   : > { %s1673_s27 = sshll.u32 %s2614_s22, 5  ;;  %v2069_v48 = vpack.c.bf16 %v361_v45, %v360_v44  ;;  %v363_v50 = vld [vmem:[%s2608_s2 + $0x28] sm:$0xff]  ;;  %v364_v54 = vld [vmem:[%s2608_s2 + $0x30] sm:$0xff]  ;;  %v365_v55 = vld [vmem:[%s2608_s2 + $0x38] sm:$0xff] }
   0xf   : > { %s246_s30 = scalar_lea.vmem %s2606_s0, %s1673_s27  ;;  %v2073_v53 = vpack.c.bf16 %v363_v50, %v362_v49  ;;  %v2077_v56 = vpack.c.bf16 %v365_v55, %v364_v54  ;;  %v366_v57 = vld [vmem:[%s2608_s2 + $0x40] sm:$0xff]  ;;  %v367_v58 = vld [vmem:[%s2608_s2 + $0x48] sm:$0xff]  ;;  %v1617_v63 = vld [vmem:[%s2608_s2 + $0xb0] sm:$0xff]  ;;  %s251_s15 = scalar_lea.vmem %s2612_s6, %s1673_s27 }
  0x10   : > { %v252_v2 = vld [vmem:[%s246_s30] sm:$0xff]  ;;  %v253_v3 = vld [vmem:[%s246_s30 + $0x8] sm:$0xff]  ;;  %v254_v4 = vld [vmem:[%s246_s30 + $0x10] sm:$0xff]  ;;  %v2081_v59 = vpack.c.bf16 %v367_v58, %v366_v57 }
  0x11   : > { %v2029_v5 = vpack.c.bf16 %v253_v3, %v252_v2  ;;  %v255_v6 = vld [vmem:[%s246_s30 + $0x18] sm:$0xff]  ;;  %v1615_v60 = vld [vmem:[%s2608_s2 + $0xa0] sm:$0xff]  ;;  %v1616_v61 = vld [vmem:[%s2608_s2 + $0xa8] sm:$0xff] }
  0x12   : > { %v2033_v7 = vpack.c.bf16 %v255_v6, %v254_v4  ;;  %v2093_v62 = vpack.c.bf16 %v1616_v61, %v1615_v60  ;;  %v1619_v3 = vld [vmem:[%s2608_s2 + $0xc0] sm:$0xff]  ;;  %v1620_v4 = vld [vmem:[%s2608_s2 + $0xc8] sm:$0xff]  ;;  %v1621_v6 = vld [vmem:[%s2608_s2 + $0xd0] sm:$0xff] }
  0x13   : > { %2030 = vmatprep.subr.bf16.mxu0 %v2029_v5  ;;  %2086 = vmatprep.subr.bf16.mxu1 %v2029_v5  ;;  %v1623_v13 = vld [vmem:[%s2608_s2 + $0xe0] sm:$0xff]  ;;  %v1641_v61 = vld [vmem:[%s2611_s5 + $0x50] sm:$0xff] }
  0x14   : > { %2032 = vmatpush3.bf16.msra.mxu0 %v2029_v5  ;;  %2088 = vmatpush3.bf16.msra.mxu1 %v2029_v5  ;;  %v1629_v19 = vld [vmem:[%s2609_s3] ss:$0 sm:$0xff] }
  0x15   : > { %2034 = vmatprep.subr.bf16.mxu0 %v2033_v7  ;;  %2090 = vmatprep.subr.bf16.mxu1 %v2033_v7  ;;  %v1630_v23 = vld [vmem:[%s2610_s4] ss:$0 sm:$0xff] }
  0x16   : > { %v1639_v58 = vld [vmem:[%s2611_s5 + $0x40] sm:$0xff] }
  0x18   : > { %2036 = vmatpush3.bf16.msra.mxu0 %v2033_v7  ;;  %2092 = vmatpush3.bf16.msra.mxu1 %v2033_v7 }
  0x19   : > { %2038 = vmatprep.subr.bf16.mxu0 %v2029_v5 }
  0x1b   : > { %1810 = vmatmul.mubr.msk.f32.vlgmr.msra.gmra.mrb[0].mxu0 %vm260_vm0, %v2290_v8  ;;  %1890 = vmatmul.mubr.msk.f32.vlgmr.msra.gmra.mrb[0].mxu1 %vm260_vm0, %v2295_v9 }
  0x1c   : > { %2040 = vmatpush3.bf16.msra.mxu0 %v2029_v5  ;;  %1812 = vmatprep.mubr.msk.f32.mxu0 %vm260_vm0, %v2300_v10  ;;  %v2101_v5 = vpack.c.bf16 %v1620_v4, %v1619_v3 }
  0x1d   : > { %2042 = vmatprep.subr.bf16.mxu0 %v2033_v7  ;;  %1892 = vmatprep.mubr.msk.f32.mxu1 %vm260_vm0, %v2305_v11 }
  0x1f   : > { %1813 = vmatmul.mubr.msk.f32.gmra.mrb[2].mxu0 %vm260_vm0, %v2322_v14  ;;  %1893 = vmatmul.mubr.msk.f32.gmra.mrb[2].mxu1 %vm260_vm0, %v2327_v15 }
  0x20   : > { %2044 = vmatpush3.bf16.msra.mxu0 %v2033_v7  ;;  %1823 = vmatprep.mubr.msk.f32.mxu0 %vm260_vm0, %v2332_v16  ;;  %v1622_v7 = vld [vmem:[%s2608_s2 + $0xd8] sm:$0xff] }
  0x21   : > { %2046 = vmatprep.subr.bf16.mxu0 %v2045_v17  ;;  %1929 = vmatprep.mubr.msk.f32.mxu1 %vm260_vm0, %v256_v0  ;;  %v1618_v0 = vld [vmem:[%s2608_s2 + $0xb8] sm:$0xff]  ;;  %v2105_v12 = vpack.c.bf16 %v1622_v7, %v1621_v6  ;;  %v1019_v7 = vld [vmem:[%s2611_s5 + $0x10] sm:$0xff] }
  0x22   : > { %v2097_v2 = vpack.c.bf16 %v1618_v0, %v1617_v63  ;;  %v1017_v63 = vld [vmem:[%s2611_s5] sm:$0xff]  ;;  %v1018_v0 = vld [vmem:[%s2611_s5 + $0x8] sm:$0xff] }
  0x23   : > { %1824 = vmatmul.mubr.msk.f32.vlgmr.msra.gmra.mrb[4].mxu0 %vm260_vm0, %v2351_v20 }
  0x24   : > { %1826 = vmatprep.mubr.msk.f32.mxu0 %vm260_vm0, %v2356_v21  ;;  %2048 = vmatpush3.bf16.msra.mxu0 %v2045_v17  ;;  %v1624_v17 = vld [vmem:[%s2608_s2 + $0xe8] sm:$0xff] }
  0x25   : > { %2050 = vmatprep.subr.bf16.mxu0 %v2049_v22  ;;  %v2109_v18 = vpack.c.bf16 %v1624_v17, %v1623_v13 }
  0x27   : > { %1827 = vmatmul.mubr.msk.f32.gmra.mrb[6].mxu0 %vm260_vm0, %v2372_v25 }
  0x28   : > { %2052 = vmatpush3.bf16.msra.mxu0 %v2049_v22 }
  0x29   : > { %2054 = vmatprep.subr.bf16.mxu0 %v2053_v26 }
  0x2c   : > { %2056 = vmatpush3.bf16.msra.mxu0 %v2053_v26 }
  0x2d   : > { %2058 = vmatprep.subr.bf16.mxu0 %v2057_v29 }
  0x30   : > { %2060 = vmatpush3.bf16.msra.mxu0 %v2057_v29 }
  0x31   : > { %2062 = vmatprep.subr.bf16.mxu0 %v2061_v32 }
  0x34   : > { %2064 = vmatpush3.bf16.msra.mxu0 %v2061_v32 }
  0x35   : > { %2066 = vmatprep.subr.bf16.mxu0 %v2065_v35 }
  0xee   : > { %v1811_v36 = vpop.f32.mrb[0].mxu0  ;;  %v2394_v37 = vpop.f32.mrb[0].mxu1 }
  0xef   : > { %v339_v38 = vpop.f32.mrb[1].mxu0  ;;  %v759_v39 = vpop.f32.mrb[1].mxu1 }
  0xf2   : > { %v1814_v40 = vpop.f32.mrb[2].mxu0  ;;  %v2396_v41 = vpop.f32.mrb[2].mxu1 }
  0xf3   : > { %v349_v42 = vpop.f32.mrb[3].mxu0  ;;  %v769_v43 = vpop.f32.mrb[3].mxu1 }
  0xf6   : > { %v1825_v46 = vpop.f32.mrb[4].mxu0 }
  0xf7   : > { %v451_v47 = vpop.f32.mrb[5].mxu0 }
  0xf8   : > { %1849 = vmatprep.mubr.msk.f32.mxu0 %vm481_vm1, %v451_v47 }
  0xf9   : > { %1850 = vmatmul.mubr.msk.f32.vlgmr.msra.gmra.mrb[8].mxu0 %vm481_vm1, %v1825_v46 }
  0xfa   : > { %2068 = vmatpush3.bf16.msra.mxu0 %v2065_v35  ;;  %v1828_v51 = vpop.f32.mrb[6].mxu0 }
  0xfb   : > { %v461_v52 = vpop.f32.mrb[7].mxu0  ;;  %2070 = vmatprep.subr.bf16.mxu0 %v2069_v48 }
  0xfc   : > { %1852 = vmatprep.mubr.msk.f32.mxu0 %vm481_vm1, %v461_v52 }
  0xfd   : > { %1853 = vmatmul.mubr.msk.f32.gmra.mrb[10].mxu0 %vm481_vm1, %v1828_v51 }
  0xfe   : > { %2072 = vmatpush3.bf16.msra.mxu0 %v2069_v48  ;;  %1875 = vmatprep.mubr.msk.f32.mxu0 %vm481_vm1, %v339_v38 }
  0xff   : > { %2074 = vmatprep.subr.bf16.mxu0 %v2073_v53 }
 0x102   : > { %2076 = vmatpush3.bf16.msra.mxu0 %v2073_v53 }
 0x103   : > { %2078 = vmatprep.subr.bf16.mxu0 %v2077_v56 }
 0x106   : > { %2080 = vmatpush3.bf16.msra.mxu0 %v2077_v56 }
 0x107   : > { %2082 = vmatprep.subr.bf16.mxu0 %v2081_v59 }
 0x10a   : > { %2084 = vmatpush3.bf16.msra.mxu0 %v2081_v59  ;;  %v1640_v59 = vld [vmem:[%s2611_s5 + $0x48] sm:$0xff] }
 0x10b   : > { %2094 = vmatprep.subr.bf16.mxu0 %v2093_v62  ;;  %v2129_v60 = vpack.c.bf16 %v1640_v59, %v1639_v58 }
 0x10d   : > { %1876 = vmatmul.mubr.msk.f32.vlgmr.msra.gmra.mrb[8].mxu0 %vm481_vm1, %v1811_v36 }
 0x10e   : > { %1878 = vmatprep.mubr.msk.f32.mxu0 %vm481_vm1, %v349_v42  ;;  %2096 = vmatpush3.bf16.msra.mxu0 %v2093_v62  ;;  %v1642_v62 = vld [vmem:[%s2611_s5 + $0x58] sm:$0xff] }
 0x10f   : > { %2098 = vmatprep.subr.bf16.mxu0 %v2097_v2 }
 0x111   : > { %1879 = vmatmul.mubr.msk.f32.gmra.mrb[10].mxu0 %vm481_vm1, %v1814_v40 }
 0x112   : > { %2100 = vmatpush3.bf16.msra.mxu0 %v2097_v2  ;;  %1915 = vmatprep.mubr.msk.f32.mxu0 %vm481_vm1, %v759_v39  ;;  %v2145_v2 = vpack.c.bf16 %v1018_v0, %v1017_v63 }
 0x113   : > { %2102 = vmatprep.subr.bf16.mxu0 %v2101_v5 }
 0x116   : > { %2104 = vmatpush3.bf16.msra.mxu0 %v2101_v5 }
 0x117   : > { %2106 = vmatprep.subr.bf16.mxu0 %v2105_v12 }
 0x11a   : > { %2108 = vmatpush3.bf16.msra.mxu0 %v2105_v12  ;;  %v1020_v12 = vld [vmem:[%s2611_s5 + $0x18] sm:$0xff] }
 0x11b   : > { %2110 = vmatprep.subr.bf16.mxu0 %v2109_v18 }
 0x11e   : > { %2112 = vmatpush3.bf16.msra.mxu0 %v2109_v18  ;;  %v2149_v18 = vpack.c.bf16 %v1020_v12, %v1019_v7 }
 0x121   : > { %1916 = vmatmul.mubr.msk.f32.vlgmr.msra.gmra.mrb[8].mxu0 %vm481_vm1, %v2394_v37 }
 0x122   : > { %1918 = vmatprep.mubr.msk.f32.mxu0 %vm481_vm1, %v769_v43 }
 0x125   : > { %1919 = vmatmul.mubr.msk.f32.gmra.mrb[10].mxu0 %vm481_vm1, %v2396_v41 }
 0x1f4   : > { %v1917_v22 = vpop.f32.mrb[8].mxu0 }
 0x1f5   : > { %v898_v24 = vmul.f32 %v1917_v22, %v1629_v19  ;;  %v867_v26 = vpop.f32.mrb[9].mxu0  ;;  %v1022_v22 = vld [vmem:[%s2611_s5 + $0x28] sm:$0xff] }
 0x1f6   : > { %v897_v27 = vmul.f32 %v1629_v19, %v867_v26 }
 0x1f7   : > { %v909_v28 = vadd.f32 %v1630_v23, %v898_v24 }
 0x1f8   : > { %v908_v29 = vadd.f32 %v1630_v23, %v897_v27  ;;  %v1920_v30 = vpop.f32.mrb[10].mxu0  ;;  %v1023_v27 = vld [vmem:[%s2611_s5 + $0x30] sm:$0xff] }
 0x1f9   : > { %v917_v31 = vmul.f32 0.70710677, %v909_v28  ;;  %v900_v32 = vmul.f32 %v1920_v30, %v1629_v19  ;;  %v877_v33 = vpop.f32.mrb[11].mxu0  ;;  %v913_v42 = vmul.f32 0.5, %v909_v28  ;;  %v1024_v28 = vld [vmem:[%s2611_s5 + $0x38] sm:$0xff]  ;;  %v1659_v30 = vld [vmem:[%s2611_s5 + $0x80] sm:$0xff] }
 0x1fa   : > { %v916_v34 = vmul.f32 0.70710677, %v908_v29  ;;  %v899_v35 = vmul.f32 %v1629_v19, %v877_v33  ;;  %v912_v44 = vmul.f32 0.5, %v908_v29  ;;  %v1021_v19 = vld [vmem:[%s2611_s5 + $0x20] sm:$0xff]  ;;  %v2157_v29 = vpack.c.bf16 %v1024_v28, %v1023_v27  ;;  %v1661_v33 = vld [vmem:[%s2611_s5 + $0x90] sm:$0xff] }
 0x1fb   : > { %2209 = verf.f32 %v917_v31  ;;  %v911_v36 = vadd.f32 %v1630_v23, %v900_v32  ;;  %v2153_v26 = vpack.c.bf16 %v1022_v22, %v1021_v19  ;;  %v1660_v31 = vld [vmem:[%s2611_s5 + $0x88] sm:$0xff] }
 0x1fc   : > { %2211 = verf.f32 %v916_v34  ;;  %v910_v37 = vadd.f32 %v1630_v23, %v899_v35  ;;  %v2169_v32 = vpack.c.bf16 %v1660_v31, %v1659_v30  ;;  %v1662_v34 = vld [vmem:[%s2611_s5 + $0x98] sm:$0xff] }
 0x1fd   : > { %v919_v38 = vmul.f32 0.70710677, %v911_v36  ;;  %v915_v50 = vmul.f32 0.5, %v911_v36  ;;  %v2173_v35 = vpack.c.bf16 %v1662_v34, %v1661_v33  ;;  %v1663_v36 = vld [vmem:[%s2611_s5 + $0xa0] sm:$0xff] }
 0x1fe   : > { %v918_v39 = vmul.f32 0.70710677, %v910_v37  ;;  %v914_v53 = vmul.f32 0.5, %v910_v37  ;;  %v1664_v37 = vld [vmem:[%s2611_s5 + $0xa8] sm:$0xff] }
 0x1ff   : > { %2213 = verf.f32 %v919_v38  ;;  %v2177_v38 = vpack.c.bf16 %v1664_v37, %v1663_v36 }
 0x200   : > { %2215 = verf.f32 %v918_v39  ;;  %v1666_v39 = vld [vmem:[%s2611_s5 + $0xb8] sm:$0xff] }
 0x205   : > { %v2210_v40 = vpop.eup %2209 }
 0x206   : > { %v2212_v41 = vpop.eup %2211  ;;  %v925_v43 = vadd.f32 1.0, %v2210_v40 }
 0x207   : > { %v924_v45 = vadd.f32 1.0, %v2212_v41 }
 0x208   : > { %v929_v46 = vmul.f32 %v925_v43, %v913_v42 }
 0x209   : > { %v2214_v47 = vpop.eup %2213  ;;  %v928_v48 = vmul.f32 %v924_v45, %v912_v44 }
 0x20a   : > { %v2216_v49 = vpop.eup %2215  ;;  %v927_v51 = vadd.f32 1.0, %v2214_v47 }
 0x20b   : > { %v2472_v52 = vpack.c.bf16 %v929_v46, %v928_v48  ;;  %v926_v54 = vadd.f32 1.0, %v2216_v49 }
 0x20c   : > { %v931_v55 = vmul.f32 %v927_v51, %v915_v50 }
 0x20d   : > { %v930_v56 = vmul.f32 %v926_v54, %v914_v53  ;;  %2114 = vmatprep.subr.bf16.mxu1 %v2472_v52 }
 0x20e   : > { %2116 = vmatpush3.bf16.msra.mxu1 %v2472_v52 }
 0x20f   : > { %v2476_v57 = vpack.c.bf16 %v931_v55, %v930_v56 }
 0x211   : > { %2118 = vmatprep.subr.bf16.mxu1 %v2476_v57 }
 0x212   : > { %2120 = vmatpush3.bf16.msra.mxu1 %v2476_v57 }
 0x213   : > { %2122 = vmatprep.subr.bf16.mxu1 %v2472_v52 }
 0x215   : > { %1930 = vmatmul.mubr.msk.f32.vlgmr.msra.gmra.mrb[4].mxu1 %vm260_vm0, %v2290_v8  ;;  %v2133_v8 = vpack.c.bf16 %v1642_v62, %v1641_v61 }
 0x216   : > { %2124 = vmatpush3.bf16.msra.mxu1 %v2472_v52  ;;  %1932 = vmatprep.mubr.msk.f32.mxu1 %vm260_vm0, %v2300_v10  ;;  %v1643_v10 = vld [vmem:[%s2611_s5 + $0x60] sm:$0xff] }
 0x217   : > { %2126 = vmatprep.subr.bf16.mxu1 %v2476_v57 }
 0x219   : > { %1933 = vmatmul.mubr.msk.f32.gmra.mrb[6].mxu1 %vm260_vm0, %v2322_v14  ;;  %v1644_v14 = vld [vmem:[%s2611_s5 + $0x68] sm:$0xff] }
 0x21a   : > { %2128 = vmatpush3.bf16.msra.mxu1 %v2476_v57  ;;  %1943 = vmatprep.mubr.msk.f32.mxu1 %vm260_vm0, %v2332_v16  ;;  %v2137_v16 = vpack.c.bf16 %v1644_v14, %v1643_v10 }
 0x21b   : > { %2130 = vmatprep.subr.bf16.mxu1 %v2129_v60 }
 0x21d   : > { %1944 = vmatmul.mubr.msk.f32.vlgmr.msra.gmra.mrb[8].mxu1 %vm260_vm0, %v2351_v20  ;;  %v1645_v20 = vld [vmem:[%s2611_s5 + $0x70] sm:$0xff] }
 0x21e   : > { %1946 = vmatprep.mubr.msk.f32.mxu1 %vm260_vm0, %v2356_v21  ;;  %2132 = vmatpush3.bf16.msra.mxu1 %v2129_v60  ;;  %v1646_v21 = vld [vmem:[%s2611_s5 + $0x78] sm:$0xff] }
 0x21f   : > { %2134 = vmatprep.subr.bf16.mxu1 %v2133_v8 }
 0x221   : > { %1947 = vmatmul.mubr.msk.f32.gmra.mrb[10].mxu1 %vm260_vm0, %v2372_v25  ;;  %v2141_v25 = vpack.c.bf16 %v1646_v21, %v1645_v20 }
 0x222   : > { %2136 = vmatpush3.bf16.msra.mxu1 %v2133_v8 }
 0x223   : > { %2138 = vmatprep.subr.bf16.mxu1 %v2137_v16 }
 0x226   : > { %2140 = vmatpush3.bf16.msra.mxu1 %v2137_v16 }
 0x227   : > { %2142 = vmatprep.subr.bf16.mxu1 %v2141_v25 }
 0x22a   : > { %2144 = vmatpush3.bf16.msra.mxu1 %v2141_v25 }
 0x22b   : > { %2146 = vmatprep.subr.bf16.mxu1 %v2145_v2 }
 0x2e8   : > { %v1931_v3 = vpop.f32.mrb[4].mxu1 }
 0x2e9   : > { %v998_v4 = vpop.f32.mrb[5].mxu1 }
 0x2ec   : > { %v1934_v5 = vpop.f32.mrb[6].mxu1 }
 0x2ed   : > { %v1008_v6 = vpop.f32.mrb[7].mxu1 }
 0x2f0   : > { %v1945_v13 = vpop.f32.mrb[8].mxu1 }
 0x2f1   : > { %v1091_v17 = vpop.f32.mrb[9].mxu1 }
 0x2f2   : > { %1965 = vmatprep.mubr.msk.f32.mxu1 %vm1119_vm2, %v1091_v17 }
 0x2f3   : > { %1966 = vmatmul.mubr.msk.f32.vlgmr.msra.gmra.mrb[12].mxu1 %vm1119_vm2, %v1945_v13 }
 0x2f4   : > { %2148 = vmatpush3.bf16.msra.mxu1 %v2145_v2  ;;  %v1948_v23 = vpop.f32.mrb[10].mxu1 }
 0x2f5   : > { %v1101_v24 = vpop.f32.mrb[11].mxu1  ;;  %2150 = vmatprep.subr.bf16.mxu1 %v2149_v18 }
 0x2f6   : > { %1968 = vmatprep.mubr.msk.f32.mxu1 %vm1119_vm2, %v1101_v24 }
 0x2f7   : > { %1969 = vmatmul.mubr.msk.f32.gmra.mrb[14].mxu1 %vm1119_vm2, %v1948_v23 }
 0x2f8   : > { %2152 = vmatpush3.bf16.msra.mxu1 %v2149_v18  ;;  %1987 = vmatprep.mubr.msk.f32.mxu1 %vm1119_vm2, %v998_v4 }
 0x2f9   : > { %2154 = vmatprep.subr.bf16.mxu1 %v2153_v26 }
 0x2fc   : > { %2156 = vmatpush3.bf16.msra.mxu1 %v2153_v26 }
 0x2fd   : > { %2158 = vmatprep.subr.bf16.mxu1 %v2157_v29 }
 0x300   : > { %2160 = vmatpush3.bf16.msra.mxu1 %v2157_v29 }
 0x301   : > { %2162 = vmatprep.subr.bf16.mxu1 %v2472_v52 }
 0x303   : > { %1988 = vmatmul.mubr.msk.f32.vlgmr.msra.gmra.mrb[12].mxu1 %vm1119_vm2, %v1931_v3 }
 0x304   : > { %1990 = vmatprep.mubr.msk.f32.mxu1 %vm1119_vm2, %v1008_v6  ;;  %2164 = vmatpush3.bf16.msra.mxu1 %v2472_v52 }
 0x305   : > { %2166 = vmatprep.subr.bf16.mxu1 %v2476_v57 }
 0x307   : > { %1991 = vmatmul.mubr.msk.f32.gmra.mrb[14].mxu1 %vm1119_vm2, %v1934_v5 }
 0x308   : > { %2168 = vmatpush3.bf16.msra.mxu1 %v2476_v57  ;;  %2001 = vmatprep.mubr.msk.f32.mxu1 %vm260_vm0, %v2277_v1  ;;  %v1665_v1 = vld [vmem:[%s2611_s5 + $0xb0] sm:$0xff] }
 0x309   : > { %2170 = vmatprep.subr.bf16.mxu1 %v2169_v32 }
 0x30b   : > { %2002 = vmatmul.mubr.msk.f32.vlgmr.msra.gmra.mrb[16].mxu1 %vm260_vm0, %v2295_v9  ;;  %v2181_v9 = vpack.c.bf16 %v1666_v39, %v1665_v1 }
 0x30c   : > { %2004 = vmatprep.mubr.msk.f32.mxu1 %vm260_vm0, %v2305_v11  ;;  %2172 = vmatpush3.bf16.msra.mxu1 %v2169_v32 }
 0x30d   : > { %2174 = vmatprep.subr.bf16.mxu1 %v2173_v35 }
 0x30f   : > { %2005 = vmatmul.mubr.msk.f32.gmra.mrb[18].mxu1 %vm260_vm0, %v2327_v15 }
 0x310   : > { %2176 = vmatpush3.bf16.msra.mxu1 %v2173_v35 }
 0x311   : > { %2178 = vmatprep.subr.bf16.mxu1 %v2177_v38 }
 0x314   : > { %2180 = vmatpush3.bf16.msra.mxu1 %v2177_v38 }
 0x315   : > { %2182 = vmatprep.subr.bf16.mxu1 %v2181_v9 }
 0x318   : > { %2184 = vmatpush3.bf16.msra.mxu1 %v2181_v9 }
 0x3de   : > { %v2003_v11 = vpop.f32.mrb[16].mxu1 }
 0x3df   : > { %v1380_v40 = vpop.f32.mrb[17].mxu1 }
 0x3e0   : > { %2023 = vmatprep.mubr.msk.f32.mxu1 %vm1119_vm2, %v1380_v40 }
 0x3e1   : > { %2024 = vmatmul.mubr.msk.f32.vlgmr.msra.gmra.mrb[12].mxu1 %vm1119_vm2, %v2003_v11 }
 0x3e2   : > { %v2006_v41 = vpop.f32.mrb[18].mxu1 }
 0x3e3   : > { %v1390_v42 = vpop.f32.mrb[19].mxu1 }
 0x3e4   : > { %2026 = vmatprep.mubr.msk.f32.mxu1 %vm1119_vm2, %v1390_v42 }
 0x3e5   : > { %2027 = vmatmul.mubr.msk.f32.gmra.mrb[14].mxu1 %vm1119_vm2, %v2006_v41 }
 0x4b4   : > { %v2025_v15 = vpop.f32.mrb[12].mxu1 }
 0x4b5   : > { %1510 = vst.msk [vmem:[%s251_s15 + $0x8] sm:$0xff] %vm1119_vm2, %v2025_v15  ;;  %v1486_v43 = vpop.f32.mrb[13].mxu1 }
 0x4b6   : > { %1509 = vst.msk [vmem:[%s251_s15] sm:$0xff] %vm1119_vm2, %v1486_v43 }
 0x4b8   : > { %v2028_v44 = vpop.f32.mrb[14].mxu1 }
 0x4b9   : > { %1512 = vst.msk [vmem:[%s251_s15 + $0x18] sm:$0xff] %vm1119_vm2, %v2028_v44  ;;  %v1496_v45 = vpop.f32.mrb[15].mxu1 }
 0x4ba   : > { %1511 = vst.msk [vmem:[%s251_s15 + $0x10] sm:$0xff] %vm1119_vm2, %v1496_v45 }
 0x4bb PF: > { %s16_s21 = sadd.s32 1, %s2223_s21  }
 0x4bc   : > { %p13_p4 = scmp.ge.s32.totalorder %s16_s21, 4  }
 0x4be   :  { %15 = sbr.rel (!%p13_p4) target bundleno = 1 (0x1), region = 80 }

// kernel: _forward_impl.5
= control target key start
LH: loop header
LB: loop body
LE: loop exit
PB: predicated region body
PF: predicated region fallthrough
CT: control target
= control target key end

     0   :  { %s3174_s29 = smov 0   ;;  %s3799_s0 = inlined_call_operand.vmem [shape: f32[2,8,128], index: 0, kind: input, shape index: {}]   ;;  %s3800_s1 = inlined_call_operand.vmem [shape: f32[128,64], index: 1, kind: input, shape index: {}]   ;;  %s3801_s2 = inlined_call_operand.vmem [shape: f32[1,64], index: 2, kind: input, shape index: {}]   ;;  %s3802_s3 = inlined_call_operand.vmem [shape: f32[3,4,8], index: 3, kind: input, shape index: {}]   ;;  %s3803_s4 = inlined_call_operand.vmem [shape: f32[3,64,128], index: 4, kind: input, shape index: {}]   ;;  %s3804_s5 = inlined_call_operand.vmem [shape: f32[1,128], index: 5, kind: input, shape index: {}]   ;;  %s3805_s6 = inlined_call_operand.vmem [shape: f32[3,2,4], index: 6, kind: input, shape index: {}]   ;;  %s3806_s7 = inlined_call_operand.vmem [shape: f32[3,128,128], index: 7, kind: input, shape index: {}]   ;;  %s3807_s8 = inlined_call_operand.vmem [shape: f32[1,128], index: 8, kind: input, shape index: {}]   ;;  %s3808_s9 = inlined_call_operand.vmem [shape: f32[1,128], index: 9, kind: input, shape index: {}]   ;;  %s3809_s10 = inlined_call_operand.vmem [shape: f32[1,128], index: 10, kind: input, shape index: {}]   ;;  %s3810_s11 = inlined_call_operand.vmem [shape: f32[3,1,2], index: 11, kind: input, shape index: {}]   ;;  %s3811_s12 = inlined_call_operand.vmem [shape: f32[3,128,128], index: 12, kind: input, shape index: {}]   ;;  %s3812_s13 = inlined_call_operand.vmem [shape: f32[1,128], index: 13, kind: input, shape index: {}]   ;;  %s3813_s14 = inlined_call_operand.vmem [shape: f32[1,128], index: 14, kind: input, shape index: {}]   ;;  %s3814_s15 = inlined_call_operand.vmem [shape: f32[1,128], index: 15, kind: input, shape index: {}]   ;;  %s3815_s16 = inlined_call_operand.vmem [shape: f32[1,128], index: 16, kind: input, shape index: {}]   ;;  %s3816_s17 = inlined_call_operand.<no memory space> [shape: f32[1,1], index: 17, kind: input, shape index: {}]   ;;  %s3817_s18 = inlined_call_operand.vmem [shape: f32[2,1,1], index: 18, kind: output, shape index: {}]  }
   0x1   :  { %3819 = sst [smem:[#allocation3_spill]] %s3799_s0  ;;  %v23_v0 = vstv %s3816_s17 }
   0x2   :  { %3820 = sst [smem:[#allocation4_spill]] %s3800_s1  ;;  %24 = vst [vmem:[#allocation2] sm:$0x1] %v23_v0 }
   0x3   :  { %3821 = sst [smem:[#allocation5_spill]] %s3801_s2 }
   0x4 LB: > { %s2222_s30 = sadd.s32 4294967295, %s3071_s29   ;;  %p2226_p0 = scmp.ge.s32.totalorder %s3071_s29, 1  ;;  %s3071_s29 = sphi %s3174_s29, %s30_s29  }
   0x5   : > { %p513_p1 = scmp.lt.s32.totalorder %s3071_s29, 3 }
   0x7   : > { %p514_p2 = pnand %p2226_p0, %p513_p1 }
   0x8   : > { %s3822_s1 = sld [smem:[#allocation4_spill]] (!%p514_p2)  ;;  %v3073_v4 = vmov (!%p514_p2), 0.0|0.0   ;;  %vm3074_vm0 = vmmov (!%p514_p2), 0   ;;  %v3075_v7 = vmov (!%p514_p2), 0.0   ;;  %p564_p3 = scmp.lt.s32.totalorder (!%p514_p2), %s2222_s30, 1  ;;  %vm666_vm1 = vcmask (!%p514_p2), 64512  }
   0x9   : > { %517 = sbr.rel (%p514_p2) target bundleno = 2386 (0x952), region = 92  ;;  %2850 = vmatprep.subr.bf16.mxu0 (!%p514_p2), %v3073_v4  ;;  %2535 = vmatprep.mubr.msk.f32.mxu0 (!%p514_p2), %vm3074_vm0, %v3075_v7  ;;  %s3823_s25 = sld [smem:[#allocation3_spill]] (!%p514_p2)  ;;  %v665_v32 = vld [vmem:[%s3802_s3] sm:$0xf] (!%p514_p2)  ;;  %v2233_v34 = vld [vmem:[%s3803_s4 + $0x48] sm:$0xff] (!%p514_p2)  ;;  %v2234_v37 = vld [vmem:[%s3803_s4 + $0x50] sm:$0xff] (!%p514_p2) }
   0xa   : > { %2538 = vmatprep.subr.mxu1 (!%p514_p2), %v3075_v7  ;;  %2540 = vmatprep.mubr.msk.f32.mxu1 (!%p514_p2), %vm3074_vm0, %v3075_v7  ;;  %s3824_s0 = sld [smem:[#allocation5_spill]] (!%p514_p2)  ;;  %v2232_v33 = vld [vmem:[%s3803_s4 + $0x40] sm:$0xff] (!%p514_p2)  ;;  %v2235_v38 = vld [vmem:[%s3803_s4 + $0x58] sm:$0xff] (!%p514_p2)  ;;  %v2237_v41 = vld [vmem:[%s3803_s4 + $0x68] sm:$0xff] (!%p514_p2)  ;;  %vm832_vm2 = vcmask (!%p514_p2), 523264   ;;  %vm1153_vm4 = vcmask (!%p514_p2), 1043456  }
   0xb   : > { %v2230_v35 = vld [vmem:[%s3802_s3 + $0x4] sm:$0xf] (!%p514_p2)  ;;  %v2875_v36 = vpack.c.bf16 (!%p514_p2), %v2233_v34, %v2232_v33  ;;  %v2878_v39 = vpack.c.bf16 (!%p514_p2), %v2235_v38, %v2234_v37  ;;  %v2238_v43 = vld [vmem:[%s3803_s4 + $0x70] sm:$0xff] (!%p514_p2)  ;;  %v2239_v44 = vld [vmem:[%s3803_s4 + $0x78] sm:$0xff] (!%p514_p2)  ;;  %vm1149_vm5 = vcmask (!%p514_p2), 31744   ;;  %vm1670_vm7 = vcmask (!%p514_p2), 1041408  }
   0xc   : > { %v2236_v40 = vld [vmem:[%s3803_s4 + $0x60] sm:$0xff] (!%p514_p2)  ;;  %v2884_v45 = vpack.c.bf16 (!%p514_p2), %v2239_v44, %v2238_v43  ;;  %v741_v47 = vld [vmem:[%s3803_s4 + $0x8] sm:$0xff] (!%p514_p2)  ;;  %v742_v51 = vld [vmem:[%s3803_s4 + $0x10] sm:$0xff] (!%p514_p2)  ;;  %vm1666_vm8 = vcmask (!%p514_p2), 15360   ;;  %vm2166_vm10 = vcmask (!%p514_p2), 1040384   ;;  %vm2173_vm11 = vcmask (!%p514_p2), 0  }
   0xd   : > { %v2881_v42 = vpack.c.bf16 (!%p514_p2), %v2237_v41, %v2236_v40  ;;  %v740_v46 = vld [vmem:[%s3803_s4] sm:$0xff] (!%p514_p2)  ;;  %v743_v52 = vld [vmem:[%s3803_s4 + $0x18] sm:$0xff] (!%p514_p2)  ;;  %v745_v57 = vld [vmem:[%s3803_s4 + $0x28] sm:$0xff] (!%p514_p2) }
   0xe   : > { %v572_v1 = vld [vmem:[%s3822_s1] sm:$0xff] (!%p514_p2)  ;;  %v573_v2 = vld [vmem:[%s3822_s1 + $0x8] sm:$0xff] (!%p514_p2)  ;;  %v574_v3 = vld [vmem:[%s3822_s1 + $0x10] sm:$0xff] (!%p514_p2)  ;;  %v2887_v50 = vpack.c.bf16 (!%p514_p2), %v741_v47, %v740_v46  ;;  %v2890_v55 = vpack.c.bf16 (!%p514_p2), %v743_v52, %v742_v51 }
   0xf   : > { %v2851_v5 = vpack.c.bf16 (!%p514_p2), %v573_v2, %v572_v1  ;;  %v575_v6 = vld [vmem:[%s3822_s1 + $0x18] sm:$0xff] (!%p514_p2)  ;;  %v576_v9 = vld [vmem:[%s3822_s1 + $0x20] sm:$0xff] (!%p514_p2)  ;;  %v577_v10 = vld [vmem:[%s3822_s1 + $0x28] sm:$0xff] (!%p514_p2) }
  0x10   : > { %v2854_v8 = vpack.c.bf16 %v575_v6, %v574_v3  ;;  %v2857_v11 = vpack.c.bf16 %v577_v10, %v576_v9  ;;  %v578_v12 = vld [vmem:[%s3822_s1 + $0x30] sm:$0xff]  ;;  %v579_v13 = vld [vmem:[%s3822_s1 + $0x38] sm:$0xff]  ;;  %v580_v15 = vld [vmem:[%s3822_s1 + $0x40] sm:$0xff]  ;;  %s3826_s30 = smov (!%p564_p3, %s2222_s30), 1 }
  0x11   : > { %2852 = vmatpush3.bf16.msra.mxu0 %v2851_v5  ;;  %v2860_v14 = vpack.c.bf16 %v579_v13, %v578_v12  ;;  %v581_v16 = vld [vmem:[%s3822_s1 + $0x48] sm:$0xff]  ;;  %v582_v18 = vld [vmem:[%s3822_s1 + $0x50] sm:$0xff]  ;;  %v583_v19 = vld [vmem:[%s3822_s1 + $0x58] sm:$0xff]  ;;  %s2227_s2 = sshll.u32 %s3826_s30, 3  ;;  %s570_s21 = scalar_lea.vmem %s3817_s18, %s3826_s30 }
  0x12   : > { %2853 = vmatprep.subr.bf16.mxu0 %v3073_v4  ;;  %v2863_v17 = vpack.c.bf16 %v581_v16, %v580_v15  ;;  %v2866_v20 = vpack.c.bf16 %v583_v19, %v582_v18  ;;  %v584_v21 = vld [vmem:[%s3822_s1 + $0x60] sm:$0xff]  ;;  %v585_v22 = vld [vmem:[%s3822_s1 + $0x68] sm:$0xff]  ;;  %v586_v24 = vld [vmem:[%s3822_s1 + $0x70] sm:$0xff]  ;;  %s567_s26 = scalar_lea.vmem %s3823_s25, %s2227_s2 }
  0x13   : > { %v2869_v23 = vpack.c.bf16 %v585_v22, %v584_v21  ;;  %v587_v25 = vld [vmem:[%s3822_s1 + $0x78] sm:$0xff]  ;;  %v571_v27 = vld [vmem:[%s567_s26] sm:$0xff]  ;;  %v746_v59 = vld [vmem:[%s3803_s4 + $0x30] sm:$0xff] }
  0x14   : > { %v2872_v26 = vpack.c.bf16 %v587_v25, %v586_v24  ;;  %v2228_v28 = vld [vmem:[%s3824_s0] ss:$0 sm:$0xff]  ;;  %v747_v60 = vld [vmem:[%s3803_s4 + $0x38] sm:$0xff]  ;;  %v2242_v62 = vld [vmem:[%s3802_s3 + $0x8] sm:$0xf] }
  0x15   : > { %2855 = vmatpush3.bf16.msra.mxu0 %v2854_v8  ;;  %v744_v56 = vld [vmem:[%s3803_s4 + $0x20] sm:$0xff]  ;;  %v2896_v61 = vpack.c.bf16 %v747_v60, %v746_v59  ;;  %v2245_v0 = vld [vmem:[%s3803_s4 + $0x88] sm:$0xff]  ;;  %v2246_v1 = vld [vmem:[%s3803_s4 + $0x90] sm:$0xff] }
  0x16   : > { %2856 = vmatprep.subr.bf16.mxu0 %v3073_v4  ;;  %v2893_v58 = vpack.c.bf16 %v745_v57, %v744_v56  ;;  %v2244_v63 = vld [vmem:[%s3803_s4 + $0x80] sm:$0xff]  ;;  %v2247_v3 = vld [vmem:[%s3803_s4 + $0x98] sm:$0xff]  ;;  %v2249_v8 = vld [vmem:[%s3803_s4 + $0xa8] sm:$0xff] }
  0x17   : > { %v2899_v2 = vpack.c.bf16 %v2245_v0, %v2244_v63  ;;  %v2902_v5 = vpack.c.bf16 %v2247_v3, %v2246_v1  ;;  %v2248_v6 = vld [vmem:[%s3803_s4 + $0xa0] sm:$0xff]  ;;  %v2250_v10 = vld [vmem:[%s3803_s4 + $0xb0] sm:$0xff]  ;;  %v1228_v21 = vld [vmem:[%s3806_s7 + $0x8] sm:$0xff] }
  0x18   : > { %v2905_v9 = vpack.c.bf16 %v2249_v8, %v2248_v6  ;;  %v1230_v24 = vld [vmem:[%s3806_s7 + $0x18] sm:$0xff]  ;;  %v1236_v33 = vld [vmem:[%s3806_s7 + $0x48] sm:$0xff]  ;;  %v1239_v38 = vld [vmem:[%s3806_s7 + $0x60] sm:$0xff] }
  0x19   : > { %2858 = vmatpush3.bf16.msra.mxu0 %v2857_v11  ;;  %v2251_v11 = vld [vmem:[%s3803_s4 + $0xb8] sm:$0xff]  ;;  %v1241_v41 = vld [vmem:[%s3806_s7 + $0x70] sm:$0xff]  ;;  %v2259_v52 = vld [vmem:[%s3806_s7 + $0x80] sm:$0xff] }
  0x1a   : > { %2859 = vmatprep.subr.bf16.mxu0 %v3073_v4  ;;  %v2908_v12 = vpack.c.bf16 %v2251_v11, %v2250_v10  ;;  %v2261_v56 = vld [vmem:[%s3806_s7 + $0x90] sm:$0xff]  ;;  %v2262_v57 = vld [vmem:[%s3806_s7 + $0x98] sm:$0xff]  ;;  %v2263_v59 = vld [vmem:[%s3806_s7 + $0xa0] sm:$0xff] }
  0x1b   : > { %v2264_v60 = vld [vmem:[%s3806_s7 + $0xa8] sm:$0xff]  ;;  %v2266_v63 = vld [vmem:[%s3806_s7 + $0xb8] sm:$0xff]  ;;  %v2267_v1 = vld [vmem:[%s3806_s7 + $0xc0] sm:$0xff] }
  0x1c   : > { %v2270_v6 = vld [vmem:[%s3806_s7 + $0xd8] sm:$0xff]  ;;  %v2272_v10 = vld [vmem:[%s3806_s7 + $0xe8] sm:$0xff] }
  0x1d   : > { %2861 = vmatpush3.bf16.msra.mxu0 %v2860_v14 }
  0x1e   : > { %2862 = vmatprep.subr.bf16.mxu0 %v3073_v4 }
  0x21   : > { %2864 = vmatpush3.bf16.msra.mxu0 %v2863_v17 }
  0x22   : > { %2865 = vmatprep.subr.bf16.mxu0 %v3073_v4 }
  0x25   : > { %2867 = vmatpush3.bf16.msra.mxu0 %v2866_v20  ;;  %v1227_v20 = vld [vmem:[%s3806_s7] sm:$0xff] }
  0x26   : > { %2868 = vmatprep.subr.bf16.mxu0 %v3073_v4  ;;  %v2935_v22 = vpack.c.bf16 %v1228_v21, %v1227_v20  ;;  %v2275_v21 = vld [vmem:[%s3805_s6 + $0x4] sm:$0x3] }
  0x29   : > { %2870 = vmatpush3.bf16.msra.mxu0 %v2869_v23  ;;  %v1229_v23 = vld [vmem:[%s3806_s7 + $0x10] sm:$0xff] }
  0x2a   : > { %2871 = vmatprep.subr.bf16.mxu0 %v3073_v4  ;;  %v2938_v25 = vpack.c.bf16 %v1230_v24, %v1229_v23  ;;  %v2280_v23 = vld [vmem:[%s3806_s7 + $0x110] sm:$0xff]  ;;  %v2281_v24 = vld [vmem:[%s3806_s7 + $0x118] sm:$0xff] }
  0x2d   : > { %2873 = vmatpush3.bf16.msra.mxu0 %v2872_v26  ;;  %v1231_v26 = vld [vmem:[%s3806_s7 + $0x20] sm:$0xff] }
  0x2e   : > { %2898 = vmatprep.subr.bf16.mxu0 %v3073_v4 }
  0x30   : > { %2536 = vmatmul.mubr.f32.vlgmr.msra.gmra.mrb[0].mxu0 %v571_v27  ;;  %v1232_v27 = vld [vmem:[%s3806_s7 + $0x28] sm:$0xff] }
  0x31   : > { %2607 = vmatprep.mubr.msk.f32.mxu0 %vm3074_vm0, %v3075_v7  ;;  %2900 = vmatpush3.bf16.msra.mxu0 %v2899_v2  ;;  %v2268_v2 = vld [vmem:[%s3806_s7 + $0xc8] sm:$0xff] }
  0x32   : > { %2901 = vmatprep.subr.bf16.mxu0 %v3073_v4  ;;  %v2923_v3 = vpack.c.bf16 %v2268_v2, %v2267_v1  ;;  %v2299_v2 = vld [vmem:[%s3810_s11 + $0x1] sm:$0x1] }
  0x35   : > { %2903 = vmatpush3.bf16.msra.mxu0 %v2902_v5  ;;  %v2269_v5 = vld [vmem:[%s3806_s7 + $0xd0] sm:$0xff] }
  0x36   : > { %2904 = vmatprep.subr.bf16.mxu0 %v3073_v4  ;;  %v2926_v8 = vpack.c.bf16 %v2270_v6, %v2269_v5  ;;  %v2304_v6 = vld [vmem:[%s3811_s12 + $0x90] sm:$0xff] }
  0x39   : > { %2906 = vmatpush3.bf16.msra.mxu0 %v2905_v9  ;;  %v2271_v9 = vld [vmem:[%s3806_s7 + $0xe0] sm:$0xff] }
  0x3a   : > { %2907 = vmatprep.subr.bf16.mxu0 %v3073_v4  ;;  %v2929_v11 = vpack.c.bf16 %v2272_v10, %v2271_v9  ;;  %v2305_v9 = vld [vmem:[%s3811_s12 + $0x98] sm:$0xff]  ;;  %v1746_v10 = vld [vmem:[%s3811_s12 + $0x10] sm:$0xff] }
  0x3d   : > { %2909 = vmatpush3.bf16.msra.mxu0 %v2908_v12  ;;  %v2273_v12 = vld [vmem:[%s3806_s7 + $0xf0] sm:$0xff] }
  0x3e   : > { %2934 = vmatprep.subr.bf16.mxu0 %v3073_v4 }
 0x103   : > { %v661_v29 = vpop.f32.mrb[0].mxu0 }
 0x104   : > { %v662_v30 = vadd.f32 %v2228_v28, %v661_v29  ;;  %v2537_v31 = vpop.f32.mrb[1].mxu0  ;;  %v2941_v28 = vpack.c.bf16 %v1232_v27, %v1231_v26  ;;  %v1233_v29 = vld [vmem:[%s3806_s7 + $0x30] sm:$0xff]  ;;  %v2282_v26 = vld [vmem:[%s3806_s7 + $0x120] sm:$0xff]  ;;  %v2283_v27 = vld [vmem:[%s3806_s7 + $0x128] sm:$0xff] }
 0x106   : > { %2539 = vmatpush3.msra.mxu1 %v662_v30 }
 0x107   : > { %2541 = vmatmul.mubr.msk.f32.vlgmr.msra.gmra.mrb[0].mxu1 %vm666_vm1, %v665_v32  ;;  %2543 = vmatprep.subr.mxu1 %v3075_v7  ;;  %v1235_v32 = vld [vmem:[%s3806_s7 + $0x40] sm:$0xff] }
 0x108   : > { %2544 = vmatpush3.msra.mxu1 %v662_v30  ;;  %2545 = vmatprep.mubr.msk.f32.mxu1 %vm3074_vm0, %v3075_v7  ;;  %v2947_v34 = vpack.c.bf16 %v1236_v33, %v1235_v32  ;;  %v2286_v32 = vld [vmem:[%s3806_s7 + $0x140] sm:$0xff]  ;;  %v2287_v33 = vld [vmem:[%s3806_s7 + $0x148] sm:$0xff] }
 0x109   : > { %2874 = vmatprep.subr.bf16.mxu1 %v3073_v4 }
 0x10b   : > { %2546 = vmatmul.mubr.msk.f32.vlgmr.msra.gmra.mrb[2].mxu1 %vm666_vm1, %v2230_v35  ;;  %v1237_v35 = vld [vmem:[%s3806_s7 + $0x50] sm:$0xff] }
 0x10c   : > { %2876 = vmatpush3.bf16.msra.mxu1 %v2875_v36  ;;  %2564 = vmatprep.mubr.msk.f32.mxu1 %vm3074_vm0, %v3075_v7  ;;  %v1238_v36 = vld [vmem:[%s3806_s7 + $0x58] sm:$0xff] }
 0x10d   : > { %2877 = vmatprep.subr.bf16.mxu1 %v3073_v4  ;;  %v2950_v37 = vpack.c.bf16 %v1238_v36, %v1237_v35  ;;  %v2288_v35 = vld [vmem:[%s3806_s7 + $0x150] sm:$0xff]  ;;  %v2289_v36 = vld [vmem:[%s3806_s7 + $0x158] sm:$0xff] }
 0x110   : > { %2879 = vmatpush3.bf16.msra.mxu1 %v2878_v39  ;;  %v1240_v39 = vld [vmem:[%s3806_s7 + $0x68] sm:$0xff] }
 0x111   : > { %2880 = vmatprep.subr.bf16.mxu1 %v3073_v4  ;;  %v2953_v40 = vpack.c.bf16 %v1240_v39, %v1239_v38  ;;  %v2290_v38 = vld [vmem:[%s3806_s7 + $0x160] sm:$0xff]  ;;  %v2291_v39 = vld [vmem:[%s3806_s7 + $0x168] sm:$0xff] }
 0x114   : > { %2882 = vmatpush3.bf16.msra.mxu1 %v2881_v42  ;;  %v1242_v42 = vld [vmem:[%s3806_s7 + $0x78] sm:$0xff] }
 0x115   : > { %2883 = vmatprep.subr.bf16.mxu1 %v3073_v4  ;;  %v2956_v43 = vpack.c.bf16 %v1242_v42, %v1241_v41  ;;  %v2292_v41 = vld [vmem:[%s3806_s7 + $0x170] sm:$0xff]  ;;  %v2293_v42 = vld [vmem:[%s3806_s7 + $0x178] sm:$0xff] }
 0x118   : > { %2885 = vmatpush3.bf16.msra.mxu1 %v2884_v45  ;;  %v2253_v45 = vld [vmem:[%s3804_s5] ss:$0 sm:$0xff] }
 0x119   : > { %2886 = vmatprep.subr.bf16.mxu1 %v3073_v4 }
 0x1da   : > { %v736_v48 = vpop.f32.mrb[0].mxu1 }
 0x1db   : > { %v2542_v49 = vpop.f32.mrb[1].mxu1 }
 0x1de   : > { %v819_v53 = vpop.f32.mrb[2].mxu1 }
 0x1df   : > { %v2547_v54 = vpop.f32.mrb[3].mxu1  ;;  %2565 = vmatmul.mubr.msk.f32.vlgmr.msra.gmra.mrb[4].mxu1 %vm832_vm2, %v819_v53  ;;  %v2260_v53 = vld [vmem:[%s3806_s7 + $0x88] sm:$0xff] }
 0x1e0   : > { %2888 = vmatpush3.bf16.msra.mxu1 %v2887_v50  ;;  %2583 = vmatprep.mubr.msk.f32.mxu1 %vm3074_vm0, %v3075_v7  ;;  %v1148_v50 = vld [vmem:[%s3805_s6] sm:$0x3]  ;;  %v2256_v54 = vld [vmem:[%s3805_s6 + $0x2] sm:$0x3] }
 0x1e1   : > { %2889 = vmatprep.subr.bf16.mxu1 %v3073_v4 }
 0x1e4   : > { %2891 = vmatpush3.bf16.msra.mxu1 %v2890_v55  ;;  %v2911_v55 = vpack.c.bf16 %v2260_v53, %v2259_v52  ;;  %v2294_v52 = vld [vmem:[%s3807_s8] ss:$0 sm:$0xff] }
 0x1e5   : > { %2892 = vmatprep.subr.bf16.mxu1 %v3073_v4 }
 0x1e8   : > { %2894 = vmatpush3.bf16.msra.mxu1 %v2893_v58  ;;  %v2914_v58 = vpack.c.bf16 %v2262_v57, %v2261_v56  ;;  %v2295_v57 = vld [vmem:[%s3808_s9] ss:$0 sm:$0xff] }
 0x1e9   : > { %2895 = vmatprep.subr.bf16.mxu1 %v3073_v4 }
 0x1ec   : > { %2897 = vmatpush3.bf16.msra.mxu1 %v2896_v61  ;;  %v2917_v61 = vpack.c.bf16 %v2264_v60, %v2263_v59  ;;  %v2296_v59 = vld [vmem:[%s3809_s10] ss:$0 sm:$0xff] }
 0x1ed   : > { %2586 = vmatprep.subr.mxu1 %v3075_v7  ;;  %v2302_v60 = vld [vmem:[%s3811_s12 + $0x80] sm:$0xff] }
 0x1ef   : > { %2584 = vmatmul.mubr.msk.f32.vlgmr.msra.gmra.mrb[6].mxu1 %vm832_vm2, %v736_v48 }
 0x1f0   : > { %2587 = vmatpush3.msra.mxu1 %v662_v30  ;;  %2588 = vmatprep.mubr.msk.f32.mxu1 %vm3074_vm0, %v3075_v7  ;;  %v1234_v30 = vld [vmem:[%s3806_s7 + $0x38] sm:$0xff] }
 0x1f1   : > { %2610 = vmatprep.subr.mxu1 %v3075_v7  ;;  %v2944_v31 = vpack.c.bf16 %v1234_v30, %v1233_v29  ;;  %v2284_v29 = vld [vmem:[%s3806_s7 + $0x130] sm:$0xff]  ;;  %v2285_v30 = vld [vmem:[%s3806_s7 + $0x138] sm:$0xff] }
 0x1f3   : > { %2589 = vmatmul.mubr.msk.f32.vlgmr.msra.gmra.mrb[8].mxu1 %vm666_vm1, %v2242_v62  ;;  %v2265_v62 = vld [vmem:[%s3806_s7 + $0xb0] sm:$0xff] }
 0x1f4   : > { %2612 = vmatprep.mubr.msk.f32.mxu1 %vm3074_vm0, %v3075_v7  ;;  %v2920_v0 = vpack.c.bf16 %v2266_v63, %v2265_v62  ;;  %v2303_v62 = vld [vmem:[%s3811_s12 + $0x88] sm:$0xff]  ;;  %v1744_v63 = vld [vmem:[%s3811_s12] sm:$0xff] }
 0x1f5   : > { %v2983_v5 = vpack.c.bf16 %v2303_v62, %v2302_v60  ;;  %v2326_v62 = vld [vmem:[%s3811_s12 + $0x128] sm:$0xff] }
 0x2b2   : > { %v902_v13 = vpop.f32.mrb[4].mxu1 }
 0x2b3   : > { %v2566_v14 = vpop.f32.mrb[5].mxu1 }
 0x2c2   : > { %v975_v15 = vpop.f32.mrb[6].mxu1 }
 0x2c3   : > { %v976_v16 = vadd.f32 %v975_v15, %v902_v13  ;;  %v2585_v17 = vpop.f32.mrb[7].mxu1  ;;  %v2274_v13 = vld [vmem:[%s3806_s7 + $0xf8] sm:$0xff] }
 0x2c4   : > { %v2932_v14 = vpack.c.bf16 %v2274_v13, %v2273_v12  ;;  %v2278_v17 = vld [vmem:[%s3806_s7 + $0x100] sm:$0xff]  ;;  %v2986_v12 = vpack.c.bf16 %v2305_v9, %v2304_v6  ;;  %v2331_v6 = vld [vmem:[%s3811_s12 + $0x150] sm:$0xff] }
 0x2c5   : > { %v2306_v13 = vld [vmem:[%s3811_s12 + $0xa0] sm:$0xff] }
 0x2c6   : > { %v1050_v18 = vpop.f32.mrb[8].mxu1 }
 0x2c7   : > { %v2590_v19 = vpop.f32.mrb[9].mxu1  ;;  %2608 = vmatmul.mubr.msk.f32.vlgmr.msra.gmra.mrb[2].mxu0 %vm832_vm2, %v1050_v18  ;;  %v2279_v18 = vld [vmem:[%s3806_s7 + $0x108] sm:$0xff] }
 0x2c8   : > { %2687 = vmatprep.mubr.msk.f32.mxu0 %vm3074_vm0, %v3075_v7  ;;  %2936 = vmatpush3.bf16.msra.mxu0 %v2935_v22  ;;  %v2959_v22 = vpack.c.bf16 %v2279_v18, %v2278_v17  ;;  %v1749_v17 = vld [vmem:[%s3811_s12 + $0x28] sm:$0xff] }
 0x2c9   : > { %2937 = vmatprep.subr.bf16.mxu0 %v3073_v4 }
 0x2cc   : > { %2939 = vmatpush3.bf16.msra.mxu0 %v2938_v25  ;;  %v2962_v25 = vpack.c.bf16 %v2281_v24, %v2280_v23  ;;  %v1751_v23 = vld [vmem:[%s3811_s12 + $0x38] sm:$0xff] }
 0x2cd   : > { %2940 = vmatprep.subr.bf16.mxu0 %v3073_v4 }
 0x2d0   : > { %2942 = vmatpush3.bf16.msra.mxu0 %v2941_v28  ;;  %v2965_v28 = vpack.c.bf16 %v2283_v27, %v2282_v26  ;;  %v2311_v27 = vld [vmem:[%s3811_s12 + $0xc8] sm:$0xff] }
 0x2d1   : > { %2943 = vmatprep.subr.bf16.mxu0 %v3073_v4 }
 0x2d4   : > { %2945 = vmatpush3.bf16.msra.mxu0 %v2944_v31  ;;  %v2968_v31 = vpack.c.bf16 %v2285_v30, %v2284_v29  ;;  %v1753_v29 = vld [vmem:[%s3811_s12 + $0x48] sm:$0xff] }
 0x2d5   : > { %2946 = vmatprep.subr.bf16.mxu0 %v3073_v4 }
 0x2d8   : > { %2948 = vmatpush3.bf16.msra.mxu0 %v2947_v34  ;;  %v2971_v34 = vpack.c.bf16 %v2287_v33, %v2286_v32  ;;  %v2313_v33 = vld [vmem:[%s3811_s12 + $0xd8] sm:$0xff] }
 0x2d9   : > { %2949 = vmatprep.subr.bf16.mxu0 %v3073_v4 }
 0x2dc   : > { %2951 = vmatpush3.bf16.msra.mxu0 %v2950_v37  ;;  %v2974_v37 = vpack.c.bf16 %v2289_v36, %v2288_v35  ;;  %v1755_v35 = vld [vmem:[%s3811_s12 + $0x58] sm:$0xff] }
 0x2dd   : > { %2952 = vmatprep.subr.bf16.mxu0 %v3073_v4 }
 0x2e0   : > { %2954 = vmatpush3.bf16.msra.mxu0 %v2953_v40  ;;  %v2977_v40 = vpack.c.bf16 %v2291_v39, %v2290_v38  ;;  %v2315_v39 = vld [vmem:[%s3811_s12 + $0xe8] sm:$0xff] }
 0x2e1   : > { %2955 = vmatprep.subr.bf16.mxu0 %v3073_v4 }
 0x2e4   : > { %2957 = vmatpush3.bf16.msra.mxu0 %v2956_v43  ;;  %v2980_v43 = vpack.c.bf16 %v2293_v42, %v2292_v41  ;;  %v1757_v41 = vld [vmem:[%s3811_s12 + $0x68] sm:$0xff] }
 0x2e5   : > { %2735 = vmatprep.subr.mxu0 %v3075_v7 }
 0x39a   : > { %v1132_v44 = vpop.f32.mrb[2].mxu0 }
 0x39b   : > { %v1136_v46 = vadd.f32 %v1132_v44, %v976_v16  ;;  %v2609_v47 = vpop.f32.mrb[3].mxu0 }
 0x39d   : > { %v1144_v48 = vadd.f32 %v2253_v45, %v1136_v46 }
 0x39f   : > { %vm1145_vm3 = vcmp.ge.f32.partialorder %v1144_v48, 0.0  ;;  %v1146_v49 = vmul.f32 0.2, %v1144_v48 }
 0x3a1   : > { %v1147_v51 = vsel %vm1145_vm3, %v1144_v48, %v1146_v49 }
 0x3a2   : > { %2611 = vmatpush3.msk.msra.mxu1 %vm1153_vm4, %v1147_v51 }
 0x3a3   : > { %2613 = vmatmul.mubr.msk.f32.vlgmr.msra.gmra.mrb[10].mxu1 %vm1149_vm5, %v1148_v50  ;;  %2615 = vmatprep.subr.mxu1 %v3075_v7 }
 0x3a4   : > { %2616 = vmatpush3.msk.msra.mxu1 %vm1153_vm4, %v1147_v51  ;;  %2617 = vmatprep.mubr.msk.f32.mxu1 %vm3074_vm0, %v3075_v7 }
 0x3a5   : > { %2910 = vmatprep.subr.bf16.mxu1 %v3073_v4 }
 0x3a7   : > { %2618 = vmatmul.mubr.msk.f32.vlgmr.msra.gmra.mrb[12].mxu1 %vm1149_vm5, %v2256_v54 }
 0x3a8   : > { %2912 = vmatpush3.bf16.msra.mxu1 %v2911_v55  ;;  %2652 = vmatprep.mubr.msk.f32.mxu1 %vm3074_vm0, %v3075_v7 }
 0x3a9   : > { %2913 = vmatprep.subr.bf16.mxu1 %v3073_v4 }
 0x3ac   : > { %2915 = vmatpush3.bf16.msra.mxu1 %v2914_v58 }
 0x3ad   : > { %2916 = vmatprep.subr.bf16.mxu1 %v3073_v4 }
 0x3b0   : > { %2918 = vmatpush3.bf16.msra.mxu1 %v2917_v61 }
 0x3b1   : > { %2919 = vmatprep.subr.bf16.mxu1 %v3073_v4 }
 0x3b4   : > { %2921 = vmatpush3.bf16.msra.mxu1 %v2920_v0  ;;  %v1745_v0 = vld [vmem:[%s3811_s12 + $0x8] sm:$0xff] }
 0x3b5   : > { %2922 = vmatprep.subr.bf16.mxu1 %v3073_v4 }
 0x3b8   : > { %2924 = vmatpush3.bf16.msra.mxu1 %v2923_v3  ;;  %v1665_v3 = vld [vmem:[%s3810_s11] sm:$0x1] }
 0x3b9   : > { %2925 = vmatprep.subr.bf16.mxu1 %v3073_v4 }
 0x3bc   : > { %2927 = vmatpush3.bf16.msra.mxu1 %v2926_v8  ;;  %v3007_v8 = vpack.c.bf16 %v1745_v0, %v1744_v63  ;;  %v2327_v0 = vld [vmem:[%s3811_s12 + $0x130] sm:$0xff] }
 0x3bd   : > { %2928 = vmatprep.subr.bf16.mxu1 %v3073_v4 }
 0x3c0   : > { %2930 = vmatpush3.bf16.msra.mxu1 %v2929_v11  ;;  %v1747_v11 = vld [vmem:[%s3811_s12 + $0x18] sm:$0xff] }
 0x3c1   : > { %2931 = vmatprep.subr.bf16.mxu1 %v3073_v4 }
 0x3c4   : > { %2933 = vmatpush3.bf16.msra.mxu1 %v2932_v14  ;;  %v3010_v14 = vpack.c.bf16 %v1747_v11, %v1746_v10  ;;  %v2333_v10 = vld [vmem:[%s3811_s12 + $0x160] sm:$0xff]  ;;  %v2334_v11 = vld [vmem:[%s3811_s12 + $0x168] sm:$0xff] }
 0x3c5   : > { %2690 = vmatprep.subr.mxu1 %v3075_v7 }
 0x476   : > { %v1223_v15 = vpop.f32.mrb[10].mxu1 }
 0x477   : > { %v2614_v16 = vpop.f32.mrb[11].mxu1  ;;  %2688 = vmatmul.mubr.f32.vlgmr.msra.gmra.mrb[4].mxu0 %v1223_v15  ;;  %v2307_v15 = vld [vmem:[%s3811_s12 + $0xa8] sm:$0xff] }
 0x478   : > { %2737 = vmatprep.mubr.msk.f32.mxu0 %vm3074_vm0, %v3075_v7  ;;  %v1748_v16 = vld [vmem:[%s3811_s12 + $0x20] sm:$0xff]  ;;  %v2989_v18 = vpack.c.bf16 %v2307_v15, %v2306_v13  ;;  %v2335_v13 = vld [vmem:[%s3811_s12 + $0x170] sm:$0xff] }
 0x47a   : > { %v1314_v19 = vpop.f32.mrb[12].mxu1 }
 0x47b   : > { %v2619_v20 = vpop.f32.mrb[13].mxu1  ;;  %2653 = vmatmul.mubr.f32.vlgmr.msra.gmra.mrb[14].mxu1 %v1314_v19  ;;  %v2308_v19 = vld [vmem:[%s3811_s12 + $0xb0] sm:$0xff] }
 0x47c   : > { %2691 = vmatpush3.msk.msra.mxu1 %vm1153_vm4, %v1147_v51  ;;  %2692 = vmatprep.mubr.msk.f32.mxu1 %vm3074_vm0, %v3075_v7  ;;  %v3013_v20 = vpack.c.bf16 %v1749_v17, %v1748_v16 }
 0x47d   : > { %2958 = vmatprep.subr.bf16.mxu1 %v3073_v4 }
 0x47f   : > { %2693 = vmatmul.mubr.msk.f32.vlgmr.msra.gmra.mrb[16].mxu1 %vm1149_vm5, %v2275_v21  ;;  %v2309_v21 = vld [vmem:[%s3811_s12 + $0xb8] sm:$0xff] }
 0x480   : > { %2960 = vmatpush3.bf16.msra.mxu1 %v2959_v22  ;;  %2727 = vmatprep.mubr.msk.f32.mxu1 %vm3074_vm0, %v3075_v7  ;;  %v1750_v22 = vld [vmem:[%s3811_s12 + $0x30] sm:$0xff]  ;;  %v2992_v24 = vpack.c.bf16 %v2309_v21, %v2308_v19 }
 0x481   : > { %2961 = vmatprep.subr.bf16.mxu1 %v3073_v4  ;;  %v3016_v26 = vpack.c.bf16 %v1751_v23, %v1750_v22 }
 0x484   : > { %2963 = vmatpush3.bf16.msra.mxu1 %v2962_v25  ;;  %v2310_v25 = vld [vmem:[%s3811_s12 + $0xc0] sm:$0xff] }
 0x485   : > { %2964 = vmatprep.subr.bf16.mxu1 %v3073_v4  ;;  %v2995_v30 = vpack.c.bf16 %v2311_v27, %v2310_v25 }
 0x488   : > { %2966 = vmatpush3.bf16.msra.mxu1 %v2965_v28  ;;  %v1752_v28 = vld [vmem:[%s3811_s12 + $0x40] sm:$0xff] }
 0x489   : > { %2967 = vmatprep.subr.bf16.mxu1 %v3073_v4  ;;  %v3019_v32 = vpack.c.bf16 %v1753_v29, %v1752_v28  ;;  %v2160_v28 = vld [vmem:[%s3813_s14] sm:$0x1] }
 0x48c   : > { %2969 = vmatpush3.bf16.msra.mxu1 %v2968_v31  ;;  %v2312_v31 = vld [vmem:[%s3811_s12 + $0xd0] sm:$0xff] }
 0x48d   : > { %2970 = vmatprep.subr.bf16.mxu1 %v3073_v4  ;;  %v2998_v36 = vpack.c.bf16 %v2313_v33, %v2312_v31 }
 0x490   : > { %2972 = vmatpush3.bf16.msra.mxu1 %v2971_v34  ;;  %v1754_v34 = vld [vmem:[%s3811_s12 + $0x50] sm:$0xff] }
 0x491   : > { %2973 = vmatprep.subr.bf16.mxu1 %v3073_v4  ;;  %v3022_v38 = vpack.c.bf16 %v1755_v35, %v1754_v34 }
 0x494   : > { %2975 = vmatpush3.bf16.msra.mxu1 %v2974_v37  ;;  %v2314_v37 = vld [vmem:[%s3811_s12 + $0xe0] sm:$0xff] }
 0x495   : > { %2976 = vmatprep.subr.bf16.mxu1 %v3073_v4  ;;  %v3001_v42 = vpack.c.bf16 %v2315_v39, %v2314_v37 }
 0x498   : > { %2978 = vmatpush3.bf16.msra.mxu1 %v2977_v40  ;;  %v1756_v40 = vld [vmem:[%s3811_s12 + $0x60] sm:$0xff] }
 0x499   : > { %2979 = vmatprep.subr.bf16.mxu1 %v3073_v4 }
 0x49c   : > { %2981 = vmatpush3.bf16.msra.mxu1 %v2980_v43  ;;  %v3025_v43 = vpack.c.bf16 %v1757_v41, %v1756_v40 }
 0x49d   : > { %2730 = vmatprep.subr.mxu1 %v3075_v7 }
 0x54a   : > { %v1471_v44 = vpop.f32.mrb[4].mxu0 }
 0x54b   : > { %v2689_v45 = vpop.f32.mrb[5].mxu0 }
 0x54c   : > { %v2317_v45 = vld [vmem:[%s3811_s12 + $0xf8] sm:$0xff] }
 0x54e   : > { %v1401_v46 = vpop.f32.mrb[14].mxu1 }
 0x54f   : > { %v1472_v47 = vadd.f32 %v1471_v44, %v1401_v46  ;;  %v2654_v48 = vpop.f32.mrb[15].mxu1  ;;  %v2316_v44 = vld [vmem:[%s3811_s12 + $0xf0] sm:$0xff] }
 0x550   : > { %v3004_v46 = vpack.c.bf16 %v2317_v45, %v2316_v44  ;;  %v1759_v48 = vld [vmem:[%s3811_s12 + $0x78] sm:$0xff] }
 0x552   : > { %v1546_v49 = vpop.f32.mrb[16].mxu1 }
 0x553   : > { %v2694_v50 = vpop.f32.mrb[17].mxu1  ;;  %2728 = vmatmul.mubr.f32.vlgmr.msra.gmra.mrb[18].mxu1 %v1546_v49 }
 0x554   : > { %2732 = vmatprep.mubr.msk.f32.mxu1 %vm3074_vm0, %v3075_v7  ;;  %v2321_v50 = vld [vmem:[%s3811_s12 + $0x100] sm:$0xff] }
 0x626   : > { %v1633_v51 = vpop.f32.mrb[18].mxu1 }
 0x627   : > { %v1637_v53 = vadd.f32 %v1633_v51, %v1472_v47  ;;  %v2729_v54 = vpop.f32.mrb[19].mxu1  ;;  %v1758_v47 = vld [vmem:[%s3811_s12 + $0x70] sm:$0xff]  ;;  %v2322_v51 = vld [vmem:[%s3811_s12 + $0x108] sm:$0xff] }
 0x628   : > { %v3028_v49 = vpack.c.bf16 %v1759_v48, %v1758_v47 }
 0x629   : > { %v1645_v55 = vadd.f32 %v2294_v52, %v1637_v53 }
 0x62b   : > { %vm1646_vm6 = vcmp.ge.f32.partialorder %v1645_v55, 0.0  ;;  %v1647_v56 = vmul.f32 0.2, %v1645_v55 }
 0x62d   : > { %v1648_v58 = vsel %vm1646_vm6, %v1645_v55, %v1647_v56  ;;  %v2318_v56 = vld [vmem:[%s3810_s11 + $0x2] sm:$0x1] }
 0x62e   : > { %v1656_v61 = vmul.f32 %v2295_v57, %v1648_v58  ;;  %v3031_v57 = vpack.c.bf16 %v2322_v51, %v2321_v50  ;;  %v2323_v58 = vld [vmem:[%s3811_s12 + $0x110] sm:$0xff] }
 0x630   : > { %v3595_v1 = vadd.f32 %v2296_v59, %v1656_v61  ;;  %v2324_v59 = vld [vmem:[%s3811_s12 + $0x118] sm:$0xff]  ;;  %v2325_v61 = vld [vmem:[%s3811_s12 + $0x120] sm:$0xff] }
 0x631   : > { %v3034_v60 = vpack.c.bf16 %v2324_v59, %v2323_v58  ;;  %v3037_v63 = vpack.c.bf16 %v2326_v62, %v2325_v61 }
 0x632   : > { %2731 = vmatpush3.msk.msra.mxu1 %vm1670_vm7, %v3595_v1  ;;  %2736 = vmatpush3.msk.msra.mxu0 %vm1670_vm7, %v3595_v1 }
 0x633   : > { %2738 = vmatmul.mubr.msk.f32.vlgmr.msra.gmra.mrb[6].mxu0 %vm1666_vm8, %v2299_v2  ;;  %2733 = vmatmul.mubr.msk.f32.vlgmr.msra.gmra.mrb[20].mxu1 %vm1666_vm8, %v1665_v3  ;;  %v2329_v2 = vld [vmem:[%s3811_s12 + $0x140] sm:$0xff]  ;;  %v2330_v3 = vld [vmem:[%s3811_s12 + $0x148] sm:$0xff] }
 0x634   : > { %2982 = vmatprep.subr.bf16.mxu0 %v3073_v4  ;;  %3006 = vmatprep.subr.bf16.mxu1 %v3073_v4 }
 0x635   : > { %2984 = vmatpush3.bf16.msra.mxu0 %v2983_v5  ;;  %3008 = vmatpush3.bf16.msra.mxu1 %v3007_v8  ;;  %v3043_v5 = vpack.c.bf16 %v2330_v3, %v2329_v2  ;;  %v2332_v8 = vld [vmem:[%s3811_s12 + $0x158] sm:$0xff] }
 0x636   : > { %2985 = vmatprep.subr.bf16.mxu0 %v3073_v4  ;;  %3009 = vmatprep.subr.bf16.mxu1 %v3073_v4  ;;  %v3046_v9 = vpack.c.bf16 %v2332_v8, %v2331_v6 }
 0x637   : > { %2772 = vmatprep.mubr.msk.f32.mxu0 %vm3074_vm0, %v3075_v7  ;;  %2807 = vmatprep.mubr.msk.f32.mxu1 %vm3074_vm0, %v3075_v7 }
 0x639   : > { %2987 = vmatpush3.bf16.msra.mxu0 %v2986_v12  ;;  %3011 = vmatpush3.bf16.msra.mxu1 %v3010_v14  ;;  %v3049_v12 = vpack.c.bf16 %v2334_v11, %v2333_v10  ;;  %v2336_v14 = vld [vmem:[%s3811_s12 + $0x178] sm:$0xff] }
 0x63a   : > { %2988 = vmatprep.subr.bf16.mxu0 %v3073_v4  ;;  %3012 = vmatprep.subr.bf16.mxu1 %v3073_v4  ;;  %v3052_v15 = vpack.c.bf16 %v2336_v14, %v2335_v13 }
 0x63d   : > { %2990 = vmatpush3.bf16.msra.mxu0 %v2989_v18  ;;  %3014 = vmatpush3.bf16.msra.mxu1 %v3013_v20 }
 0x63e   : > { %2991 = vmatprep.subr.bf16.mxu0 %v3073_v4  ;;  %3015 = vmatprep.subr.bf16.mxu1 %v3073_v4 }
 0x641   : > { %2993 = vmatpush3.bf16.msra.mxu0 %v2992_v24  ;;  %3017 = vmatpush3.bf16.msra.mxu1 %v3016_v26 }
 0x642   : > { %2994 = vmatprep.subr.bf16.mxu0 %v3073_v4  ;;  %3018 = vmatprep.subr.bf16.mxu1 %v3073_v4 }
 0x645   : > { %2996 = vmatpush3.bf16.msra.mxu0 %v2995_v30  ;;  %3020 = vmatpush3.bf16.msra.mxu1 %v3019_v32  ;;  %v2162_v30 = vld [vmem:[%s3814_s15] sm:$0x1] }
 0x646   : > { %2997 = vmatprep.subr.bf16.mxu0 %v3073_v4  ;;  %3021 = vmatprep.subr.bf16.mxu1 %v3073_v4  ;;  %v2164_v32 = vld [vmem:[%s3815_s16] sm:$0x1] }
 0x649   : > { %2999 = vmatpush3.bf16.msra.mxu0 %v2998_v36  ;;  %3023 = vmatpush3.bf16.msra.mxu1 %v3022_v38  ;;  %v2171_v36 = vld [vmem:[#allocation2] sm:$0x1] }
 0x64a   : > { %3000 = vmatprep.subr.bf16.mxu0 %v3073_v4  ;;  %3024 = vmatprep.subr.bf16.mxu1 %v3073_v4 }
 0x64d   : > { %3002 = vmatpush3.bf16.msra.mxu0 %v3001_v42  ;;  %3026 = vmatpush3.bf16.msra.mxu1 %v3025_v43 }
 0x64e   : > { %3003 = vmatprep.subr.bf16.mxu0 %v3073_v4  ;;  %3027 = vmatprep.subr.bf16.mxu1 %v3073_v4 }
 0x651   : > { %3005 = vmatpush3.bf16.msra.mxu0 %v3004_v46  ;;  %3029 = vmatpush3.bf16.msra.mxu1 %v3028_v49 }
 0x652   : > { %2810 = vmatprep.subr.mxu0 %v3075_v7 }
 0x706   : > { %v1831_v52 = vpop.f32.mrb[6].mxu0  ;;  %v1740_v53 = vpop.f32.mrb[20].mxu1 }
 0x707   : > { %2773 = vmatmul.mubr.f32.vlgmr.msra.gmra.mrb[8].mxu0 %v1831_v52  ;;  %v2739_v54 = vpop.f32.mrb[7].mxu0  ;;  %2808 = vmatmul.mubr.f32.vlgmr.msra.gmra.mrb[22].mxu1 %v1740_v53  ;;  %v2734_v55 = vpop.f32.mrb[21].mxu1 }
 0x708   : > { %2811 = vmatpush3.msk.msra.mxu0 %vm1670_vm7, %v3595_v1  ;;  %2812 = vmatprep.mubr.msk.f32.mxu0 %vm3074_vm0, %v3075_v7 }
 0x709   : > { %3030 = vmatprep.subr.bf16.mxu0 %v3073_v4 }
 0x70b   : > { %2813 = vmatmul.mubr.msk.f32.vlgmr.msra.gmra.mrb[10].mxu0 %vm1666_vm8, %v2318_v56 }
 0x70c   : > { %3032 = vmatpush3.bf16.msra.mxu0 %v3031_v57  ;;  %2847 = vmatprep.mubr.msk.f32.mxu0 %vm3074_vm0, %v3075_v7  ;;  %v2328_v7 = vld [vmem:[%s3811_s12 + $0x138] sm:$0xff] }
 0x70d   : > { %3033 = vmatprep.subr.bf16.mxu0 %v3073_v4  ;;  %v3040_v1 = vpack.c.bf16 %v2328_v7, %v2327_v0 }
 0x710   : > { %3035 = vmatpush3.bf16.msra.mxu0 %v3034_v60 }
 0x711   : > { %3036 = vmatprep.subr.bf16.mxu0 %v3073_v4 }
 0x714   : > { %3038 = vmatpush3.bf16.msra.mxu0 %v3037_v63 }
 0x715   : > { %3039 = vmatprep.subr.bf16.mxu0 %v3073_v4 }
 0x718   : > { %3041 = vmatpush3.bf16.msra.mxu0 %v3040_v1 }
 0x719   : > { %3042 = vmatprep.subr.bf16.mxu0 %v3073_v4 }
 0x71c   : > { %3044 = vmatpush3.bf16.msra.mxu0 %v3043_v5 }
 0x71d   : > { %3045 = vmatprep.subr.bf16.mxu0 %v3073_v4 }
 0x720   : > { %3047 = vmatpush3.bf16.msra.mxu0 %v3046_v9 }
 0x721   : > { %3048 = vmatprep.subr.bf16.mxu0 %v3073_v4 }
 0x724   : > { %3050 = vmatpush3.bf16.msra.mxu0 %v3049_v12 }
 0x725   : > { %3051 = vmatprep.subr.bf16.mxu0 %v3073_v4  ;;  %v2155_v4 = vld [vmem:[%s3812_s13] sm:$0x1] }
 0x728   : > { %3053 = vmatpush3.bf16.msra.mxu0 %v3052_v15 }
 0x7da   : > { %v1918_v16 = vpop.f32.mrb[8].mxu0  ;;  %v1988_v17 = vpop.f32.mrb[22].mxu1 }
 0x7db   : > { %v2774_v18 = vpop.f32.mrb[9].mxu0  ;;  %v1989_v19 = vadd.f32 %v1988_v17, %v1918_v16  ;;  %v2809_v20 = vpop.f32.mrb[23].mxu1 }
 0x7de   : > { %v2063_v21 = vpop.f32.mrb[10].mxu0 }
 0x7df   : > { %2848 = vmatmul.mubr.f32.vlgmr.msra.gmra.mrb[12].mxu0 %v2063_v21  ;;  %v2814_v22 = vpop.f32.mrb[11].mxu0 }
 0x8b2   : > { %v2150_v23 = vpop.f32.mrb[12].mxu0 }
 0x8b3   : > { %v2154_v24 = vadd.f32 %v2150_v23, %v1989_v19  ;;  %v2849_v25 = vpop.f32.mrb[13].mxu0 }
 0x8b5   : > { %v2156_v26 = vadd.f32 %v2155_v4, %v2154_v24 }
 0x8b7   : > { %vm2157_vm9 = vcmp.ge.f32.partialorder %v2156_v26, 0.0  ;;  %v2158_v27 = vmul.f32 0.2, %v2156_v26 }
 0x8b9   : > { %v2159_v29 = vsel %vm2157_vm9, %v2156_v26, %v2158_v27 }
 0x8ba   : > { %v2161_v31 = vmul.f32 %v2160_v28, %v2159_v29 }
 0x8bc   : > { %v2163_v33 = vadd.f32 %v2162_v30, %v2161_v31 }
 0x8be   : > { %v2165_v34 = vmul.f32 %v2164_v32, %v2163_v33 }
 0x8c0   : > { %v2167_v35 = vsel %vm2166_vm10, %v2165_v34, 0.0 }
 0x8c1   : > { %2168 = vadd.xlane.f32.xlu0 %v2167_v35 }
 0x94e   : > { %v2169_v37 = vpop.xlane.xlu0 %2168 }
 0x94f   : > { %v2172_v38 = vadd.f32 %v2171_v36, %v2169_v37 }
 0x951   : > { %2174 = vst.msk [vmem:[%s570_s21] sm:$0x1] %vm2173_vm11, %v2172_v38 }
 0x952 PF: > { %s30_s29 = sadd.s32 1, %s3071_s29  }
 0x953   : > { %p27_p4 = scmp.ge.s32.totalorder %s30_s29, 4  }
 0x955   :  { %29 = sbr.rel (!%p27_p4) target bundleno = 4 (0x4), region = 134 }

// kernel: _forward_impl.6
= control target key start
LH: loop header
LB: loop body
LE: loop exit
PB: predicated region body
PF: predicated region fallthrough
CT: control target
= control target key end

     0   :  { %s3232_s29 = smov 0   ;;  %s3844_s0 = inlined_call_operand.vmem [shape: f32[2,16,128], index: 0, kind: input, shape index: {}]   ;;  %s3845_s1 = inlined_call_operand.vmem [shape: f32[128,64], index: 1, kind: input, shape index: {}]   ;;  %s3846_s2 = inlined_call_operand.vmem [shape: f32[1,64], index: 2, kind: input, shape index: {}]   ;;  %s3847_s3 = inlined_call_operand.vmem [shape: f32[3,8,16], index: 3, kind: input, shape index: {}]   ;;  %s3848_s4 = inlined_call_operand.vmem [shape: f32[3,64,128], index: 4, kind: input, shape index: {}]   ;;  %s3849_s5 = inlined_call_operand.vmem [shape: f32[1,128], index: 5, kind: input, shape index: {}]   ;;  %s3850_s6 = inlined_call_operand.vmem [shape: f32[3,4,8], index: 6, kind: input, shape index: {}]   ;;  %s3851_s7 = inlined_call_operand.vmem [shape: f32[3,128,128], index: 7, kind: input, shape index: {}]   ;;  %s3852_s8 = inlined_call_operand.vmem [shape: f32[1,128], index: 8, kind: input, shape index: {}]   ;;  %s3853_s9 = inlined_call_operand.vmem [shape: f32[1,128], index: 9, kind: input, shape index: {}]   ;;  %s3854_s10 = inlined_call_operand.vmem [shape: f32[1,128], index: 10, kind: input, shape index: {}]   ;;  %s3855_s11 = inlined_call_operand.vmem [shape: f32[3,2,4], index: 11, kind: input, shape index: {}]   ;;  %s3856_s12 = inlined_call_operand.vmem [shape: f32[3,128,128], index: 12, kind: input, shape index: {}]   ;;  %s3857_s13 = inlined_call_operand.vmem [shape: f32[1,128], index: 13, kind: input, shape index: {}]   ;;  %s3858_s14 = inlined_call_operand.vmem [shape: f32[1,128], index: 14, kind: input, shape index: {}]   ;;  %s3859_s15 = inlined_call_operand.vmem [shape: f32[1,128], index: 15, kind: input, shape index: {}]   ;;  %s3860_s16 = inlined_call_operand.vmem [shape: f32[2,128], index: 16, kind: input, shape index: {}]   ;;  %s3861_s17 = inlined_call_operand.<no memory space> [shape: f32[1,1], index: 17, kind: input, shape index: {}]   ;;  %s3862_s18 = inlined_call_operand.vmem [shape: f32[2,1,1], index: 18, kind: output, shape index: {}]  }
   0x1   :  { %3864 = sst [smem:[#allocation3_spill]] %s3844_s0  ;;  %v23_v0 = vstv %s3861_s17 }
   0x2   :  { %3865 = sst [smem:[#allocation4_spill]] %s3845_s1  ;;  %24 = vst [vmem:[#allocation2] sm:$0x1] %v23_v0 }
   0x3   :  { %3866 = sst [smem:[#allocation5_spill]] %s3846_s2 }
   0x4 LB: > { %s2251_s30 = sadd.s32 4294967295, %s3129_s29   ;;  %p2255_p0 = scmp.ge.s32.totalorder %s3129_s29, 1  ;;  %s3129_s29 = sphi %s3232_s29, %s30_s29  }
   0x5   : > { %p514_p1 = scmp.lt.s32.totalorder %s3129_s29, 3 }
   0x7   : > { %p515_p2 = pnand %p2255_p0, %p514_p1 }
   0x8   : > { %s3867_s1 = sld [smem:[#allocation4_spill]] (!%p515_p2)  ;;  %p566_p3 = scmp.lt.s32.totalorder (!%p515_p2), %s2251_s30, 1  ;;  %v3131_v27 = vmov (!%p515_p2), 0.0|0.0   ;;  %vm3132_vm0 = vmmov (!%p515_p2), 0   ;;  %v3133_v28 = vmov (!%p515_p2), 0.0   ;;  %v2262_v35 = vld [vmem:[%s3848_s4 + $0x40] sm:$0xff] (!%p515_p2) }
   0x9   : > { %518 = sbr.rel (%p515_p2) target bundleno = 2191 (0x88f), region = 92  ;;  %s3868_s17 = sld [smem:[#allocation3_spill]] (!%p515_p2)  ;;  %2926 = vmatprep.subr.bf16.mxu1 (!%p515_p2), %v3131_v27  ;;  %2584 = vmatprep.mubr.msk.f32.mxu1 (!%p515_p2), %vm3132_vm0, %v3133_v28  ;;  %v2263_v36 = vld [vmem:[%s3848_s4 + $0x48] sm:$0xff] (!%p515_p2)  ;;  %vm675_vm1 = vcmask (!%p515_p2), 130048   ;;  %v674_v38 = vld [vmem:[%s3847_s3] sm:$0xff] (!%p515_p2)  ;;  %v2264_v40 = vld [vmem:[%s3848_s4 + $0x50] sm:$0xff] (!%p515_p2) }
   0xa   : > { %s3869_s19 = sld [smem:[#allocation5_spill]] (!%p515_p2)  ;;  %v2260_v37 = vld [vmem:[%s3847_s3 + $0x8] sm:$0xff] (!%p515_p2)  ;;  %v2930_v39 = vpack.c.bf16 (!%p515_p2), %v2263_v36, %v2262_v35  ;;  %v2265_v41 = vld [vmem:[%s3848_s4 + $0x58] sm:$0xff] (!%p515_p2)  ;;  %v2272_v42 = vld [vmem:[%s3847_s3 + $0x10] sm:$0xff] (!%p515_p2)  ;;  %vm841_vm2 = vcmask (!%p515_p2), 523264   ;;  %vm1158_vm4 = vcmask (!%p515_p2), 64512  }
   0xb   : > { %v2933_v43 = vpack.c.bf16 (!%p515_p2), %v2265_v41, %v2264_v40  ;;  %v2266_v44 = vld [vmem:[%s3848_s4 + $0x60] sm:$0xff] (!%p515_p2)  ;;  %v2267_v45 = vld [vmem:[%s3848_s4 + $0x68] sm:$0xff] (!%p515_p2)  ;;  %v2268_v47 = vld [vmem:[%s3848_s4 + $0x70] sm:$0xff] (!%p515_p2)  ;;  %vm1675_vm6 = vcmask (!%p515_p2), 1043456   ;;  %vm1671_vm7 = vcmask (!%p515_p2), 31744   ;;  %vm2189_vm9 = vcmask (!%p515_p2), 1041408  }
   0xc   : > { %v2936_v46 = vpack.c.bf16 (!%p515_p2), %v2267_v45, %v2266_v44  ;;  %v2269_v48 = vld [vmem:[%s3848_s4 + $0x78] sm:$0xff] (!%p515_p2)  ;;  %v2274_v50 = vld [vmem:[%s3848_s4 + $0x80] sm:$0xff] (!%p515_p2)  ;;  %v2275_v51 = vld [vmem:[%s3848_s4 + $0x88] sm:$0xff] (!%p515_p2)  ;;  %vm2202_vm10 = vcmask (!%p515_p2), 0  }
   0xd   : > { %v2939_v49 = vpack.c.bf16 (!%p515_p2), %v2269_v48, %v2268_v47  ;;  %v2957_v52 = vpack.c.bf16 (!%p515_p2), %v2275_v51, %v2274_v50  ;;  %v2276_v53 = vld [vmem:[%s3848_s4 + $0x90] sm:$0xff] (!%p515_p2)  ;;  %v2277_v54 = vld [vmem:[%s3848_s4 + $0x98] sm:$0xff] (!%p515_p2)  ;;  %v2278_v56 = vld [vmem:[%s3848_s4 + $0xa0] sm:$0xff] (!%p515_p2) }
   0xe   : > { %v576_v1 = vld [vmem:[%s3867_s1] sm:$0xff] (!%p515_p2)  ;;  %v577_v2 = vld [vmem:[%s3867_s1 + $0x8] sm:$0xff] (!%p515_p2)  ;;  %v578_v3 = vld [vmem:[%s3867_s1 + $0x10] sm:$0xff] (!%p515_p2)  ;;  %v2960_v55 = vpack.c.bf16 (!%p515_p2), %v2277_v54, %v2276_v53 }
   0xf   : > { %v2891_v4 = vpack.c.bf16 (!%p515_p2), %v577_v2, %v576_v1  ;;  %v579_v5 = vld [vmem:[%s3867_s1 + $0x18] sm:$0xff] (!%p515_p2)  ;;  %v580_v7 = vld [vmem:[%s3867_s1 + $0x20] sm:$0xff] (!%p515_p2)  ;;  %v581_v8 = vld [vmem:[%s3867_s1 + $0x28] sm:$0xff] (!%p515_p2) }
  0x10   : > { %v2895_v6 = vpack.c.bf16 %v579_v5, %v578_v3  ;;  %s3871_s30 = smov (!%p566_p3, %s2251_s30), 1  ;;  %v2899_v9 = vpack.c.bf16 %v581_v8, %v580_v7  ;;  %v582_v10 = vld [vmem:[%s3867_s1 + $0x30] sm:$0xff]  ;;  %v583_v11 = vld [vmem:[%s3867_s1 + $0x38] sm:$0xff]  ;;  %v584_v14 = vld [vmem:[%s3867_s1 + $0x40] sm:$0xff] }
  0x11   : > { %2892 = vmatprep.subr.bf16.mxu0 %v2891_v4  ;;  %s2369_s28 = sshll.u32 %s3871_s30, 4  ;;  %v2903_v13 = vpack.c.bf16 %v583_v11, %v582_v10  ;;  %v585_v15 = vld [vmem:[%s3867_s1 + $0x48] sm:$0xff]  ;;  %v586_v17 = vld [vmem:[%s3867_s1 + $0x50] sm:$0xff]  ;;  %v587_v18 = vld [vmem:[%s3867_s1 + $0x58] sm:$0xff]  ;;  %s573_s22 = scalar_lea.vmem %s3862_s18, %s3871_s30 }
  0x12   : > { %2894 = vmatpush3.bf16.msra.mxu0 %v2891_v4  ;;  %s3264_s20 = scalar_lea.vmem %s3868_s17, %s2369_s28  ;;  %v2907_v16 = vpack.c.bf16 %v585_v15, %v584_v14  ;;  %v2911_v19 = vpack.c.bf16 %v587_v18, %v586_v17  ;;  %v588_v20 = vld [vmem:[%s3867_s1 + $0x60] sm:$0xff]  ;;  %v589_v21 = vld [vmem:[%s3867_s1 + $0x68] sm:$0xff]  ;;  %v590_v23 = vld [vmem:[%s3867_s1 + $0x70] sm:$0xff] }
  0x13   : > { %2896 = vmatprep.subr.bf16.mxu0 %v2895_v6  ;;  %v574_v12 = vld [vmem:[%s3264_s20] sm:$0xff]  ;;  %v2915_v22 = vpack.c.bf16 %v589_v21, %v588_v20  ;;  %v591_v24 = vld [vmem:[%s3867_s1 + $0x78] sm:$0xff]  ;;  %v575_v26 = vld [vmem:[%s3264_s20 + $0x8] sm:$0xff] }
  0x14   : > { %2570 = vmatprep.mubr.f32.mxu0 %v574_v12  ;;  %v2919_v25 = vpack.c.bf16 %v591_v24, %v590_v23  ;;  %v2258_v29 = vld [vmem:[%s3869_s19] ss:$0 sm:$0xff]  ;;  %v2279_v57 = vld [vmem:[%s3848_s4 + $0xa8] sm:$0xff]  ;;  %v2280_v59 = vld [vmem:[%s3848_s4 + $0xb0] sm:$0xff] }
  0x15   : > { %v2963_v58 = vpack.c.bf16 %v2279_v57, %v2278_v56  ;;  %v2281_v60 = vld [vmem:[%s3848_s4 + $0xb8] sm:$0xff]  ;;  %v749_v62 = vld [vmem:[%s3848_s4] sm:$0xff]  ;;  %v750_v63 = vld [vmem:[%s3848_s4 + $0x8] sm:$0xff] }
  0x16   : > { %2898 = vmatpush3.bf16.msra.mxu0 %v2895_v6  ;;  %v2966_v61 = vpack.c.bf16 %v2281_v60, %v2280_v59  ;;  %v2942_v0 = vpack.c.bf16 %v750_v63, %v749_v62  ;;  %v751_v1 = vld [vmem:[%s3848_s4 + $0x10] sm:$0xff]  ;;  %v752_v2 = vld [vmem:[%s3848_s4 + $0x18] sm:$0xff]  ;;  %v753_v8 = vld [vmem:[%s3848_s4 + $0x20] sm:$0xff] }
  0x17   : > { %2900 = vmatprep.subr.bf16.mxu0 %v2899_v9  ;;  %v2945_v7 = vpack.c.bf16 %v752_v2, %v751_v1  ;;  %v756_v14 = vld [vmem:[%s3848_s4 + $0x38] sm:$0xff]  ;;  %v1233_v17 = vld [vmem:[%s3851_s7 + $0x8] sm:$0xff]  ;;  %v1244_v36 = vld [vmem:[%s3851_s7 + $0x60] sm:$0xff] }
  0x18   : > { %v1235_v20 = vld [vmem:[%s3851_s7 + $0x18] sm:$0xff]  ;;  %v1237_v23 = vld [vmem:[%s3851_s7 + $0x28] sm:$0xff]  ;;  %v1157_v53 = vld [vmem:[%s3850_s6] sm:$0xf] }
  0x19   : > { %v1247_v40 = vld [vmem:[%s3851_s7 + $0x78] sm:$0xff]  ;;  %v2288_v56 = vld [vmem:[%s3851_s7 + $0x88] sm:$0xff]  ;;  %v2285_v57 = vld [vmem:[%s3850_s6 + $0x4] sm:$0xf] }
  0x1a   : > { %2902 = vmatpush3.bf16.msra.mxu0 %v2899_v9  ;;  %v754_v9 = vld [vmem:[%s3848_s4 + $0x28] sm:$0xff]  ;;  %v2289_v59 = vld [vmem:[%s3851_s7 + $0x90] sm:$0xff]  ;;  %v2290_v60 = vld [vmem:[%s3851_s7 + $0x98] sm:$0xff] }
  0x1b   : > { %2904 = vmatprep.subr.bf16.mxu0 %v2903_v13  ;;  %v2948_v12 = vpack.c.bf16 %v754_v9, %v753_v8  ;;  %v2291_v62 = vld [vmem:[%s3851_s7 + $0xa0] sm:$0xff]  ;;  %v2292_v63 = vld [vmem:[%s3851_s7 + $0xa8] sm:$0xff]  ;;  %v2293_v1 = vld [vmem:[%s3851_s7 + $0xb0] sm:$0xff] }
  0x1c   : > { %v2294_v2 = vld [vmem:[%s3851_s7 + $0xb8] sm:$0xff] }
  0x1d   : > { %v2298_v8 = vld [vmem:[%s3851_s7 + $0xd8] sm:$0xff] }
  0x1e   : > { %2906 = vmatpush3.bf16.msra.mxu0 %v2903_v13  ;;  %v755_v13 = vld [vmem:[%s3848_s4 + $0x30] sm:$0xff] }
  0x1f   : > { %2908 = vmatprep.subr.bf16.mxu0 %v2907_v16  ;;  %v2951_v15 = vpack.c.bf16 %v756_v14, %v755_v13  ;;  %v2301_v13 = vld [vmem:[%s3851_s7 + $0xf0] sm:$0xff]  ;;  %v2302_v14 = vld [vmem:[%s3851_s7 + $0xf8] sm:$0xff] }
  0x22   : > { %2910 = vmatpush3.bf16.msra.mxu0 %v2907_v16  ;;  %v1232_v16 = vld [vmem:[%s3851_s7] sm:$0xff] }
  0x23   : > { %2912 = vmatprep.subr.bf16.mxu0 %v2911_v19  ;;  %v2993_v18 = vpack.c.bf16 %v1233_v17, %v1232_v16  ;;  %v2305_v16 = vld [vmem:[%s3851_s7 + $0x100] sm:$0xff]  ;;  %v2306_v17 = vld [vmem:[%s3851_s7 + $0x108] sm:$0xff] }
  0x26   : > { %2914 = vmatpush3.bf16.msra.mxu0 %v2911_v19  ;;  %v1234_v19 = vld [vmem:[%s3851_s7 + $0x10] sm:$0xff] }
  0x27   : > { %2916 = vmatprep.subr.bf16.mxu0 %v2915_v22  ;;  %v2996_v21 = vpack.c.bf16 %v1235_v20, %v1234_v19  ;;  %v2307_v20 = vld [vmem:[%s3851_s7 + $0x110] sm:$0xff] }
  0x2a   : > { %2918 = vmatpush3.bf16.msra.mxu0 %v2915_v22  ;;  %v1236_v22 = vld [vmem:[%s3851_s7 + $0x20] sm:$0xff] }
  0x2b   : > { %2920 = vmatprep.subr.bf16.mxu0 %v2919_v25  ;;  %v2999_v24 = vpack.c.bf16 %v1237_v23, %v1236_v22 }
  0x2e   : > { %2922 = vmatpush3.bf16.msra.mxu0 %v2919_v25  ;;  %v1238_v25 = vld [vmem:[%s3851_s7 + $0x30] sm:$0xff] }
  0x2f   : > { %2923 = vmatprep.subr.bf16.mxu0 %v3131_v27 }
  0x31   : > { %2571 = vmatmul.mubr.f32.vlgmr.msra.gmra.mrb[0].mxu0 %v575_v26  ;;  %v1239_v26 = vld [vmem:[%s3851_s7 + $0x38] sm:$0xff] }
  0x32   : > { %2577 = vmatprep.mubr.msk.f32.mxu0 %vm3132_vm0, %v3133_v28 }
 0x104   : > { %v2572_v30 = vpop.f32.mrb[0].mxu0 }
 0x105   : > { %v671_v31 = vadd.f32 %v2572_v30, %v2258_v29  ;;  %v665_v32 = vpop.f32.mrb[1].mxu0  ;;  %v1240_v30 = vld [vmem:[%s3851_s7 + $0x40] sm:$0xff] }
 0x106   : > { %v666_v33 = vadd.f32 %v2258_v29, %v665_v32  ;;  %v3002_v29 = vpack.c.bf16 %v1239_v26, %v1238_v25  ;;  %v2309_v25 = vld [vmem:[%s3851_s7 + $0x120] sm:$0xff]  ;;  %v2310_v26 = vld [vmem:[%s3851_s7 + $0x128] sm:$0xff] }
 0x108   : > { %v2924_v34 = vpack.c.bf16 %v671_v31, %v666_v33  ;;  %v1241_v31 = vld [vmem:[%s3851_s7 + $0x48] sm:$0xff]  ;;  %v1242_v33 = vld [vmem:[%s3851_s7 + $0x50] sm:$0xff] }
 0x109   : > { %v3005_v32 = vpack.c.bf16 %v1241_v31, %v1240_v30  ;;  %v2303_v30 = vld [vmem:[%s3850_s6 + $0x8] sm:$0xf]  ;;  %v3023_v31 = vpack.c.bf16 %v2310_v26, %v2309_v25  ;;  %v1670_v25 = vld [vmem:[%s3855_s11] sm:$0x3] }
 0x10a   : > { %2925 = vmatpush3.bf16.msra.mxu0 %v2924_v34  ;;  %2928 = vmatpush3.bf16.msra.mxu1 %v2924_v34  ;;  %v2329_v26 = vld [vmem:[%s3856_s12 + $0x80] sm:$0xff] }
 0x10b   : > { %2953 = vmatprep.subr.bf16.mxu0 %v3131_v27  ;;  %2929 = vmatprep.subr.bf16.mxu1 %v3131_v27 }
 0x10d   : > { %2585 = vmatmul.mubr.msk.f32.vlgmr.msra.gmra.mrb[0].mxu1 %vm675_vm1, %v2260_v37  ;;  %2578 = vmatmul.mubr.msk.f32.vlgmr.msra.gmra.mrb[2].mxu0 %vm675_vm1, %v674_v38  ;;  %v1245_v37 = vld [vmem:[%s3851_s7 + $0x68] sm:$0xff] }
 0x10e   : > { %2955 = vmatpush3.bf16.msra.mxu0 %v2924_v34  ;;  %2629 = vmatprep.mubr.msk.f32.mxu0 %vm3132_vm0, %v3133_v28  ;;  %v1243_v34 = vld [vmem:[%s3851_s7 + $0x58] sm:$0xff]  ;;  %v3011_v38 = vpack.c.bf16 %v1245_v37, %v1244_v36  ;;  %v2314_v36 = vld [vmem:[%s3851_s7 + $0x148] sm:$0xff] }
 0x10f   : > { %2931 = vmatpush3.bf16.msra.mxu1 %v2930_v39  ;;  %2603 = vmatprep.mubr.msk.f32.mxu1 %vm3132_vm0, %v3133_v28  ;;  %v3008_v35 = vpack.c.bf16 %v1243_v34, %v1242_v33  ;;  %v1246_v39 = vld [vmem:[%s3851_s7 + $0x70] sm:$0xff]  ;;  %v2312_v33 = vld [vmem:[%s3851_s7 + $0x138] sm:$0xff] }
 0x110   : > { %2932 = vmatprep.subr.bf16.mxu1 %v3131_v27  ;;  %2956 = vmatprep.subr.bf16.mxu0 %v3131_v27  ;;  %v3014_v41 = vpack.c.bf16 %v1247_v40, %v1246_v39  ;;  %v2316_v39 = vld [vmem:[%s3851_s7 + $0x158] sm:$0xff] }
 0x111   : > { %2630 = vmatmul.mubr.msk.f32.vlgmr.msra.gmra.mrb[4].mxu0 %vm675_vm1, %v2272_v42 }
 0x112   : > { %2648 = vmatprep.mubr.msk.f32.mxu0 %vm3132_vm0, %v3133_v28  ;;  %2958 = vmatpush3.bf16.msra.mxu0 %v2957_v52 }
 0x113   : > { %2934 = vmatpush3.bf16.msra.mxu1 %v2933_v43  ;;  %2959 = vmatprep.subr.bf16.mxu0 %v3131_v27 }
 0x114   : > { %2935 = vmatprep.subr.bf16.mxu1 %v3131_v27 }
 0x116   : > { %2961 = vmatpush3.bf16.msra.mxu0 %v2960_v55  ;;  %v2287_v55 = vld [vmem:[%s3851_s7 + $0x80] sm:$0xff] }
 0x117   : > { %2937 = vmatpush3.bf16.msra.mxu1 %v2936_v46  ;;  %2962 = vmatprep.subr.bf16.mxu0 %v3131_v27 }
 0x118   : > { %2938 = vmatprep.subr.bf16.mxu1 %v3131_v27 }
 0x11a   : > { %2964 = vmatpush3.bf16.msra.mxu0 %v2963_v58  ;;  %v2969_v58 = vpack.c.bf16 %v2288_v56, %v2287_v55  ;;  %v1750_v55 = vld [vmem:[%s3856_s12 + $0x8] sm:$0xff] }
 0x11b   : > { %2940 = vmatpush3.bf16.msra.mxu1 %v2939_v49  ;;  %2965 = vmatprep.subr.bf16.mxu0 %v3131_v27  ;;  %v2283_v49 = vld [vmem:[%s3849_s5] ss:$0 sm:$0xff] }
 0x11c   : > { %2941 = vmatprep.subr.bf16.mxu1 %v3131_v27 }
 0x11e   : > { %2967 = vmatpush3.bf16.msra.mxu0 %v2966_v61  ;;  %v2972_v61 = vpack.c.bf16 %v2290_v60, %v2289_v59  ;;  %v1753_v60 = vld [vmem:[%s3856_s12 + $0x20] sm:$0xff] }
 0x11f   : > { %2992 = vmatprep.subr.bf16.mxu0 %v3131_v27 }
 0x1e0   : > { %v828_v3 = vpop.f32.mrb[0].mxu1  ;;  %v745_v4 = vpop.f32.mrb[2].mxu0 }
 0x1e1   : > { %v2586_v5 = vpop.f32.mrb[1].mxu1  ;;  %2604 = vmatmul.mubr.msk.f32.vlgmr.msra.gmra.mrb[2].mxu1 %vm841_vm2, %v828_v3  ;;  %v2579_v6 = vpop.f32.mrb[3].mxu0  ;;  %v2978_v3 = vpack.c.bf16 %v2294_v2, %v2293_v1  ;;  %v1757_v2 = vld [vmem:[%s3856_s12 + $0x40] sm:$0xff] }
 0x1e2   : > { %2943 = vmatpush3.bf16.msra.mxu1 %v2942_v0  ;;  %2622 = vmatprep.mubr.msk.f32.mxu1 %vm3132_vm0, %v3133_v28  ;;  %v2975_v0 = vpack.c.bf16 %v2292_v63, %v2291_v62  ;;  %v2296_v5 = vld [vmem:[%s3851_s7 + $0xc8] sm:$0xff]  ;;  %v1755_v63 = vld [vmem:[%s3856_s12 + $0x30] sm:$0xff] }
 0x1e3   : > { %2944 = vmatprep.subr.bf16.mxu1 %v3131_v27 }
 0x1e4   : > { %v1059_v10 = vpop.f32.mrb[4].mxu0 }
 0x1e5   : > { %v2631_v11 = vpop.f32.mrb[5].mxu0  ;;  %2649 = vmatmul.mubr.msk.f32.vlgmr.msra.gmra.mrb[6].mxu0 %vm841_vm2, %v1059_v10  ;;  %v2299_v10 = vld [vmem:[%s3851_s7 + $0xe0] sm:$0xff] }
 0x1e6   : > { %2946 = vmatpush3.bf16.msra.mxu1 %v2945_v7  ;;  %2728 = vmatprep.mubr.msk.f32.mxu0 %vm3132_vm0, %v3133_v28  ;;  %v2297_v7 = vld [vmem:[%s3851_s7 + $0xd0] sm:$0xff]  ;;  %v2300_v11 = vld [vmem:[%s3851_s7 + $0xe8] sm:$0xff] }
 0x1e7   : > { %2947 = vmatprep.subr.bf16.mxu1 %v3131_v27  ;;  %2994 = vmatpush3.bf16.msra.mxu0 %v2993_v18  ;;  %v2984_v9 = vpack.c.bf16 %v2298_v8, %v2297_v7  ;;  %v3017_v18 = vpack.c.bf16 %v2306_v17, %v2305_v16  ;;  %v1761_v8 = vld [vmem:[%s3856_s12 + $0x60] sm:$0xff] }
 0x1e8   : > { %2995 = vmatprep.subr.bf16.mxu0 %v3131_v27 }
 0x1ea   : > { %2949 = vmatpush3.bf16.msra.mxu1 %v2948_v12  ;;  %v2987_v12 = vpack.c.bf16 %v2300_v11, %v2299_v10  ;;  %v1763_v11 = vld [vmem:[%s3856_s12 + $0x70] sm:$0xff] }
 0x1eb   : > { %2950 = vmatprep.subr.bf16.mxu1 %v3131_v27  ;;  %2997 = vmatpush3.bf16.msra.mxu0 %v2996_v21  ;;  %v2308_v21 = vld [vmem:[%s3851_s7 + $0x118] sm:$0xff] }
 0x1ec   : > { %2998 = vmatprep.subr.bf16.mxu0 %v3131_v27  ;;  %v3020_v23 = vpack.c.bf16 %v2308_v21, %v2307_v20  ;;  %v2322_v20 = vld [vmem:[%s3853_s9] ss:$0 sm:$0xff] }
 0x1ee   : > { %2952 = vmatpush3.bf16.msra.mxu1 %v2951_v15  ;;  %v2990_v15 = vpack.c.bf16 %v2302_v14, %v2301_v13 }
 0x1ef   : > { %2651 = vmatprep.subr.mxu1 %v3133_v28  ;;  %3000 = vmatpush3.bf16.msra.mxu0 %v2999_v24 }
 0x1f0   : > { %3001 = vmatprep.subr.bf16.mxu0 %v3131_v27 }
 0x1f1   : > { %2623 = vmatmul.mubr.msk.f32.vlgmr.msra.gmra.mrb[4].mxu1 %vm841_vm2, %v745_v4  ;;  %v2295_v4 = vld [vmem:[%s3851_s7 + $0xc0] sm:$0xff] }
 0x1f2   : > { %2653 = vmatprep.mubr.msk.f32.mxu1 %vm3132_vm0, %v3133_v28  ;;  %v2981_v6 = vpack.c.bf16 %v2296_v5, %v2295_v4  ;;  %v1759_v5 = vld [vmem:[%s3856_s12 + $0x50] sm:$0xff] }
 0x1f3   : > { %3003 = vmatpush3.bf16.msra.mxu0 %v3002_v29 }
 0x1f4   : > { %3004 = vmatprep.subr.bf16.mxu0 %v3131_v27 }
 0x1f7   : > { %3006 = vmatpush3.bf16.msra.mxu0 %v3005_v32  ;;  %v2311_v32 = vld [vmem:[%s3851_s7 + $0x130] sm:$0xff] }
 0x1f8   : > { %3007 = vmatprep.subr.bf16.mxu0 %v3131_v27  ;;  %v3026_v34 = vpack.c.bf16 %v2312_v33, %v2311_v32  ;;  %v2331_v32 = vld [vmem:[%s3856_s12 + $0x90] sm:$0xff]  ;;  %v2332_v33 = vld [vmem:[%s3856_s12 + $0x98] sm:$0xff] }
 0x1fb   : > { %3009 = vmatpush3.bf16.msra.mxu0 %v3008_v35  ;;  %v2313_v35 = vld [vmem:[%s3851_s7 + $0x140] sm:$0xff] }
 0x1fc   : > { %3010 = vmatprep.subr.bf16.mxu0 %v3131_v27  ;;  %v3029_v37 = vpack.c.bf16 %v2314_v36, %v2313_v35  ;;  %v2333_v35 = vld [vmem:[%s3856_s12 + $0xa0] sm:$0xff]  ;;  %v2334_v36 = vld [vmem:[%s3856_s12 + $0xa8] sm:$0xff] }
 0x1ff   : > { %3012 = vmatpush3.bf16.msra.mxu0 %v3011_v38  ;;  %v2315_v38 = vld [vmem:[%s3851_s7 + $0x150] sm:$0xff] }
 0x200   : > { %3013 = vmatprep.subr.bf16.mxu0 %v3131_v27  ;;  %v3032_v40 = vpack.c.bf16 %v2316_v39, %v2315_v38  ;;  %v2335_v38 = vld [vmem:[%s3856_s12 + $0xb0] sm:$0xff]  ;;  %v2336_v39 = vld [vmem:[%s3856_s12 + $0xb8] sm:$0xff] }
 0x203   : > { %3015 = vmatpush3.bf16.msra.mxu0 %v3014_v41  ;;  %v2317_v41 = vld [vmem:[%s3851_s7 + $0x160] sm:$0xff] }
 0x204   : > { %3016 = vmatprep.subr.bf16.mxu0 %v3131_v27 }
 0x2b4   : > { %v911_v42 = vpop.f32.mrb[2].mxu1 }
 0x2b5   : > { %v2605_v43 = vpop.f32.mrb[3].mxu1 }
 0x2b8   : > { %v1141_v44 = vpop.f32.mrb[6].mxu0 }
 0x2b9   : > { %v2650_v45 = vpop.f32.mrb[7].mxu0 }
 0x2ba   : > { %v2320_v45 = vld [vmem:[%s3851_s7 + $0x178] sm:$0xff] }
 0x2c4   : > { %v984_v46 = vpop.f32.mrb[4].mxu1 }
 0x2c5   : > { %v985_v47 = vadd.f32 %v984_v46, %v911_v42  ;;  %v2624_v48 = vpop.f32.mrb[5].mxu1  ;;  %v2318_v42 = vld [vmem:[%s3851_s7 + $0x168] sm:$0xff] }
 0x2c6   : > { %v3035_v43 = vpack.c.bf16 %v2318_v42, %v2317_v41  ;;  %v2337_v41 = vld [vmem:[%s3856_s12 + $0xc0] sm:$0xff]  ;;  %v2338_v42 = vld [vmem:[%s3856_s12 + $0xc8] sm:$0xff] }
 0x2c7   : > { %v1145_v50 = vadd.f32 %v1141_v44, %v985_v47  ;;  %v2319_v44 = vld [vmem:[%s3851_s7 + $0x170] sm:$0xff] }
 0x2c8   : > { %v3038_v46 = vpack.c.bf16 %v2320_v45, %v2319_v44  ;;  %v2339_v44 = vld [vmem:[%s3856_s12 + $0xd0] sm:$0xff]  ;;  %v2340_v45 = vld [vmem:[%s3856_s12 + $0xd8] sm:$0xff] }
 0x2c9   : > { %v1153_v51 = vadd.f32 %v2283_v49, %v1145_v50 }
 0x2cb   : > { %v1155_v52 = vmul.f32 0.2, %v1153_v51  ;;  %vm1154_vm3 = vcmp.ge.f32.partialorder %v1153_v51, 0.0 }
 0x2cd   : > { %v3483_v54 = vsel %vm1154_vm3, %v1153_v51, %v1155_v52 }
 0x2ce   : > { %2652 = vmatpush3.msra.mxu1 %v3483_v54 }
 0x2cf   : > { %2654 = vmatmul.mubr.msk.f32.vlgmr.msra.gmra.mrb[6].mxu1 %vm1158_vm4, %v1157_v53  ;;  %2656 = vmatprep.subr.mxu1 %v3133_v28 }
 0x2d0   : > { %2657 = vmatpush3.msra.mxu1 %v3483_v54  ;;  %2658 = vmatprep.mubr.msk.f32.mxu1 %vm3132_vm0, %v3133_v28 }
 0x2d1   : > { %2968 = vmatprep.subr.bf16.mxu1 %v3131_v27 }
 0x2d3   : > { %2659 = vmatmul.mubr.msk.f32.vlgmr.msra.gmra.mrb[8].mxu1 %vm1158_vm4, %v2285_v57  ;;  %v1751_v57 = vld [vmem:[%s3856_s12 + $0x10] sm:$0xff] }
 0x2d4   : > { %2970 = vmatpush3.bf16.msra.mxu1 %v2969_v58  ;;  %2693 = vmatprep.mubr.msk.f32.mxu1 %vm3132_vm0, %v3133_v28  ;;  %v1752_v58 = vld [vmem:[%s3856_s12 + $0x18] sm:$0xff] }
 0x2d5   : > { %2971 = vmatprep.subr.bf16.mxu1 %v3131_v27  ;;  %v3068_v59 = vpack.c.bf16 %v1752_v58, %v1751_v57 }
 0x2d8   : > { %2973 = vmatpush3.bf16.msra.mxu1 %v2972_v61  ;;  %v1754_v61 = vld [vmem:[%s3856_s12 + $0x28] sm:$0xff] }
 0x2d9   : > { %2974 = vmatprep.subr.bf16.mxu1 %v3131_v27  ;;  %v3071_v62 = vpack.c.bf16 %v1754_v61, %v1753_v60  ;;  %v2350_v61 = vld [vmem:[%s3856_s12 + $0x110] sm:$0xff] }
 0x2dc   : > { %2976 = vmatpush3.bf16.msra.mxu1 %v2975_v0  ;;  %v1756_v0 = vld [vmem:[%s3856_s12 + $0x38] sm:$0xff] }
 0x2dd   : > { %2977 = vmatprep.subr.bf16.mxu1 %v3131_v27  ;;  %v3074_v1 = vpack.c.bf16 %v1756_v0, %v1755_v63  ;;  %v2352_v0 = vld [vmem:[%s3856_s12 + $0x120] sm:$0xff] }
 0x2e0   : > { %2979 = vmatpush3.bf16.msra.mxu1 %v2978_v3  ;;  %v1758_v3 = vld [vmem:[%s3856_s12 + $0x48] sm:$0xff] }
 0x2e1   : > { %2980 = vmatprep.subr.bf16.mxu1 %v3131_v27  ;;  %v3077_v4 = vpack.c.bf16 %v1758_v3, %v1757_v2  ;;  %v2354_v3 = vld [vmem:[%s3856_s12 + $0x130] sm:$0xff] }
 0x2e4   : > { %2982 = vmatpush3.bf16.msra.mxu1 %v2981_v6  ;;  %v1760_v6 = vld [vmem:[%s3856_s12 + $0x58] sm:$0xff] }
 0x2e5   : > { %2983 = vmatprep.subr.bf16.mxu1 %v3131_v27  ;;  %v3080_v7 = vpack.c.bf16 %v1760_v6, %v1759_v5  ;;  %v2356_v5 = vld [vmem:[%s3856_s12 + $0x140] sm:$0xff]  ;;  %v2357_v6 = vld [vmem:[%s3856_s12 + $0x148] sm:$0xff] }
 0x2e8   : > { %2985 = vmatpush3.bf16.msra.mxu1 %v2984_v9  ;;  %v1762_v9 = vld [vmem:[%s3856_s12 + $0x68] sm:$0xff] }
 0x2e9   : > { %2986 = vmatprep.subr.bf16.mxu1 %v3131_v27  ;;  %v3083_v10 = vpack.c.bf16 %v1762_v9, %v1761_v8  ;;  %v2358_v8 = vld [vmem:[%s3856_s12 + $0x150] sm:$0xff]  ;;  %v2359_v9 = vld [vmem:[%s3856_s12 + $0x158] sm:$0xff] }
 0x2ec   : > { %2988 = vmatpush3.bf16.msra.mxu1 %v2987_v12  ;;  %v1764_v12 = vld [vmem:[%s3856_s12 + $0x78] sm:$0xff] }
 0x2ed   : > { %2989 = vmatprep.subr.bf16.mxu1 %v3131_v27  ;;  %v3086_v13 = vpack.c.bf16 %v1764_v12, %v1763_v11  ;;  %v2360_v11 = vld [vmem:[%s3856_s12 + $0x160] sm:$0xff]  ;;  %v2361_v12 = vld [vmem:[%s3856_s12 + $0x168] sm:$0xff] }
 0x2f0   : > { %2991 = vmatpush3.bf16.msra.mxu1 %v2990_v15  ;;  %v2321_v15 = vld [vmem:[%s3852_s8] ss:$0 sm:$0xff] }
 0x2f1   : > { %2731 = vmatprep.subr.mxu1 %v3133_v28 }
 0x3a2   : > { %v1228_v19 = vpop.f32.mrb[6].mxu1 }
 0x3a3   : > { %v2655_v22 = vpop.f32.mrb[7].mxu1  ;;  %2729 = vmatmul.mubr.f32.vlgmr.msra.gmra.mrb[8].mxu0 %v1228_v19 }
 0x3a4   : > { %3018 = vmatpush3.bf16.msra.mxu0 %v3017_v18  ;;  %2768 = vmatprep.mubr.msk.f32.mxu0 %vm3132_vm0, %v3133_v28  ;;  %v2323_v22 = vld [vmem:[%s3854_s10] ss:$0 sm:$0xff] }
 0x3a5   : > { %3019 = vmatprep.subr.bf16.mxu0 %v3131_v27 }
 0x3a6   : > { %v1319_v24 = vpop.f32.mrb[8].mxu1 }
 0x3a7   : > { %v2660_v29 = vpop.f32.mrb[9].mxu1  ;;  %2694 = vmatmul.mubr.f32.vlgmr.msra.gmra.mrb[10].mxu1 %v1319_v24 }
 0x3a8   : > { %2732 = vmatpush3.msra.mxu1 %v3483_v54  ;;  %2733 = vmatprep.mubr.msk.f32.mxu1 %vm3132_vm0, %v3133_v28  ;;  %v1749_v54 = vld [vmem:[%s3856_s12] sm:$0xff]  ;;  %v2330_v29 = vld [vmem:[%s3856_s12 + $0x88] sm:$0xff] }
 0x3a9   : > { %3021 = vmatpush3.bf16.msra.mxu0 %v3020_v23  ;;  %2771 = vmatprep.subr.mxu1 %v3133_v28  ;;  %v3065_v56 = vpack.c.bf16 %v1750_v55, %v1749_v54  ;;  %v2348_v55 = vld [vmem:[%s3856_s12 + $0x100] sm:$0xff] }
 0x3aa   : > { %3022 = vmatprep.subr.bf16.mxu0 %v3131_v27 }
 0x3ab   : > { %2734 = vmatmul.mubr.msk.f32.vlgmr.msra.gmra.mrb[12].mxu1 %vm1158_vm4, %v2303_v30  ;;  %v2326_v30 = vld [vmem:[%s3855_s11 + $0x2] sm:$0x3] }
 0x3ac   : > { %2773 = vmatprep.mubr.msk.f32.mxu1 %vm3132_vm0, %v3133_v28 }
 0x3ad   : > { %3024 = vmatpush3.bf16.msra.mxu0 %v3023_v31  ;;  %v3041_v31 = vpack.c.bf16 %v2330_v29, %v2329_v26 }
 0x3ae   : > { %3025 = vmatprep.subr.bf16.mxu0 %v3131_v27 }
 0x3b1   : > { %3027 = vmatpush3.bf16.msra.mxu0 %v3026_v34  ;;  %v3044_v34 = vpack.c.bf16 %v2332_v33, %v2331_v32  ;;  %v2366_v33 = vld [vmem:[%s3859_s15] ss:$0 sm:$0xff] }
 0x3b2   : > { %3028 = vmatprep.subr.bf16.mxu0 %v3131_v27 }
 0x3b5   : > { %3030 = vmatpush3.bf16.msra.mxu0 %v3029_v37  ;;  %v3047_v37 = vpack.c.bf16 %v2334_v36, %v2333_v35  ;;  %v2187_v35 = vld [vmem:[%s3860_s16] sm:$0x3] }
 0x3b6   : > { %3031 = vmatprep.subr.bf16.mxu0 %v3131_v27 }
 0x3b9   : > { %3033 = vmatpush3.bf16.msra.mxu0 %v3032_v40  ;;  %v3050_v40 = vpack.c.bf16 %v2336_v39, %v2335_v38 }
 0x3ba   : > { %3034 = vmatprep.subr.bf16.mxu0 %v3131_v27 }
 0x3bd   : > { %3036 = vmatpush3.bf16.msra.mxu0 %v3035_v43  ;;  %v3053_v43 = vpack.c.bf16 %v2338_v42, %v2337_v41 }
 0x3be   : > { %3037 = vmatprep.subr.bf16.mxu0 %v3131_v27 }
 0x3c1   : > { %3039 = vmatpush3.bf16.msra.mxu0 %v3038_v46  ;;  %v3056_v46 = vpack.c.bf16 %v2340_v45, %v2339_v44 }
 0x3c2   : > { %3064 = vmatprep.subr.bf16.mxu0 %v3131_v27 }
 0x476   : > { %v1476_v47 = vpop.f32.mrb[8].mxu0 }
 0x477   : > { %v2730_v48 = vpop.f32.mrb[9].mxu0 }
 0x478   : > { %v2342_v48 = vld [vmem:[%s3856_s12 + $0xe8] sm:$0xff] }
 0x47a   : > { %v1406_v49 = vpop.f32.mrb[10].mxu1 }
 0x47b   : > { %v1477_v50 = vadd.f32 %v1476_v47, %v1406_v49  ;;  %v2695_v51 = vpop.f32.mrb[11].mxu1  ;;  %v2341_v47 = vld [vmem:[%s3856_s12 + $0xe0] sm:$0xff] }
 0x47c   : > { %v3059_v49 = vpack.c.bf16 %v2342_v48, %v2341_v47  ;;  %v2344_v51 = vld [vmem:[%s3856_s12 + $0xf8] sm:$0xff] }
 0x47e   : > { %v1551_v52 = vpop.f32.mrb[12].mxu1 }
 0x47f   : > { %v2735_v53 = vpop.f32.mrb[13].mxu1  ;;  %2769 = vmatmul.mubr.f32.vlgmr.msra.gmra.mrb[10].mxu0 %v1551_v52 }
 0x480   : > { %2848 = vmatprep.mubr.msk.f32.mxu0 %vm3132_vm0, %v3133_v28  ;;  %3066 = vmatpush3.bf16.msra.mxu0 %v3065_v56  ;;  %v2349_v56 = vld [vmem:[%s3856_s12 + $0x108] sm:$0xff] }
 0x481   : > { %3067 = vmatprep.subr.bf16.mxu0 %v3131_v27  ;;  %v3089_v60 = vpack.c.bf16 %v2349_v56, %v2348_v55 }
 0x484   : > { %3069 = vmatpush3.bf16.msra.mxu0 %v3068_v59  ;;  %v2345_v59 = vld [vmem:[%s3855_s11 + $0x4] sm:$0x3] }
 0x485   : > { %3070 = vmatprep.subr.bf16.mxu0 %v3131_v27 }
 0x488   : > { %3072 = vmatpush3.bf16.msra.mxu0 %v3071_v62  ;;  %v2351_v62 = vld [vmem:[%s3856_s12 + $0x118] sm:$0xff] }
 0x489   : > { %3073 = vmatprep.subr.bf16.mxu0 %v3131_v27  ;;  %v3092_v63 = vpack.c.bf16 %v2351_v62, %v2350_v61 }
 0x48c   : > { %3075 = vmatpush3.bf16.msra.mxu0 %v3074_v1  ;;  %v2353_v1 = vld [vmem:[%s3856_s12 + $0x128] sm:$0xff] }
 0x48d   : > { %3076 = vmatprep.subr.bf16.mxu0 %v3131_v27  ;;  %v3095_v2 = vpack.c.bf16 %v2353_v1, %v2352_v0 }
 0x490   : > { %3078 = vmatpush3.bf16.msra.mxu0 %v3077_v4 }
 0x491   : > { %3079 = vmatprep.subr.bf16.mxu0 %v3131_v27 }
 0x494   : > { %3081 = vmatpush3.bf16.msra.mxu0 %v3080_v7  ;;  %v3101_v7 = vpack.c.bf16 %v2357_v6, %v2356_v5 }
 0x495   : > { %3082 = vmatprep.subr.bf16.mxu0 %v3131_v27 }
 0x498   : > { %3084 = vmatpush3.bf16.msra.mxu0 %v3083_v10  ;;  %v3104_v10 = vpack.c.bf16 %v2359_v9, %v2358_v8 }
 0x499   : > { %3085 = vmatprep.subr.bf16.mxu0 %v3131_v27 }
 0x49c   : > { %3087 = vmatpush3.bf16.msra.mxu0 %v3086_v13  ;;  %v3107_v13 = vpack.c.bf16 %v2361_v12, %v2360_v11 }
 0x552   : > { %v1638_v14 = vpop.f32.mrb[10].mxu0 }
 0x553   : > { %v1642_v16 = vadd.f32 %v1638_v14, %v1477_v50  ;;  %v2770_v17 = vpop.f32.mrb[11].mxu0  ;;  %v2343_v50 = vld [vmem:[%s3856_s12 + $0xf0] sm:$0xff] }
 0x554   : > { %v3062_v52 = vpack.c.bf16 %v2344_v51, %v2343_v50  ;;  %v2362_v14 = vld [vmem:[%s3856_s12 + $0x170] sm:$0xff] }
 0x555   : > { %v1650_v18 = vadd.f32 %v2321_v15, %v1642_v16  ;;  %v2363_v15 = vld [vmem:[%s3856_s12 + $0x178] sm:$0xff] }
 0x556   : > { %v3110_v16 = vpack.c.bf16 %v2363_v15, %v2362_v14 }
 0x557   : > { %vm1651_vm5 = vcmp.ge.f32.partialorder %v1650_v18, 0.0  ;;  %v1652_v19 = vmul.f32 0.2, %v1650_v18 }
 0x559   : > { %v1653_v21 = vsel %vm1651_vm5, %v1650_v18, %v1652_v19 }
 0x55a   : > { %v1661_v23 = vmul.f32 %v2322_v20, %v1653_v21 }
 0x55c   : > { %v1669_v24 = vadd.f32 %v2323_v22, %v1661_v23 }
 0x55e   : > { %2772 = vmatpush3.msk.msra.mxu1 %vm1675_vm6, %v1669_v24 }
 0x55f   : > { %2774 = vmatmul.mubr.msk.f32.vlgmr.msra.gmra.mrb[14].mxu1 %vm1671_vm7, %v1670_v25  ;;  %2776 = vmatprep.subr.mxu1 %v3133_v28 }
 0x560   : > { %2777 = vmatpush3.msk.msra.mxu1 %vm1675_vm6, %v1669_v24  ;;  %2778 = vmatprep.mubr.msk.f32.mxu1 %vm3132_vm0, %v3133_v28 }
 0x561   : > { %3040 = vmatprep.subr.bf16.mxu1 %v3131_v27 }
 0x563   : > { %2779 = vmatmul.mubr.msk.f32.vlgmr.msra.gmra.mrb[16].mxu1 %vm1671_vm7, %v2326_v30 }
 0x564   : > { %3042 = vmatpush3.bf16.msra.mxu1 %v3041_v31  ;;  %2813 = vmatprep.mubr.msk.f32.mxu1 %vm3132_vm0, %v3133_v28  ;;  %v2365_v31 = vld [vmem:[%s3858_s14] ss:$0 sm:$0xff] }
 0x565   : > { %3043 = vmatprep.subr.bf16.mxu1 %v3131_v27 }
 0x568   : > { %3045 = vmatpush3.bf16.msra.mxu1 %v3044_v34 }
 0x569   : > { %3046 = vmatprep.subr.bf16.mxu1 %v3131_v27 }
 0x56c   : > { %3048 = vmatpush3.bf16.msra.mxu1 %v3047_v37 }
 0x56d   : > { %3049 = vmatprep.subr.bf16.mxu1 %v3131_v27 }
 0x570   : > { %3051 = vmatpush3.bf16.msra.mxu1 %v3050_v40 }
 0x571   : > { %3052 = vmatprep.subr.bf16.mxu1 %v3131_v27 }
 0x574   : > { %3054 = vmatpush3.bf16.msra.mxu1 %v3053_v43 }
 0x575   : > { %3055 = vmatprep.subr.bf16.mxu1 %v3131_v27 }
 0x578   : > { %3057 = vmatpush3.bf16.msra.mxu1 %v3056_v46  ;;  %v2200_v46 = vld [vmem:[#allocation2] sm:$0x1] }
 0x579   : > { %3058 = vmatprep.subr.bf16.mxu1 %v3131_v27 }
 0x57c   : > { %3060 = vmatpush3.bf16.msra.mxu1 %v3059_v49 }
 0x57d   : > { %3061 = vmatprep.subr.bf16.mxu1 %v3131_v27 }
 0x580   : > { %3063 = vmatpush3.bf16.msra.mxu1 %v3062_v52 }
 0x581   : > { %2851 = vmatprep.subr.mxu1 %v3133_v28 }
 0x632   : > { %v1745_v53 = vpop.f32.mrb[14].mxu1 }
 0x633   : > { %v2775_v54 = vpop.f32.mrb[15].mxu1  ;;  %2849 = vmatmul.mubr.f32.vlgmr.msra.gmra.mrb[12].mxu0 %v1745_v53 }
 0x636   : > { %v1836_v57 = vpop.f32.mrb[16].mxu1 }
 0x637   : > { %2814 = vmatmul.mubr.f32.vlgmr.msra.gmra.mrb[18].mxu1 %v1836_v57  ;;  %v2780_v58 = vpop.f32.mrb[17].mxu1 }
 0x638   : > { %2852 = vmatpush3.msk.msra.mxu1 %vm1675_vm6, %v1669_v24  ;;  %2853 = vmatprep.mubr.msk.f32.mxu1 %vm3132_vm0, %v3133_v28 }
 0x639   : > { %3088 = vmatprep.subr.bf16.mxu1 %v3131_v27 }
 0x63b   : > { %2854 = vmatmul.mubr.msk.f32.vlgmr.msra.gmra.mrb[20].mxu1 %vm1671_vm7, %v2345_v59 }
 0x63c   : > { %3090 = vmatpush3.bf16.msra.mxu1 %v3089_v60  ;;  %2888 = vmatprep.mubr.msk.f32.mxu1 %vm3132_vm0, %v3133_v28  ;;  %v2355_v28 = vld [vmem:[%s3856_s12 + $0x138] sm:$0xff] }
 0x63d   : > { %3091 = vmatprep.subr.bf16.mxu1 %v3131_v27  ;;  %v3098_v4 = vpack.c.bf16 %v2355_v28, %v2354_v3 }
 0x640   : > { %3093 = vmatpush3.bf16.msra.mxu1 %v3092_v63 }
 0x641   : > { %3094 = vmatprep.subr.bf16.mxu1 %v3131_v27 }
 0x644   : > { %3096 = vmatpush3.bf16.msra.mxu1 %v3095_v2 }
 0x645   : > { %3097 = vmatprep.subr.bf16.mxu1 %v3131_v27 }
 0x648   : > { %3099 = vmatpush3.bf16.msra.mxu1 %v3098_v4 }
 0x649   : > { %3100 = vmatprep.subr.bf16.mxu1 %v3131_v27 }
 0x64c   : > { %3102 = vmatpush3.bf16.msra.mxu1 %v3101_v7 }
 0x64d   : > { %3103 = vmatprep.subr.bf16.mxu1 %v3131_v27 }
 0x650   : > { %3105 = vmatpush3.bf16.msra.mxu1 %v3104_v10 }
 0x651   : > { %3106 = vmatprep.subr.bf16.mxu1 %v3131_v27 }
 0x654   : > { %3108 = vmatpush3.bf16.msra.mxu1 %v3107_v13 }
 0x655   : > { %3109 = vmatprep.subr.bf16.mxu1 %v3131_v27  ;;  %v2364_v27 = vld [vmem:[%s3857_s13] ss:$0 sm:$0xff] }
 0x658   : > { %3111 = vmatpush3.bf16.msra.mxu1 %v3110_v16 }
 0x706   : > { %v1993_v17 = vpop.f32.mrb[12].mxu0 }
 0x707   : > { %v2850_v18 = vpop.f32.mrb[13].mxu0 }
 0x70a   : > { %v1923_v19 = vpop.f32.mrb[18].mxu1 }
 0x70b   : > { %v1994_v20 = vadd.f32 %v1993_v17, %v1923_v19  ;;  %v2815_v21 = vpop.f32.mrb[19].mxu1 }
 0x70e   : > { %v2068_v22 = vpop.f32.mrb[20].mxu1 }
 0x70f   : > { %2889 = vmatmul.mubr.f32.vlgmr.msra.gmra.mrb[22].mxu1 %v2068_v22  ;;  %v2855_v23 = vpop.f32.mrb[21].mxu1 }
 0x7e2   : > { %v2155_v24 = vpop.f32.mrb[22].mxu1 }
 0x7e3   : > { %v2159_v25 = vadd.f32 %v2155_v24, %v1994_v20  ;;  %v2890_v26 = vpop.f32.mrb[23].mxu1 }
 0x7e5   : > { %v2167_v29 = vadd.f32 %v2364_v27, %v2159_v25 }
 0x7e7   : > { %vm2168_vm8 = vcmp.ge.f32.partialorder %v2167_v29, 0.0  ;;  %v2169_v30 = vmul.f32 0.2, %v2167_v29 }
 0x7e9   : > { %v2170_v32 = vsel %vm2168_vm8, %v2167_v29, %v2169_v30 }
 0x7ea   : > { %v2178_v34 = vmul.f32 %v2365_v31, %v2170_v32 }
 0x7ec   : > { %v2186_v36 = vadd.f32 %v2366_v33, %v2178_v34 }
 0x7ee   : > { %v2188_v37 = vmul.f32 %v2187_v35, %v2186_v36 }
 0x7f0   : > { %v2190_v38 = vsel %vm2189_vm9, %v2188_v37, 0.0 }
 0x7f1   : > { %2191 = vadd.xlane.f32.xlu0 %v2190_v38 }
 0x87e   : > { %v2192_v39 = vpop.xlane.xlu0 %2191 }
 0x87f   : > { %v2193_v40 = vsel %vm2189_vm9, %v2192_v39, 0.0 }
 0x880   : > { %v2194_v41 = vrot.slane %v2193_v40, 4 }
 0x882   : > { %v2195_v42 = vadd.f32 %v2194_v41, %v2193_v40 }
 0x884   : > { %v2196_v43 = vrot.slane %v2195_v42, 2 }
 0x886   : > { %v2197_v44 = vadd.f32 %v2196_v43, %v2195_v42 }
 0x888   : > { %v2198_v45 = vrot.slane %v2197_v44, 1 }
 0x88a   : > { %v2199_v47 = vadd.f32 %v2198_v45, %v2197_v44 }
 0x88c   : > { %v2201_v48 = vadd.f32 %v2200_v46, %v2199_v47 }
 0x88e   : > { %2203 = vst.msk [vmem:[%s573_s22] sm:$0x1] %vm2202_vm10, %v2201_v48 }
 0x88f PF: > { %s30_s29 = sadd.s32 1, %s3129_s29  }
 0x890   : > { %p27_p4 = scmp.ge.s32.totalorder %s30_s29, 4  }
 0x892   :  { %29 = sbr.rel (!%p27_p4) target bundleno = 4 (0x4), region = 134 }

// kernel: _forward_impl.7
= control target key start
LH: loop header
LB: loop body
LE: loop exit
PB: predicated region body
PF: predicated region fallthrough
CT: control target
= control target key end

     0   :  { %s3379_s29 = smov 0   ;;  %s3978_s0 = inlined_call_operand.vmem [shape: f32[2,32,128], index: 0, kind: input, shape index: {}]   ;;  %s3979_s1 = inlined_call_operand.vmem [shape: f32[128,64], index: 1, kind: input, shape index: {}]   ;;  %s3980_s2 = inlined_call_operand.vmem [shape: f32[1,64], index: 2, kind: input, shape index: {}]   ;;  %s3981_s3 = inlined_call_operand.vmem [shape: f32[3,16,32], index: 3, kind: input, shape index: {}]   ;;  %s3982_s4 = inlined_call_operand.vmem [shape: f32[3,64,128], index: 4, kind: input, shape index: {}]   ;;  %s3983_s5 = inlined_call_operand.vmem [shape: f32[1,128], index: 5, kind: input, shape index: {}]   ;;  %s3984_s6 = inlined_call_operand.vmem [shape: f32[3,8,16], index: 6, kind: input, shape index: {}]   ;;  %s3985_s7 = inlined_call_operand.vmem [shape: f32[3,128,128], index: 7, kind: input, shape index: {}]   ;;  %s3986_s8 = inlined_call_operand.vmem [shape: f32[1,128], index: 8, kind: input, shape index: {}]   ;;  %s3987_s9 = inlined_call_operand.vmem [shape: f32[1,128], index: 9, kind: input, shape index: {}]   ;;  %s3988_s10 = inlined_call_operand.vmem [shape: f32[1,128], index: 10, kind: input, shape index: {}]   ;;  %s3989_s11 = inlined_call_operand.vmem [shape: f32[3,4,8], index: 11, kind: input, shape index: {}]   ;;  %s3990_s12 = inlined_call_operand.vmem [shape: f32[3,128,128], index: 12, kind: input, shape index: {}]   ;;  %s3991_s13 = inlined_call_operand.vmem [shape: f32[1,128], index: 13, kind: input, shape index: {}]   ;;  %s3992_s14 = inlined_call_operand.vmem [shape: f32[1,128], index: 14, kind: input, shape index: {}]   ;;  %s3993_s15 = inlined_call_operand.vmem [shape: f32[1,128], index: 15, kind: input, shape index: {}]   ;;  %s3994_s16 = inlined_call_operand.vmem [shape: f32[4,128], index: 16, kind: input, shape index: {}]   ;;  %s3995_s17 = inlined_call_operand.<no memory space> [shape: f32[1,1], index: 17, kind: input, shape index: {}]   ;;  %s3996_s18 = inlined_call_operand.vmem [shape: f32[2,1,1], index: 18, kind: output, shape index: {}]  }
   0x1   :  { %3998 = sst [smem:[#allocation3_spill]] %s3978_s0  ;;  %v23_v0 = vstv %s3995_s17 }
   0x2   :  { %3999 = sst [smem:[#allocation4_spill]] %s3979_s1  ;;  %24 = vst [vmem:[#allocation2] sm:$0x1] %v23_v0 }
   0x3   :  { %4000 = sst [smem:[#allocation5_spill]] %s3980_s2 }
   0x4 LB: > { %s2315_s30 = sadd.s32 4294967295, %s3276_s29   ;;  %p2319_p0 = scmp.ge.s32.totalorder %s3276_s29, 1  ;;  %s3276_s29 = sphi %s3379_s29, %s30_s29  }
   0x5   : > { %p514_p1 = scmp.lt.s32.totalorder %s3276_s29, 3 }
   0x7   : > { %p515_p2 = pnand %p2319_p0, %p514_p1 }
   0x8   : > { %s4001_s1 = sld [smem:[#allocation4_spill]] (!%p515_p2)  ;;  %p566_p3 = scmp.lt.s32.totalorder (!%p515_p2), %s2315_s30, 1  ;;  %vm688_vm0 = vcmask (!%p515_p2), 261120   ;;  %v2325_v29 = vld [vmem:[%s3981_s3 + $0x10] sm:$0xff] (!%p515_p2)  ;;  %v686_v30 = vld [vmem:[%s3981_s3] sm:$0xff] (!%p515_p2)  ;;  %v2330_v41 = vld [vmem:[%s3982_s4 + $0x48] sm:$0xff] (!%p515_p2) }
   0x9   : > { %518 = sbr.rel (%p515_p2) target bundleno = 2211 (0x8a3), region = 92  ;;  %s4002_s17 = sld [smem:[#allocation3_spill]] (!%p515_p2)  ;;  %2681 = vmatprep.mubr.msk.f32.mxu1 (!%p515_p2), %vm688_vm0, %v2325_v29  ;;  %v2329_v40 = vld [vmem:[%s3982_s4 + $0x40] sm:$0xff] (!%p515_p2)  ;;  %v2331_v45 = vld [vmem:[%s3982_s4 + $0x50] sm:$0xff] (!%p515_p2)  ;;  %v2332_v46 = vld [vmem:[%s3982_s4 + $0x58] sm:$0xff] (!%p515_p2)  ;;  %vm871_vm1 = vcmask (!%p515_p2), 523264  }
   0xa   : > { %s4003_s2 = sld [smem:[#allocation5_spill]] (!%p515_p2)  ;;  %v3046_v44 = vpack.c.bf16 (!%p515_p2), %v2330_v41, %v2329_v40  ;;  %v2326_v47 = vld [vmem:[%s3981_s3 + $0x18] sm:$0xff] (!%p515_p2)  ;;  %v687_v48 = vld [vmem:[%s3981_s3 + $0x8] sm:$0xff] (!%p515_p2)  ;;  %v2341_v49 = vld [vmem:[%s3981_s3 + $0x20] sm:$0xff] (!%p515_p2)  ;;  %v3050_v50 = vpack.c.bf16 (!%p515_p2), %v2332_v46, %v2331_v45  ;;  %vm3279_vm2 = vmmov (!%p515_p2), 0   ;;  %vm1226_vm5 = vcmask (!%p515_p2), 130048  }
   0xb   : > { %v2333_v51 = vld [vmem:[%s3982_s4 + $0x60] sm:$0xff] (!%p515_p2)  ;;  %v2334_v52 = vld [vmem:[%s3982_s4 + $0x68] sm:$0xff] (!%p515_p2)  ;;  %v2335_v54 = vld [vmem:[%s3982_s4 + $0x70] sm:$0xff] (!%p515_p2)  ;;  %vm1739_vm7 = vcmask (!%p515_p2), 64512   ;;  %vm2253_vm9 = vcmask (!%p515_p2), 1043456   ;;  %vm2266_vm10 = vcmask (!%p515_p2), 0  }
   0xc   : > { %v3054_v53 = vpack.c.bf16 (!%p515_p2), %v2334_v52, %v2333_v51  ;;  %v2336_v55 = vld [vmem:[%s3982_s4 + $0x78] sm:$0xff] (!%p515_p2)  ;;  %v2342_v56 = vld [vmem:[%s3981_s3 + $0x28] sm:$0xff] (!%p515_p2)  ;;  %v770_v58 = vld [vmem:[%s3982_s4] sm:$0xff] (!%p515_p2) }
   0xd   : > { %v3058_v57 = vpack.c.bf16 (!%p515_p2), %v2336_v55, %v2335_v54  ;;  %v771_v59 = vld [vmem:[%s3982_s4 + $0x8] sm:$0xff] (!%p515_p2)  ;;  %v772_v61 = vld [vmem:[%s3982_s4 + $0x10] sm:$0xff] (!%p515_p2)  ;;  %v773_v62 = vld [vmem:[%s3982_s4 + $0x18] sm:$0xff] (!%p515_p2) }
   0xe   : > { %v578_v1 = vld [vmem:[%s4001_s1] sm:$0xff] (!%p515_p2)  ;;  %v579_v2 = vld [vmem:[%s4001_s1 + $0x8] sm:$0xff] (!%p515_p2)  ;;  %v580_v3 = vld [vmem:[%s4001_s1 + $0x10] sm:$0xff] (!%p515_p2)  ;;  %v3062_v60 = vpack.c.bf16 (!%p515_p2), %v771_v59, %v770_v58 }
   0xf   : > { %v2998_v4 = vpack.c.bf16 (!%p515_p2), %v579_v2, %v578_v1  ;;  %v581_v5 = vld [vmem:[%s4001_s1 + $0x18] sm:$0xff] (!%p515_p2)  ;;  %v582_v7 = vld [vmem:[%s4001_s1 + $0x20] sm:$0xff] (!%p515_p2)  ;;  %v583_v8 = vld [vmem:[%s4001_s1 + $0x28] sm:$0xff] (!%p515_p2)  ;;  %v3066_v2 = vpack.c.bf16 (!%p515_p2), %v773_v62, %v772_v61 }
  0x10   : > { %v3002_v6 = vpack.c.bf16 %v581_v5, %v580_v3  ;;  %s4005_s30 = smov (!%p566_p3, %s2315_s30), 1  ;;  %v3006_v9 = vpack.c.bf16 %v583_v8, %v582_v7  ;;  %v584_v10 = vld [vmem:[%s4001_s1 + $0x30] sm:$0xff]  ;;  %v585_v11 = vld [vmem:[%s4001_s1 + $0x38] sm:$0xff]  ;;  %v586_v14 = vld [vmem:[%s4001_s1 + $0x40] sm:$0xff] }
  0x11   : > { %2999 = vmatprep.subr.bf16.mxu0 %v2998_v4  ;;  %s2438_s28 = sshll.u32 %s4005_s30, 5  ;;  %v3010_v13 = vpack.c.bf16 %v585_v11, %v584_v10  ;;  %v587_v15 = vld [vmem:[%s4001_s1 + $0x48] sm:$0xff]  ;;  %v588_v17 = vld [vmem:[%s4001_s1 + $0x50] sm:$0xff]  ;;  %v589_v18 = vld [vmem:[%s4001_s1 + $0x58] sm:$0xff]  ;;  %s573_s27 = scalar_lea.vmem %s3996_s18, %s4005_s30 }
  0x12   : > { %3001 = vmatpush3.bf16.msra.mxu0 %v2998_v4  ;;  %s3411_s20 = scalar_lea.vmem %s4002_s17, %s2438_s28  ;;  %v3014_v16 = vpack.c.bf16 %v587_v15, %v586_v14  ;;  %v3018_v19 = vpack.c.bf16 %v589_v18, %v588_v17  ;;  %v590_v20 = vld [vmem:[%s4001_s1 + $0x60] sm:$0xff]  ;;  %v591_v21 = vld [vmem:[%s4001_s1 + $0x68] sm:$0xff]  ;;  %v592_v23 = vld [vmem:[%s4001_s1 + $0x70] sm:$0xff] }
  0x13   : > { %3003 = vmatprep.subr.bf16.mxu0 %v3002_v6  ;;  %v574_v12 = vld [vmem:[%s3411_s20] sm:$0xff]  ;;  %v3022_v22 = vpack.c.bf16 %v591_v21, %v590_v20  ;;  %v593_v24 = vld [vmem:[%s4001_s1 + $0x78] sm:$0xff]  ;;  %v575_v26 = vld [vmem:[%s3411_s20 + $0x8] sm:$0xff] }
  0x14   : > { %2656 = vmatprep.mubr.f32.mxu0 %v574_v12  ;;  %v3026_v25 = vpack.c.bf16 %v593_v24, %v592_v23  ;;  %v576_v27 = vld [vmem:[%s3411_s20 + $0x10] sm:$0xff]  ;;  %v577_v28 = vld [vmem:[%s3411_s20 + $0x18] sm:$0xff]  ;;  %v2322_v31 = vld [vmem:[%s4003_s2] ss:$0 sm:$0xff]  ;;  %v3278_v24 = vmov 0.0|0.0  }
  0x15   : > { %v774_v4 = vld [vmem:[%s3982_s4 + $0x20] sm:$0xff]  ;;  %v775_v5 = vld [vmem:[%s3982_s4 + $0x28] sm:$0xff]  ;;  %v776_v7 = vld [vmem:[%s3982_s4 + $0x30] sm:$0xff] }
  0x16   : > { %3005 = vmatpush3.bf16.msra.mxu0 %v3002_v6  ;;  %v3070_v6 = vpack.c.bf16 %v775_v5, %v774_v4  ;;  %v777_v8 = vld [vmem:[%s3982_s4 + $0x38] sm:$0xff]  ;;  %v2345_v12 = vld [vmem:[%s3982_s4 + $0x80] sm:$0xff]  ;;  %v2347_v15 = vld [vmem:[%s3982_s4 + $0x90] sm:$0xff] }
  0x17   : > { %3007 = vmatprep.subr.bf16.mxu0 %v3006_v9  ;;  %v3074_v10 = vpack.c.bf16 %v777_v8, %v776_v7  ;;  %v2349_v18 = vld [vmem:[%s3982_s4 + $0xa0] sm:$0xff]  ;;  %v2351_v21 = vld [vmem:[%s3982_s4 + $0xb0] sm:$0xff]  ;;  %v1313_v45 = vld [vmem:[%s3985_s7 + $0x68] sm:$0xff] }
  0x18   : > { %v1302_v29 = vld [vmem:[%s3985_s7 + $0x10] sm:$0xff]  ;;  %v2359_v61 = vld [vmem:[%s3985_s7 + $0x80] sm:$0xff]  ;;  %v2360_v62 = vld [vmem:[%s3985_s7 + $0x88] sm:$0xff] }
  0x19   : > { %v1310_v41 = vld [vmem:[%s3985_s7 + $0x50] sm:$0xff]  ;;  %v2363_v4 = vld [vmem:[%s3985_s7 + $0xa0] sm:$0xff]  ;;  %v2364_v5 = vld [vmem:[%s3985_s7 + $0xa8] sm:$0xff] }
  0x1a   : > { %3009 = vmatpush3.bf16.msra.mxu0 %v3006_v9  ;;  %v2365_v7 = vld [vmem:[%s3985_s7 + $0xb0] sm:$0xff]  ;;  %v2366_v8 = vld [vmem:[%s3985_s7 + $0xb8] sm:$0xff] }
  0x1b   : > { %3011 = vmatprep.subr.bf16.mxu0 %v3010_v13 }
  0x1e   : > { %3013 = vmatpush3.bf16.msra.mxu0 %v3010_v13  ;;  %v2346_v13 = vld [vmem:[%s3982_s4 + $0x88] sm:$0xff] }
  0x1f   : > { %3015 = vmatprep.subr.bf16.mxu0 %v3014_v16  ;;  %v3086_v14 = vpack.c.bf16 %v2346_v13, %v2345_v12  ;;  %v2369_v13 = vld [vmem:[%s3985_s7 + $0xd0] sm:$0xff] }
  0x22   : > { %3017 = vmatpush3.bf16.msra.mxu0 %v3014_v16  ;;  %v2348_v16 = vld [vmem:[%s3982_s4 + $0x98] sm:$0xff] }
  0x23   : > { %3019 = vmatprep.subr.bf16.mxu0 %v3018_v19  ;;  %v3090_v17 = vpack.c.bf16 %v2348_v16, %v2347_v15  ;;  %v2371_v16 = vld [vmem:[%s3985_s7 + $0xe0] sm:$0xff] }
  0x26   : > { %3021 = vmatpush3.bf16.msra.mxu0 %v3018_v19  ;;  %v2350_v19 = vld [vmem:[%s3982_s4 + $0xa8] sm:$0xff] }
  0x27   : > { %3023 = vmatprep.subr.bf16.mxu0 %v3022_v22  ;;  %v3094_v20 = vpack.c.bf16 %v2350_v19, %v2349_v18  ;;  %v2373_v19 = vld [vmem:[%s3985_s7 + $0xf0] sm:$0xff] }
  0x2a   : > { %3025 = vmatpush3.bf16.msra.mxu0 %v3022_v22  ;;  %v2352_v22 = vld [vmem:[%s3982_s4 + $0xb8] sm:$0xff] }
  0x2b   : > { %3027 = vmatprep.subr.bf16.mxu0 %v3026_v25  ;;  %v3098_v23 = vpack.c.bf16 %v2352_v22, %v2351_v21 }
  0x2e   : > { %3029 = vmatpush3.bf16.msra.mxu0 %v3026_v25  ;;  %v3280_v25 = vmov 0.0  }
  0x31   : > { %2657 = vmatmul.mubr.f32.vlgmr.msra.gmra.mrb[0].mxu0 %v575_v26  ;;  %v1300_v26 = vld [vmem:[%s3985_s7] sm:$0xff] }
  0x32   : > { %2659 = vmatprep.mubr.f32.mxu0 %v576_v27  ;;  %v1301_v27 = vld [vmem:[%s3985_s7 + $0x8] sm:$0xff] }
  0x35   : > { %2660 = vmatmul.mubr.f32.gmra.mrb[2].mxu0 %v577_v28  ;;  %v3133_v28 = vpack.c.bf16 %v1301_v27, %v1300_v26  ;;  %v2377_v26 = vld [vmem:[%s3985_s7 + $0x100] sm:$0xff]  ;;  %v2378_v27 = vld [vmem:[%s3985_s7 + $0x108] sm:$0xff] }
  0x36   : > { %2670 = vmatprep.mubr.msk.f32.mxu0 %vm688_vm0, %v686_v30  ;;  %v1303_v30 = vld [vmem:[%s3985_s7 + $0x18] sm:$0xff] }
 0x104   : > { %v2658_v32 = vpop.f32.mrb[0].mxu0 }
 0x105   : > { %v673_v33 = vadd.f32 %v2658_v32, %v2322_v31  ;;  %v667_v34 = vpop.f32.mrb[1].mxu0  ;;  %v1304_v32 = vld [vmem:[%s3985_s7 + $0x20] sm:$0xff] }
 0x106   : > { %v668_v35 = vadd.f32 %v2322_v31, %v667_v34 }
 0x108   : > { %v3030_v36 = vpack.c.bf16 %v673_v33, %v668_v35  ;;  %v2661_v37 = vpop.f32.mrb[2].mxu0  ;;  %v1305_v33 = vld [vmem:[%s3985_s7 + $0x28] sm:$0xff]  ;;  %v1306_v35 = vld [vmem:[%s3985_s7 + $0x30] sm:$0xff] }
 0x109   : > { %v683_v38 = vadd.f32 %v2661_v37, %v2322_v31  ;;  %v677_v39 = vpop.f32.mrb[3].mxu0  ;;  %v3139_v34 = vpack.c.bf16 %v1305_v33, %v1304_v32  ;;  %v2379_v32 = vld [vmem:[%s3985_s7 + $0x110] sm:$0xff]  ;;  %v2380_v33 = vld [vmem:[%s3985_s7 + $0x118] sm:$0xff] }
 0x10a   : > { %v678_v42 = vadd.f32 %v2322_v31, %v677_v39  ;;  %3031 = vmatprep.subr.bf16.mxu0 %v3030_v36  ;;  %3039 = vmatprep.subr.bf16.mxu1 %v3030_v36  ;;  %v3136_v31 = vpack.c.bf16 %v1303_v30, %v1302_v29  ;;  %v1309_v39 = vld [vmem:[%s3985_s7 + $0x48] sm:$0xff]  ;;  %v2375_v30 = vld [vmem:[%s3984_s6 + $0x10] sm:$0xff] }
 0x10b   : > { %3033 = vmatpush3.bf16.msra.mxu0 %v3030_v36  ;;  %3041 = vmatpush3.bf16.msra.mxu1 %v3030_v36 }
 0x10c   : > { %v3034_v43 = vpack.c.bf16 %v683_v38, %v678_v42  ;;  %v1308_v38 = vld [vmem:[%s3985_s7 + $0x40] sm:$0xff]  ;;  %v1311_v42 = vld [vmem:[%s3985_s7 + $0x58] sm:$0xff] }
 0x10d   : > { %v3145_v40 = vpack.c.bf16 %v1309_v39, %v1308_v38  ;;  %v2383_v38 = vld [vmem:[%s3985_s7 + $0x130] sm:$0xff]  ;;  %v2384_v39 = vld [vmem:[%s3985_s7 + $0x138] sm:$0xff] }
 0x10e   : > { %3035 = vmatprep.subr.bf16.mxu0 %v3034_v43  ;;  %3043 = vmatprep.subr.bf16.mxu1 %v3034_v43 }
 0x10f   : > { %3037 = vmatpush3.bf16.msra.mxu0 %v3034_v43  ;;  %3045 = vmatpush3.bf16.msra.mxu1 %v3034_v43 }
 0x110   : > { %3079 = vmatprep.subr.bf16.mxu0 %v3030_v36  ;;  %3047 = vmatprep.subr.bf16.mxu1 %v3046_v44 }
 0x112   : > { %2682 = vmatmul.mubr.msk.f32.vlgmr.msra.gmra.mrb[0].mxu1 %vm688_vm0, %v2326_v47  ;;  %2671 = vmatmul.mubr.msk.f32.vlgmr.msra.gmra.mrb[4].mxu0 %vm688_vm0, %v687_v48  ;;  %v1314_v47 = vld [vmem:[%s3985_s7 + $0x70] sm:$0xff]  ;;  %v1315_v48 = vld [vmem:[%s3985_s7 + $0x78] sm:$0xff] }
 0x113   : > { %3081 = vmatpush3.bf16.msra.mxu0 %v3030_v36  ;;  %2730 = vmatprep.mubr.msk.f32.mxu0 %vm688_vm0, %v2341_v49  ;;  %v1307_v36 = vld [vmem:[%s3985_s7 + $0x38] sm:$0xff]  ;;  %v3154_v49 = vpack.c.bf16 %v1315_v48, %v1314_v47  ;;  %v2389_v47 = vld [vmem:[%s3985_s7 + $0x160] sm:$0xff]  ;;  %v2390_v48 = vld [vmem:[%s3985_s7 + $0x168] sm:$0xff] }
 0x114   : > { %3083 = vmatprep.subr.bf16.mxu0 %v3034_v43  ;;  %3049 = vmatpush3.bf16.msra.mxu1 %v3046_v44  ;;  %v3142_v37 = vpack.c.bf16 %v1307_v36, %v1306_v35  ;;  %v1312_v44 = vld [vmem:[%s3985_s7 + $0x60] sm:$0xff]  ;;  %v2382_v36 = vld [vmem:[%s3985_s7 + $0x128] sm:$0xff] }
 0x115   : > { %3051 = vmatprep.subr.bf16.mxu1 %v3050_v50  ;;  %v3151_v46 = vpack.c.bf16 %v1313_v45, %v1312_v44  ;;  %v2381_v35 = vld [vmem:[%s3985_s7 + $0x120] sm:$0xff]  ;;  %v2387_v44 = vld [vmem:[%s3985_s7 + $0x150] sm:$0xff]  ;;  %v2388_v45 = vld [vmem:[%s3985_s7 + $0x158] sm:$0xff] }
 0x117   : > { %3085 = vmatpush3.bf16.msra.mxu0 %v3034_v43  ;;  %v3148_v43 = vpack.c.bf16 %v1311_v42, %v1310_v41  ;;  %v2385_v41 = vld [vmem:[%s3985_s7 + $0x140] sm:$0xff]  ;;  %v2386_v42 = vld [vmem:[%s3985_s7 + $0x148] sm:$0xff] }
 0x118   : > { %3053 = vmatpush3.bf16.msra.mxu1 %v3050_v50  ;;  %3102 = vmatprep.subr.bf16.mxu0 %v3278_v24  ;;  %v2355_v50 = vld [vmem:[%s3983_s5] ss:$0 sm:$0xff] }
 0x119   : > { %3055 = vmatprep.subr.bf16.mxu1 %v3054_v53 }
 0x11a   : > { %2731 = vmatmul.mubr.msk.f32.vlgmr.msra.gmra.mrb[6].mxu0 %vm688_vm0, %v2342_v56 }
 0x11b   : > { %2756 = vmatprep.mubr.msk.f32.mxu0 %vm3279_vm2, %v3280_v25 }
 0x11c   : > { %3057 = vmatpush3.bf16.msra.mxu1 %v3054_v53 }
 0x11d   : > { %3059 = vmatprep.subr.bf16.mxu1 %v3058_v57 }
 0x120   : > { %3061 = vmatpush3.bf16.msra.mxu1 %v3058_v57 }
 0x121   : > { %3063 = vmatprep.subr.bf16.mxu1 %v3062_v60 }
 0x1e5   : > { %v2683_v63 = vpop.f32.mrb[0].mxu1  ;;  %v2672_v0 = vpop.f32.mrb[4].mxu0 }
 0x1e6   : > { %v853_v1 = vpop.f32.mrb[1].mxu1  ;;  %v761_v3 = vpop.f32.mrb[5].mxu0 }
 0x1e7   : > { %2700 = vmatprep.mubr.msk.f32.mxu1 %vm871_vm1, %v853_v1  ;;  %v2361_v1 = vld [vmem:[%s3985_s7 + $0x90] sm:$0xff] }
 0x1e8   : > { %2701 = vmatmul.mubr.msk.f32.vlgmr.msra.gmra.mrb[2].mxu1 %vm871_vm1, %v2683_v63  ;;  %v2357_v63 = vld [vmem:[%s3984_s6 + $0x8] sm:$0xff] }
 0x1e9   : > { %3065 = vmatpush3.bf16.msra.mxu1 %v3062_v60  ;;  %2719 = vmatprep.mubr.msk.f32.mxu1 %vm871_vm1, %v761_v3  ;;  %v1225_v60 = vld [vmem:[%s3984_s6] sm:$0xff] }
 0x1ea   : > { %3067 = vmatprep.subr.bf16.mxu1 %v3066_v2 }
 0x1ed   : > { %3069 = vmatpush3.bf16.msra.mxu1 %v3066_v2  ;;  %v2732_v9 = vpop.f32.mrb[6].mxu0  ;;  %v2362_v2 = vld [vmem:[%s3985_s7 + $0x98] sm:$0xff] }
 0x1ee   : > { %3071 = vmatprep.subr.bf16.mxu1 %v3070_v6  ;;  %v1109_v11 = vpop.f32.mrb[7].mxu0  ;;  %v3112_v3 = vpack.c.bf16 %v2362_v2, %v2361_v1  ;;  %v2394_v2 = vld [vmem:[%s3987_s9] ss:$0 sm:$0xff] }
 0x1f1   : > { %3073 = vmatpush3.bf16.msra.mxu1 %v3070_v6  ;;  %v3115_v6 = vpack.c.bf16 %v2364_v5, %v2363_v4  ;;  %v2395_v4 = vld [vmem:[%s3988_s10] ss:$0 sm:$0xff] }
 0x1f2   : > { %3075 = vmatprep.subr.bf16.mxu1 %v3074_v10  ;;  %v2399_v5 = vld [vmem:[%s3990_s12 + $0x80] sm:$0xff] }
 0x1f5   : > { %3077 = vmatpush3.bf16.msra.mxu1 %v3074_v10  ;;  %v2367_v10 = vld [vmem:[%s3985_s7 + $0xc0] sm:$0xff] }
 0x1f6   : > { %3087 = vmatprep.subr.bf16.mxu1 %v3086_v14 }
 0x1f8   : > { %2720 = vmatmul.mubr.msk.f32.vlgmr.msra.gmra.mrb[2].mxu1 %vm871_vm1, %v2672_v0  ;;  %v3109_v0 = vpack.c.bf16 %v2360_v62, %v2359_v61  ;;  %v2393_v61 = vld [vmem:[%s3986_s8] ss:$0 sm:$0xff] }
 0x1f9   : > { %3089 = vmatpush3.bf16.msra.mxu1 %v3086_v14  ;;  %2749 = vmatprep.mubr.msk.f32.mxu1 %vm871_vm1, %v1109_v11  ;;  %v2368_v11 = vld [vmem:[%s3985_s7 + $0xc8] sm:$0xff]  ;;  %v2370_v14 = vld [vmem:[%s3985_s7 + $0xd8] sm:$0xff] }
 0x1fa   : > { %3091 = vmatprep.subr.bf16.mxu1 %v3090_v17  ;;  %v3121_v12 = vpack.c.bf16 %v2368_v11, %v2367_v10  ;;  %v3124_v15 = vpack.c.bf16 %v2370_v14, %v2369_v13  ;;  %v2397_v11 = vld [vmem:[%s3989_s11 + $0x4] sm:$0xf]  ;;  %v2401_v14 = vld [vmem:[%s3990_s12 + $0x90] sm:$0xff] }
 0x1fd   : > { %3093 = vmatpush3.bf16.msra.mxu1 %v3090_v17  ;;  %v2372_v17 = vld [vmem:[%s3985_s7 + $0xe8] sm:$0xff] }
 0x1fe   : > { %3095 = vmatprep.subr.bf16.mxu1 %v3094_v20  ;;  %v3127_v18 = vpack.c.bf16 %v2372_v17, %v2371_v16  ;;  %v2402_v16 = vld [vmem:[%s3990_s12 + $0x98] sm:$0xff]  ;;  %v1815_v17 = vld [vmem:[%s3990_s12 + $0x10] sm:$0xff] }
 0x201   : > { %3097 = vmatpush3.bf16.msra.mxu1 %v3094_v20  ;;  %v2374_v20 = vld [vmem:[%s3985_s7 + $0xf8] sm:$0xff] }
 0x202   : > { %3099 = vmatprep.subr.bf16.mxu1 %v3098_v23  ;;  %v3130_v21 = vpack.c.bf16 %v2374_v20, %v2373_v19  ;;  %v3187_v19 = vpack.c.bf16 %v2402_v16, %v2401_v14  ;;  %v2403_v20 = vld [vmem:[%s3990_s12 + $0xa0] sm:$0xff]  ;;  %v2427_v14 = vld [vmem:[%s3990_s12 + $0x150] sm:$0xff] }
 0x205   : > { %3101 = vmatpush3.bf16.msra.mxu1 %v3098_v23 }
 0x206   : > { %3132 = vmatprep.subr.bf16.mxu1 %v3278_v24 }
 0x208   : > { %2750 = vmatmul.mubr.msk.f32.vlgmr.msra.gmra.mrb[2].mxu1 %vm871_vm1, %v2732_v9  ;;  %v3118_v9 = vpack.c.bf16 %v2366_v8, %v2365_v7  ;;  %v2400_v7 = vld [vmem:[%s3990_s12 + $0x88] sm:$0xff]  ;;  %v1813_v8 = vld [vmem:[%s3990_s12] sm:$0xff] }
 0x209   : > { %2833 = vmatprep.mubr.msk.f32.mxu1 %vm3279_vm2, %v3280_v25  ;;  %3134 = vmatpush3.bf16.msra.mxu1 %v3133_v28  ;;  %v3184_v13 = vpack.c.bf16 %v2400_v7, %v2399_v5  ;;  %v2422_v7 = vld [vmem:[%s3990_s12 + $0x128] sm:$0xff] }
 0x20a   : > { %3135 = vmatprep.subr.bf16.mxu1 %v3278_v24 }
 0x20d   : > { %3137 = vmatpush3.bf16.msra.mxu1 %v3136_v31  ;;  %v3160_v31 = vpack.c.bf16 %v2378_v27, %v2377_v26  ;;  %v1818_v26 = vld [vmem:[%s3990_s12 + $0x28] sm:$0xff] }
 0x20e   : > { %3138 = vmatprep.subr.bf16.mxu1 %v3278_v24 }
 0x211   : > { %3140 = vmatpush3.bf16.msra.mxu1 %v3139_v34  ;;  %v3163_v34 = vpack.c.bf16 %v2380_v33, %v2379_v32  ;;  %v1820_v32 = vld [vmem:[%s3990_s12 + $0x38] sm:$0xff] }
 0x212   : > { %3141 = vmatprep.subr.bf16.mxu1 %v3278_v24 }
 0x215   : > { %3143 = vmatpush3.bf16.msra.mxu1 %v3142_v37  ;;  %v3166_v37 = vpack.c.bf16 %v2382_v36, %v2381_v35  ;;  %v2408_v36 = vld [vmem:[%s3990_s12 + $0xc8] sm:$0xff] }
 0x216   : > { %3144 = vmatprep.subr.bf16.mxu1 %v3278_v24 }
 0x219   : > { %3146 = vmatpush3.bf16.msra.mxu1 %v3145_v40  ;;  %v3169_v40 = vpack.c.bf16 %v2384_v39, %v2383_v38  ;;  %v1822_v38 = vld [vmem:[%s3990_s12 + $0x48] sm:$0xff] }
 0x21a   : > { %3147 = vmatprep.subr.bf16.mxu1 %v3278_v24 }
 0x21d   : > { %3149 = vmatpush3.bf16.msra.mxu1 %v3148_v43  ;;  %v3172_v43 = vpack.c.bf16 %v2386_v42, %v2385_v41  ;;  %v2410_v42 = vld [vmem:[%s3990_s12 + $0xd8] sm:$0xff] }
 0x21e   : > { %3150 = vmatprep.subr.bf16.mxu1 %v3278_v24 }
 0x221   : > { %3152 = vmatpush3.bf16.msra.mxu1 %v3151_v46  ;;  %v3175_v46 = vpack.c.bf16 %v2388_v45, %v2387_v44  ;;  %v1824_v44 = vld [vmem:[%s3990_s12 + $0x58] sm:$0xff] }
 0x222   : > { %3153 = vmatprep.subr.bf16.mxu1 %v3278_v24 }
 0x225   : > { %3155 = vmatpush3.bf16.msra.mxu1 %v3154_v49  ;;  %v3178_v49 = vpack.c.bf16 %v2390_v48, %v2389_v47  ;;  %v2412_v48 = vld [vmem:[%s3990_s12 + $0xe8] sm:$0xff] }
 0x226   : > { %2883 = vmatprep.subr.mxu1 %v3280_v25 }
 0x2db   : > { %v2751_v51 = vpop.f32.mrb[2].mxu1 }
 0x2dc   : > { %v1218_v52 = vadd.f32 %v2751_v51, %v2355_v50  ;;  %v1199_v53 = vpop.f32.mrb[3].mxu1  ;;  %v2392_v51 = vld [vmem:[%s3985_s7 + $0x178] sm:$0xff] }
 0x2dd   : > { %v1217_v54 = vadd.f32 %v2355_v50, %v1199_v53  ;;  %v2391_v50 = vld [vmem:[%s3985_s7 + $0x170] sm:$0xff] }
 0x2de   : > { %vm1220_vm3 = vcmp.ge.f32.partialorder %v1218_v52, 0.0  ;;  %v1222_v55 = vmul.f32 0.2, %v1218_v52 }
 0x2df   : > { %vm1219_vm4 = vcmp.ge.f32.partialorder %v1217_v54, 0.0  ;;  %v1221_v56 = vmul.f32 0.2, %v1217_v54 }
 0x2e0   : > { %v1224_v57 = vsel %vm1220_vm3, %v1218_v52, %v1222_v55  ;;  %v3181_v52 = vpack.c.bf16 %v2392_v51, %v2391_v50  ;;  %v1826_v50 = vld [vmem:[%s3990_s12 + $0x68] sm:$0xff] }
 0x2e1   : > { %v1223_v58 = vsel %vm1219_vm4, %v1217_v54, %v1221_v56 }
 0x2e2   : > { %v3103_v59 = vpack.c.bf16 %v1224_v57, %v1223_v58 }
 0x2e4   : > { %3104 = vmatpush3.bf16.msra.mxu0 %v3103_v59 }
 0x2e5   : > { %3105 = vmatprep.subr.bf16.mxu0 %v3278_v24 }
 0x2e7   : > { %2757 = vmatmul.mubr.msk.f32.vlgmr.msra.gmra.mrb[8].mxu0 %vm1226_vm5, %v1225_v60 }
 0x2e8   : > { %3107 = vmatpush3.bf16.msra.mxu0 %v3103_v59  ;;  %2763 = vmatprep.mubr.msk.f32.mxu0 %vm3279_vm2, %v3280_v25 }
 0x2e9   : > { %3108 = vmatprep.subr.bf16.mxu0 %v3278_v24 }
 0x2eb   : > { %2764 = vmatmul.mubr.msk.f32.vlgmr.msra.gmra.mrb[10].mxu0 %vm1226_vm5, %v2357_v63 }
 0x2ec   : > { %3110 = vmatpush3.bf16.msra.mxu0 %v3109_v0  ;;  %2798 = vmatprep.mubr.msk.f32.mxu0 %vm3279_vm2, %v3280_v25 }
 0x2ed   : > { %3111 = vmatprep.subr.bf16.mxu0 %v3278_v24 }
 0x2f0   : > { %3113 = vmatpush3.bf16.msra.mxu0 %v3112_v3 }
 0x2f1   : > { %3114 = vmatprep.subr.bf16.mxu0 %v3278_v24 }
 0x2f4   : > { %3116 = vmatpush3.bf16.msra.mxu0 %v3115_v6 }
 0x2f5   : > { %3117 = vmatprep.subr.bf16.mxu0 %v3278_v24 }
 0x2f8   : > { %3119 = vmatpush3.bf16.msra.mxu0 %v3118_v9  ;;  %v1814_v9 = vld [vmem:[%s3990_s12 + $0x8] sm:$0xff] }
 0x2f9   : > { %3120 = vmatprep.subr.bf16.mxu0 %v3278_v24 }
 0x2fc   : > { %3122 = vmatpush3.bf16.msra.mxu0 %v3121_v12  ;;  %v1738_v12 = vld [vmem:[%s3989_s11] sm:$0xf] }
 0x2fd   : > { %3123 = vmatprep.subr.bf16.mxu0 %v3278_v24 }
 0x300   : > { %3125 = vmatpush3.bf16.msra.mxu0 %v3124_v15  ;;  %v3208_v15 = vpack.c.bf16 %v1814_v9, %v1813_v8  ;;  %v2423_v9 = vld [vmem:[%s3990_s12 + $0x130] sm:$0xff] }
 0x301   : > { %3126 = vmatprep.subr.bf16.mxu0 %v3278_v24 }
 0x304   : > { %3128 = vmatpush3.bf16.msra.mxu0 %v3127_v18  ;;  %v1816_v18 = vld [vmem:[%s3990_s12 + $0x18] sm:$0xff] }
 0x305   : > { %3129 = vmatprep.subr.bf16.mxu0 %v3278_v24 }
 0x308   : > { %3131 = vmatpush3.bf16.msra.mxu0 %v3130_v21  ;;  %v3211_v21 = vpack.c.bf16 %v1816_v18, %v1815_v17  ;;  %v2429_v17 = vld [vmem:[%s3990_s12 + $0x160] sm:$0xff]  ;;  %v2430_v18 = vld [vmem:[%s3990_s12 + $0x168] sm:$0xff] }
 0x309   : > { %3156 = vmatprep.subr.bf16.mxu0 %v3278_v24 }
 0x3ba   : > { %v1296_v22 = vpop.f32.mrb[8].mxu0 }
 0x3bb   : > { %v2758_v23 = vpop.f32.mrb[9].mxu0  ;;  %2834 = vmatmul.mubr.f32.vlgmr.msra.gmra.mrb[4].mxu1 %v1296_v22  ;;  %v2404_v22 = vld [vmem:[%s3990_s12 + $0xa8] sm:$0xff] }
 0x3bc   : > { %2885 = vmatprep.mubr.msk.f32.mxu1 %vm3279_vm2, %v3280_v25  ;;  %v1817_v23 = vld [vmem:[%s3990_s12 + $0x20] sm:$0xff]  ;;  %v3190_v27 = vpack.c.bf16 %v2404_v22, %v2403_v20  ;;  %v2431_v20 = vld [vmem:[%s3990_s12 + $0x170] sm:$0xff] }
 0x3be   : > { %v1387_v28 = vpop.f32.mrb[10].mxu0 }
 0x3bf   : > { %v2765_v29 = vpop.f32.mrb[11].mxu0  ;;  %2799 = vmatmul.mubr.f32.vlgmr.msra.gmra.mrb[12].mxu0 %v1387_v28  ;;  %v2405_v28 = vld [vmem:[%s3990_s12 + $0xb0] sm:$0xff] }
 0x3c0   : > { %3158 = vmatpush3.bf16.msra.mxu0 %v3103_v59  ;;  %2840 = vmatprep.mubr.msk.f32.mxu0 %vm3279_vm2, %v3280_v25  ;;  %v3214_v29 = vpack.c.bf16 %v1818_v26, %v1817_v23 }
 0x3c1   : > { %3159 = vmatprep.subr.bf16.mxu0 %v3278_v24 }
 0x3c3   : > { %2841 = vmatmul.mubr.msk.f32.vlgmr.msra.gmra.mrb[14].mxu0 %vm1226_vm5, %v2375_v30  ;;  %v2406_v30 = vld [vmem:[%s3990_s12 + $0xb8] sm:$0xff] }
 0x3c4   : > { %3161 = vmatpush3.bf16.msra.mxu0 %v3160_v31  ;;  %2875 = vmatprep.mubr.msk.f32.mxu0 %vm3279_vm2, %v3280_v25  ;;  %v1819_v31 = vld [vmem:[%s3990_s12 + $0x30] sm:$0xff]  ;;  %v3193_v33 = vpack.c.bf16 %v2406_v30, %v2405_v28 }
 0x3c5   : > { %3162 = vmatprep.subr.bf16.mxu0 %v3278_v24  ;;  %v3217_v35 = vpack.c.bf16 %v1820_v32, %v1819_v31 }
 0x3c8   : > { %3164 = vmatpush3.bf16.msra.mxu0 %v3163_v34  ;;  %v2407_v34 = vld [vmem:[%s3990_s12 + $0xc0] sm:$0xff] }
 0x3c9   : > { %3165 = vmatprep.subr.bf16.mxu0 %v3278_v24  ;;  %v3196_v39 = vpack.c.bf16 %v2408_v36, %v2407_v34 }
 0x3cc   : > { %3167 = vmatpush3.bf16.msra.mxu0 %v3166_v37  ;;  %v1821_v37 = vld [vmem:[%s3990_s12 + $0x40] sm:$0xff] }
 0x3cd   : > { %3168 = vmatprep.subr.bf16.mxu0 %v3278_v24  ;;  %v3220_v41 = vpack.c.bf16 %v1822_v38, %v1821_v37  ;;  %v2434_v37 = vld [vmem:[%s3992_s14] ss:$0 sm:$0xff] }
 0x3d0   : > { %3170 = vmatpush3.bf16.msra.mxu0 %v3169_v40  ;;  %v2409_v40 = vld [vmem:[%s3990_s12 + $0xd0] sm:$0xff] }
 0x3d1   : > { %3171 = vmatprep.subr.bf16.mxu0 %v3278_v24  ;;  %v3199_v45 = vpack.c.bf16 %v2410_v42, %v2409_v40 }
 0x3d4   : > { %3173 = vmatpush3.bf16.msra.mxu0 %v3172_v43  ;;  %v1823_v43 = vld [vmem:[%s3990_s12 + $0x50] sm:$0xff] }
 0x3d5   : > { %3174 = vmatprep.subr.bf16.mxu0 %v3278_v24  ;;  %v3223_v47 = vpack.c.bf16 %v1824_v44, %v1823_v43 }
 0x3d8   : > { %3176 = vmatpush3.bf16.msra.mxu0 %v3175_v46  ;;  %v2411_v46 = vld [vmem:[%s3990_s12 + $0xe0] sm:$0xff] }
 0x3d9   : > { %3177 = vmatprep.subr.bf16.mxu0 %v3278_v24  ;;  %v3202_v51 = vpack.c.bf16 %v2412_v48, %v2411_v46 }
 0x3dc   : > { %3179 = vmatpush3.bf16.msra.mxu0 %v3178_v49  ;;  %v1825_v49 = vld [vmem:[%s3990_s12 + $0x60] sm:$0xff] }
 0x3dd   : > { %3180 = vmatprep.subr.bf16.mxu0 %v3278_v24 }
 0x3e0   : > { %3182 = vmatpush3.bf16.msra.mxu0 %v3181_v52  ;;  %v3226_v52 = vpack.c.bf16 %v1826_v50, %v1825_v49 }
 0x3e1   : > { %2878 = vmatprep.subr.mxu0 %v3280_v25 }
 0x48e   : > { %v1544_v53 = vpop.f32.mrb[4].mxu1 }
 0x48f   : > { %v2835_v54 = vpop.f32.mrb[5].mxu1 }
 0x490   : > { %v2414_v54 = vld [vmem:[%s3990_s12 + $0xf8] sm:$0xff] }
 0x492   : > { %v1474_v55 = vpop.f32.mrb[12].mxu0 }
 0x493   : > { %v1545_v56 = vadd.f32 %v1544_v53, %v1474_v55  ;;  %v2800_v57 = vpop.f32.mrb[13].mxu0  ;;  %v2413_v53 = vld [vmem:[%s3990_s12 + $0xf0] sm:$0xff] }
 0x494   : > { %v3205_v55 = vpack.c.bf16 %v2414_v54, %v2413_v53  ;;  %v1828_v57 = vld [vmem:[%s3990_s12 + $0x78] sm:$0xff] }
 0x496   : > { %v1619_v58 = vpop.f32.mrb[14].mxu0 }
 0x497   : > { %v2842_v59 = vpop.f32.mrb[15].mxu0  ;;  %2876 = vmatmul.mubr.f32.vlgmr.msra.gmra.mrb[16].mxu0 %v1619_v58 }
 0x498   : > { %2880 = vmatprep.mubr.msk.f32.mxu0 %vm3279_vm2, %v3280_v25  ;;  %v2417_v59 = vld [vmem:[%s3990_s12 + $0x100] sm:$0xff] }
 0x56a   : > { %v1706_v60 = vpop.f32.mrb[16].mxu0 }
 0x56b   : > { %v1710_v62 = vadd.f32 %v1706_v60, %v1545_v56  ;;  %v2877_v63 = vpop.f32.mrb[17].mxu0  ;;  %v1827_v56 = vld [vmem:[%s3990_s12 + $0x70] sm:$0xff]  ;;  %v2418_v60 = vld [vmem:[%s3990_s12 + $0x108] sm:$0xff] }
 0x56c   : > { %v3229_v58 = vpack.c.bf16 %v1828_v57, %v1827_v56 }
 0x56d   : > { %v1718_v0 = vadd.f32 %v2393_v61, %v1710_v62 }
 0x56f   : > { %vm1719_vm6 = vcmp.ge.f32.partialorder %v1718_v0, 0.0  ;;  %v1720_v1 = vmul.f32 0.2, %v1718_v0 }
 0x571   : > { %v1721_v3 = vsel %vm1719_vm6, %v1718_v0, %v1720_v1  ;;  %v2415_v1 = vld [vmem:[%s3989_s11 + $0x8] sm:$0xf] }
 0x572   : > { %v1729_v6 = vmul.f32 %v2394_v2, %v1721_v3  ;;  %v3232_v2 = vpack.c.bf16 %v2418_v60, %v2417_v59  ;;  %v2419_v3 = vld [vmem:[%s3990_s12 + $0x110] sm:$0xff] }
 0x574   : > { %v3777_v10 = vadd.f32 %v2395_v4, %v1729_v6  ;;  %v2420_v4 = vld [vmem:[%s3990_s12 + $0x118] sm:$0xff]  ;;  %v2421_v6 = vld [vmem:[%s3990_s12 + $0x120] sm:$0xff] }
 0x575   : > { %v3235_v5 = vpack.c.bf16 %v2420_v4, %v2419_v3  ;;  %v3238_v8 = vpack.c.bf16 %v2422_v7, %v2421_v6 }
 0x576   : > { %2879 = vmatpush3.msra.mxu0 %v3777_v10  ;;  %2884 = vmatpush3.msra.mxu1 %v3777_v10 }
 0x577   : > { %2886 = vmatmul.mubr.msk.f32.vlgmr.msra.gmra.mrb[6].mxu1 %vm1739_vm7, %v2397_v11  ;;  %2881 = vmatmul.mubr.msk.f32.vlgmr.msra.gmra.mrb[18].mxu0 %vm1739_vm7, %v1738_v12  ;;  %v2425_v11 = vld [vmem:[%s3990_s12 + $0x140] sm:$0xff]  ;;  %v2426_v12 = vld [vmem:[%s3990_s12 + $0x148] sm:$0xff] }
 0x578   : > { %3183 = vmatprep.subr.bf16.mxu1 %v3278_v24  ;;  %3207 = vmatprep.subr.bf16.mxu0 %v3278_v24 }
 0x579   : > { %3185 = vmatpush3.bf16.msra.mxu1 %v3184_v13  ;;  %3209 = vmatpush3.bf16.msra.mxu0 %v3208_v15  ;;  %v3244_v13 = vpack.c.bf16 %v2426_v12, %v2425_v11  ;;  %v2428_v15 = vld [vmem:[%s3990_s12 + $0x158] sm:$0xff] }
 0x57a   : > { %3186 = vmatprep.subr.bf16.mxu1 %v3278_v24  ;;  %3210 = vmatprep.subr.bf16.mxu0 %v3278_v24  ;;  %v3247_v16 = vpack.c.bf16 %v2428_v15, %v2427_v14 }
 0x57b   : > { %2920 = vmatprep.mubr.msk.f32.mxu1 %vm3279_vm2, %v3280_v25  ;;  %2955 = vmatprep.mubr.msk.f32.mxu0 %vm3279_vm2, %v3280_v25 }
 0x57d   : > { %3188 = vmatpush3.bf16.msra.mxu1 %v3187_v19  ;;  %3212 = vmatpush3.bf16.msra.mxu0 %v3211_v21  ;;  %v3250_v19 = vpack.c.bf16 %v2430_v18, %v2429_v17  ;;  %v2432_v21 = vld [vmem:[%s3990_s12 + $0x178] sm:$0xff] }
 0x57e   : > { %3189 = vmatprep.subr.bf16.mxu1 %v3278_v24  ;;  %3213 = vmatprep.subr.bf16.mxu0 %v3278_v24  ;;  %v3253_v22 = vpack.c.bf16 %v2432_v21, %v2431_v20 }
 0x581   : > { %3191 = vmatpush3.bf16.msra.mxu1 %v3190_v27  ;;  %3215 = vmatpush3.bf16.msra.mxu0 %v3214_v29 }
 0x582   : > { %3192 = vmatprep.subr.bf16.mxu1 %v3278_v24  ;;  %3216 = vmatprep.subr.bf16.mxu0 %v3278_v24 }
 0x585   : > { %3194 = vmatpush3.bf16.msra.mxu1 %v3193_v33  ;;  %3218 = vmatpush3.bf16.msra.mxu0 %v3217_v35 }
 0x586   : > { %3195 = vmatprep.subr.bf16.mxu1 %v3278_v24  ;;  %3219 = vmatprep.subr.bf16.mxu0 %v3278_v24 }
 0x589   : > { %3197 = vmatpush3.bf16.msra.mxu1 %v3196_v39  ;;  %3221 = vmatpush3.bf16.msra.mxu0 %v3220_v41  ;;  %v2435_v39 = vld [vmem:[%s3993_s15] ss:$0 sm:$0xff] }
 0x58a   : > { %3198 = vmatprep.subr.bf16.mxu1 %v3278_v24  ;;  %3222 = vmatprep.subr.bf16.mxu0 %v3278_v24  ;;  %v2251_v41 = vld [vmem:[%s3994_s16] sm:$0xf] }
 0x58d   : > { %3200 = vmatpush3.bf16.msra.mxu1 %v3199_v45  ;;  %3224 = vmatpush3.bf16.msra.mxu0 %v3223_v47 }
 0x58e   : > { %3201 = vmatprep.subr.bf16.mxu1 %v3278_v24  ;;  %3225 = vmatprep.subr.bf16.mxu0 %v3278_v24 }
 0x591   : > { %3203 = vmatpush3.bf16.msra.mxu1 %v3202_v51  ;;  %3227 = vmatpush3.bf16.msra.mxu0 %v3226_v52  ;;  %v2264_v52 = vld [vmem:[#allocation2] sm:$0x1] }
 0x592   : > { %3204 = vmatprep.subr.bf16.mxu1 %v3278_v24  ;;  %3228 = vmatprep.subr.bf16.mxu0 %v3278_v24 }
 0x595   : > { %3206 = vmatpush3.bf16.msra.mxu1 %v3205_v55  ;;  %3230 = vmatpush3.bf16.msra.mxu0 %v3229_v58 }
 0x596   : > { %2958 = vmatprep.subr.mxu1 %v3280_v25 }
 0x64a   : > { %v1900_v61 = vpop.f32.mrb[6].mxu1  ;;  %v1809_v62 = vpop.f32.mrb[18].mxu0 }
 0x64b   : > { %2921 = vmatmul.mubr.f32.vlgmr.msra.gmra.mrb[8].mxu1 %v1900_v61  ;;  %v2887_v63 = vpop.f32.mrb[7].mxu1  ;;  %2956 = vmatmul.mubr.f32.vlgmr.msra.gmra.mrb[20].mxu0 %v1809_v62  ;;  %v2882_v0 = vpop.f32.mrb[19].mxu0 }
 0x64c   : > { %2959 = vmatpush3.msra.mxu1 %v3777_v10  ;;  %2960 = vmatprep.mubr.msk.f32.mxu1 %vm3279_vm2, %v3280_v25 }
 0x64d   : > { %3231 = vmatprep.subr.bf16.mxu1 %v3278_v24 }
 0x64f   : > { %2961 = vmatmul.mubr.msk.f32.vlgmr.msra.gmra.mrb[10].mxu1 %vm1739_vm7, %v2415_v1 }
 0x650   : > { %3233 = vmatpush3.bf16.msra.mxu1 %v3232_v2  ;;  %2995 = vmatprep.mubr.msk.f32.mxu1 %vm3279_vm2, %v3280_v25  ;;  %v2424_v25 = vld [vmem:[%s3990_s12 + $0x138] sm:$0xff] }
 0x651   : > { %3234 = vmatprep.subr.bf16.mxu1 %v3278_v24  ;;  %v3241_v10 = vpack.c.bf16 %v2424_v25, %v2423_v9 }
 0x654   : > { %3236 = vmatpush3.bf16.msra.mxu1 %v3235_v5 }
 0x655   : > { %3237 = vmatprep.subr.bf16.mxu1 %v3278_v24 }
 0x658   : > { %3239 = vmatpush3.bf16.msra.mxu1 %v3238_v8 }
 0x659   : > { %3240 = vmatprep.subr.bf16.mxu1 %v3278_v24 }
 0x65c   : > { %3242 = vmatpush3.bf16.msra.mxu1 %v3241_v10 }
 0x65d   : > { %3243 = vmatprep.subr.bf16.mxu1 %v3278_v24 }
 0x660   : > { %3245 = vmatpush3.bf16.msra.mxu1 %v3244_v13 }
 0x661   : > { %3246 = vmatprep.subr.bf16.mxu1 %v3278_v24 }
 0x664   : > { %3248 = vmatpush3.bf16.msra.mxu1 %v3247_v16 }
 0x665   : > { %3249 = vmatprep.subr.bf16.mxu1 %v3278_v24 }
 0x668   : > { %3251 = vmatpush3.bf16.msra.mxu1 %v3250_v19 }
 0x669   : > { %3252 = vmatprep.subr.bf16.mxu1 %v3278_v24  ;;  %v2433_v24 = vld [vmem:[%s3991_s13] ss:$0 sm:$0xff] }
 0x66c   : > { %3254 = vmatpush3.bf16.msra.mxu1 %v3253_v22 }
 0x71e   : > { %v1987_v23 = vpop.f32.mrb[8].mxu1  ;;  %v2057_v26 = vpop.f32.mrb[20].mxu0 }
 0x71f   : > { %v2922_v27 = vpop.f32.mrb[9].mxu1  ;;  %v2058_v28 = vadd.f32 %v2057_v26, %v1987_v23  ;;  %v2957_v29 = vpop.f32.mrb[21].mxu0 }
 0x722   : > { %v2132_v30 = vpop.f32.mrb[10].mxu1 }
 0x723   : > { %2996 = vmatmul.mubr.f32.vlgmr.msra.gmra.mrb[12].mxu1 %v2132_v30  ;;  %v2962_v31 = vpop.f32.mrb[11].mxu1 }
 0x7f6   : > { %v2219_v32 = vpop.f32.mrb[12].mxu1 }
 0x7f7   : > { %v2223_v33 = vadd.f32 %v2219_v32, %v2058_v28  ;;  %v2997_v34 = vpop.f32.mrb[13].mxu1 }
 0x7f9   : > { %v2231_v35 = vadd.f32 %v2433_v24, %v2223_v33 }
 0x7fb   : > { %vm2232_vm8 = vcmp.ge.f32.partialorder %v2231_v35, 0.0  ;;  %v2233_v36 = vmul.f32 0.2, %v2231_v35 }
 0x7fd   : > { %v2234_v38 = vsel %vm2232_vm8, %v2231_v35, %v2233_v36 }
 0x7fe   : > { %v2242_v40 = vmul.f32 %v2434_v37, %v2234_v38 }
 0x800   : > { %v2250_v42 = vadd.f32 %v2435_v39, %v2242_v40 }
 0x802   : > { %v2252_v43 = vmul.f32 %v2251_v41, %v2250_v42 }
 0x804   : > { %v2254_v44 = vsel %vm2253_vm9, %v2252_v43, 0.0 }
 0x805   : > { %2255 = vadd.xlane.f32.xlu0 %v2254_v44 }
 0x892   : > { %v2256_v45 = vpop.xlane.xlu0 %2255 }
 0x893   : > { %v2257_v46 = vsel %vm2253_vm9, %v2256_v45, 0.0 }
 0x894   : > { %v2258_v47 = vrot.slane %v2257_v46, 4 }
 0x896   : > { %v2259_v48 = vadd.f32 %v2258_v47, %v2257_v46 }
 0x898   : > { %v2260_v49 = vrot.slane %v2259_v48, 2 }
 0x89a   : > { %v2261_v50 = vadd.f32 %v2260_v49, %v2259_v48 }
 0x89c   : > { %v2262_v51 = vrot.slane %v2261_v50, 1 }
 0x89e   : > { %v2263_v53 = vadd.f32 %v2262_v51, %v2261_v50 }
 0x8a0   : > { %v2265_v54 = vadd.f32 %v2264_v52, %v2263_v53 }
 0x8a2   : > { %2267 = vst.msk [vmem:[%s573_s27] sm:$0x1] %vm2266_vm10, %v2265_v54 }
 0x8a3 PF: > { %s30_s29 = sadd.s32 1, %s3276_s29  }
 0x8a4   : > { %p27_p4 = scmp.ge.s32.totalorder %s30_s29, 4  }
 0x8a6   :  { %29 = sbr.rel (!%p27_p4) target bundleno = 4 (0x4), region = 134 }

</bundles_post_ra>
